<compile_context>
chip_gen: v6e
topology: v6e:2x2x1
jax: 0.10.0
libtpu: 0.0.40
codegen_flags: <defaults>
</compile_context>

<pallas_src>
import jax
import jax.numpy as jnp
from jax import lax
from jax.experimental import pallas as pl
from jax.experimental.pallas import tpu as pltpu

# Small shapes consistent with the module (original default input_shape=(80, 80)).
H = W = 16
N = 2
C1, C2, C3 = 6, 8, 10
S = H * W                              # flattened 16x16 spatial embedding
LINSIZE = (H - 3) * (W - 3)            # 13 * 13 = 169
FC_HIDDEN = 15
BN_EPS = 1e-5
LEAKY_SLOPE = 0.01                     # torch.nn.LeakyReLU default

TAPS = tuple((di, dj) for di in (-1, 0, 1) for dj in (-1, 0, 1))
_LOG2W = W.bit_length() - 1            # W == 16 (power of two)


# ------------------------------ Pallas kernel ------------------------------ #

def _shift(x, d):
    """Circular lane shift: out[..., s] = x[..., (s + d) mod S]."""
    if d == 0:
        return x
    return pltpu.roll(x, (-d) % S, axis=1)


def _maxpool_2x2_s1(v):
    """MaxPool2d(kernel=2, stride=1) on the flattened embedding.

    Valid at positions (i, j) with i, j < n-1 when `v` is valid on an n x n
    window; other lanes hold garbage and are masked by the caller.
    """
    return jnp.maximum(jnp.maximum(v, _shift(v, 1)),
                       jnp.maximum(_shift(v, W), _shift(v, W + 1)))


def fused_kernel(x_ref,
                 w1_ref, b1_ref, bn1s_ref, bn1b_ref,
                 w2_ref, b2_ref,
                 w3_ref, b3_ref, bn2s_ref, bn2b_ref,
                 fc1w_ref, fc1b_ref, fc2w_ref, fc2b_ref,
                 out_ref):
    f32 = jnp.float32
    lane = lax.broadcasted_iota(jnp.int32, (1, S), 1)
    row = lane >> _LOG2W                 # i = s // 16
    col = lane & (W - 1)                 # j = s % 16

    def extent_mask(n):
        # 1.0 on the top-left n x n window of the 16x16 embedding, else 0.0.
        return ((row < n) & (col < n)).astype(f32)

    def conv1_tap_mask(di, dj):
        # Zero-padding mask for layer 1 (full 16x16 input): zero where the
        # shifted neighbour (i+di, j+dj) falls outside the 16x16 grid.
        conds = []
        if di == -1:
            conds.append(row >= 1)
        elif di == 1:
            conds.append(row <= H - 2)
        if dj == -1:
            conds.append(col >= 1)
        elif dj == 1:
            conds.append(col <= W - 2)
        if not conds:
            return None
        ok = conds[0]
        for c in conds[1:]:
            ok = ok & c
        return ok.astype(f32)

    # ---- block 1: Conv2d(1->6, 3x3, pad=1) + ReLU + MaxPool(2,s=1) + BN(6) ----
    x0 = x_ref[0]                                        # (1, S)
    acc1 = None
    for t, (di, dj) in enumerate(TAPS):
        xt = _shift(x0, di * W + dj)
        m = conv1_tap_mask(di, dj)
        if m is not None:
            xt = xt * m
        term = w1_ref[t] * xt                            # (C1,1)*(1,S) -> (C1,S)
        acc1 = term if acc1 is None else acc1 + term
    c1 = jnp.maximum(acc1 + b1_ref[...], 0.0)            # ReLU
    a1 = _maxpool_2x2_s1(c1)
    a1 = a1 * bn1s_ref[...] + bn1b_ref[...]              # folded BN (eval)
    a1 = a1 * extent_mask(H - 1)                         # valid 15x15, zero halo

    # ---- block 2: Conv2d(6->8, 3x3, pad=1) + ReLU + MaxPool(2,s=1) -------------
    acc2 = None
    for t, (di, dj) in enumerate(TAPS):
        xt = _shift(a1, di * W + dj)                     # zero halo provides padding
        d2 = jnp.dot(w2_ref[t], xt, preferred_element_type=f32)   # (C2,C1)@(C1,S)
        acc2 = d2 if acc2 is None else acc2 + d2
    c2 = jnp.maximum(acc2 + b2_ref[...], 0.0)
    a2 = _maxpool_2x2_s1(c2)
    a2 = a2 * extent_mask(H - 2)                         # valid 14x14, zero halo

    # ---- block 3: Conv2d(8->10, 3x3, pad=1) + LeakyReLU + MaxPool + BN(10) -----
    acc3 = None
    for t, (di, dj) in enumerate(TAPS):
        xt = _shift(a2, di * W + dj)
        d3 = jnp.dot(w3_ref[t], xt, preferred_element_type=f32)   # (C3,C2)@(C2,S)
        acc3 = d3 if acc3 is None else acc3 + d3
    c3 = acc3 + b3_ref[...]
    c3 = jnp.where(c3 > 0.0, c3, LEAKY_SLOPE * c3)       # LeakyReLU
    y = _maxpool_2x2_s1(c3)
    y = y * bn2s_ref[...] + bn2b_ref[...]                # folded BN (eval)
    y = y * extent_mask(H - 3)                           # valid 13x13, zero halo

    # ---- fc: Linear(10*169 -> 15) -> Dropout(eval id) -> Linear(15 -> 1) -> sigmoid
    # fc1 weights were re-indexed into the 16x16 embedding (zeros outside the
    # 13x13 window) so the contraction runs directly on the (C3, S) maps.
    hdn = fc1b_ref[...]                                  # (1, 15)
    for c in range(C3):
        hdn = hdn + jnp.dot(y[c:c + 1, :], fc1w_ref[c],
                            preferred_element_type=f32)
    # TODO(synk): Dropout(0.6) is eval-mode identity (no RNG masking).
    z = jnp.dot(hdn, fc2w_ref[...], preferred_element_type=f32) + fc2b_ref[...]
    out_ref[0] = 1.0 / (1.0 + jnp.exp(-z))               # exp on EUP; (1,1) store


# ------------------------------- JAX wrapper -------------------------------- #

def fft_spectogram_forward(x, p):
    """x: (N, 1, H, W) float32 (NCHW, like the PyTorch module). Returns (N, 1)."""
    n = x.shape[0]
    f32 = jnp.float32

    # Flatten spatial into a single lane-dense axis of length S = H*W.
    x_flat = x.reshape(n, 1, S).astype(f32)

    # Fold eval-mode BatchNorm into per-channel scale/shift (column vectors).
    s1 = p["bn1_gamma"] / jnp.sqrt(p["bn1_var"] + BN_EPS)
    bn1_scale = s1.reshape(C1, 1)
    bn1_shift = (p["bn1_beta"] - p["bn1_mean"] * s1).reshape(C1, 1)
    s2 = p["bn2_gamma"] / jnp.sqrt(p["bn2_var"] + BN_EPS)
    bn2_scale = s2.reshape(C3, 1)
    bn2_shift = (p["bn2_beta"] - p["bn2_mean"] * s2).reshape(C3, 1)

    # Conv weights as per-tap matrices: w_taps[t] = w[:, :, di, dj], t = di*3+dj.
    w1_taps = jnp.transpose(p["conv1_w"], (2, 3, 0, 1)).reshape(9, C1, 1)
    w2_taps = jnp.transpose(p["conv2_w"], (2, 3, 0, 1)).reshape(9, C2, C1)
    w3_taps = jnp.transpose(p["conv3_w"], (2, 3, 0, 1)).reshape(9, C3, C2)
    b1 = p["conv1_b"].reshape(C1, 1)
    b2 = p["conv2_b"].reshape(C2, 1)
    b3 = p["conv3_b"].reshape(C3, 1)

    # fc1 weights re-indexed into the 16x16 embedding (zeros outside the valid
    # 13x13 window), matching torch's `out.view(-1, 10*linsize)` C-major order.
    w_fc1 = p["fc1_w"].reshape(FC_HIDDEN, C3, H - 3, W - 3)     # (15,10,13,13)
    w_fc1 = jnp.pad(w_fc1, ((0, 0), (0, 0), (0, 3), (0, 3)))    # (15,10,16,16)
    w_fc1 = jnp.transpose(w_fc1.reshape(FC_HIDDEN, C3, S), (1, 2, 0))  # (10,256,15)
    fc1_b = p["fc1_b"].reshape(1, FC_HIDDEN)
    fc2_wt = p["fc2_w"].reshape(1, FC_HIDDEN).T                 # (15, 1)
    fc2_b = p["fc2_b"].reshape(1, 1)

    def full_spec(shape):
        zeros = (0,) * len(shape)
        return pl.BlockSpec(shape, lambda b: zeros)

    out = pl.pallas_call(
        fused_kernel,
        out_shape=jax.ShapeDtypeStruct((n, 1, 1), f32),
        grid=(n,),
        in_specs=[
            pl.BlockSpec((1, 1, S), lambda b: (b, 0, 0)),         # x (per batch elem)
            full_spec((9, C1, 1)), full_spec((C1, 1)),            # conv1 w, b
            full_spec((C1, 1)), full_spec((C1, 1)),               # bn1 scale, shift
            full_spec((9, C2, C1)), full_spec((C2, 1)),           # conv2 w, b
            full_spec((9, C3, C2)), full_spec((C3, 1)),           # conv3 w, b
            full_spec((C3, 1)), full_spec((C3, 1)),               # bn2 scale, shift
            full_spec((C3, S, FC_HIDDEN)), full_spec((1, FC_HIDDEN)),  # fc1 w, b
            full_spec((FC_HIDDEN, 1)), full_spec((1, 1)),         # fc2 w, b
        ],
        out_specs=pl.BlockSpec((1, 1, 1), lambda b: (b, 0, 0)),
        compiler_params=pltpu.CompilerParams(
            dimension_semantics=("parallel",)),
    )(
        x_flat,
        w1_taps, b1, bn1_scale, bn1_shift,
        w2_taps, b2,
        w3_taps, b3, bn2_scale, bn2_shift,
        w_fc1, fc1_b, fc2_wt, fc2_b,
    )
    return out.reshape(n, 1)


# -------------------------- deterministic parameters ------------------------ #

def init_params(key):
    ks = jax.random.split(key, 18)
    f32 = jnp.float32
    p = {}
    p["conv1_w"] = 0.30 * jax.random.normal(ks[0], (C1, 1, 3, 3), f32)
    p["conv1_b"] = 0.10 * jax.random.normal(ks[1], (C1,), f32)
    p["bn1_gamma"] = 1.0 + 0.10 * jax.random.normal(ks[2], (C1,), f32)
    p["bn1_beta"] = 0.10 * jax.random.normal(ks[3], (C1,), f32)
    p["bn1_mean"] = 0.10 * jax.random.normal(ks[4], (C1,), f32)
    p["bn1_var"] = 1.0 + 0.10 * jnp.abs(jax.random.normal(ks[5], (C1,), f32))
    p["conv2_w"] = 0.15 * jax.random.normal(ks[6], (C2, C1, 3, 3), f32)
    p["conv2_b"] = 0.10 * jax.random.normal(ks[7], (C2,), f32)
    p["conv3_w"] = 0.12 * jax.random.normal(ks[8], (C3, C2, 3, 3), f32)
    p["conv3_b"] = 0.10 * jax.random.normal(ks[9], (C3,), f32)
    p["bn2_gamma"] = 1.0 + 0.10 * jax.random.normal(ks[10], (C3,), f32)
    p["bn2_beta"] = 0.10 * jax.random.normal(ks[11], (C3,), f32)
    p["bn2_mean"] = 0.10 * jax.random.normal(ks[12], (C3,), f32)
    p["bn2_var"] = 1.0 + 0.10 * jnp.abs(jax.random.normal(ks[13], (C3,), f32))
    p["fc1_w"] = 0.03 * jax.random.normal(ks[14], (FC_HIDDEN, C3 * LINSIZE), f32)
    p["fc1_b"] = 0.10 * jax.random.normal(ks[15], (FC_HIDDEN,), f32)
    p["fc2_w"] = 0.30 * jax.random.normal(ks[16], (1, FC_HIDDEN), f32)
    p["fc2_b"] = 0.10 * jax.random.normal(ks[17], (1,), f32)
    return p


# ---------------------------- pure-JAX reference ---------------------------- #

def reference_forward(x, p):
    hi = jax.lax.Precision.HIGHEST

    def conv(v, w, b):
        y = lax.conv_general_dilated(v, w, (1, 1), ((1, 1), (1, 1)),
                                     dimension_numbers=("NCHW", "OIHW", "NCHW"),
                                     precision=hi)
        return y + b[None, :, None, None]

    def pool(v):
        return lax.reduce_window(v, -jnp.inf, lax.max, (1, 1, 2, 2), (1, 1, 1, 1), "VALID")

    def bn(v, g, bta, m, var):
        return (v - m[None, :, None, None]) / jnp.sqrt(var[None, :, None, None] + BN_EPS) \
            * g[None, :, None, None] + bta[None, :, None, None]

    out = conv(x, p["conv1_w"], p["conv1_b"])
    out = jnp.maximum(out, 0.0)
    out = pool(out)
    out = bn(out, p["bn1_gamma"], p["bn1_beta"], p["bn1_mean"], p["bn1_var"])
    out = conv(out, p["conv2_w"], p["conv2_b"])
    out = jnp.maximum(out, 0.0)
    out = pool(out)
    out = conv(out, p["conv3_w"], p["conv3_b"])
    out = jnp.where(out > 0.0, out, LEAKY_SLOPE * out)
    out = pool(out)
    out = bn(out, p["bn2_gamma"], p["bn2_beta"], p["bn2_mean"], p["bn2_var"])
    out = out.reshape(x.shape[0], -1)
    out = jnp.dot(out, p["fc1_w"].T, precision=hi) + p["fc1_b"]   # dropout: eval identity
    out = jnp.dot(out, p["fc2_w"].T, precision=hi) + p["fc2_b"]
    return jax.nn.sigmoid(out)


if __name__ == "__main__":
    key = jax.random.PRNGKey(0)
    k_x, k_p = jax.random.split(key)
    x = jax.random.normal(k_x, (N, 1, H, W), jnp.float32)
    params = init_params(k_p)

    out = fft_spectogram_forward(x, params)
    out = jax.block_until_ready(out)

    ref = reference_forward(x, params)
    assert out.shape == (N, 1)
    assert bool(jnp.all(jnp.isfinite(out)))
    err = float(jnp.max(jnp.abs(out - ref)))
    assert err < 2e-2, f"max abs diff vs reference: {err}"

    print("KERNEL_OK")
</pallas_src>

<mosaic_0001>
module attributes {stable_mosaic.version = 11 : i64} {
  func.func @fused_kernel(%arg0: i32, %arg1: memref<1x1x256xf32, #tpu.memory_space<vmem>>, %arg2: memref<9x6x1xf32, #tpu.memory_space<vmem>>, %arg3: memref<6x1xf32, #tpu.memory_space<vmem>>, %arg4: memref<6x1xf32, #tpu.memory_space<vmem>>, %arg5: memref<6x1xf32, #tpu.memory_space<vmem>>, %arg6: memref<9x8x6xf32, #tpu.memory_space<vmem>>, %arg7: memref<8x1xf32, #tpu.memory_space<vmem>>, %arg8: memref<9x10x8xf32, #tpu.memory_space<vmem>>, %arg9: memref<10x1xf32, #tpu.memory_space<vmem>>, %arg10: memref<10x1xf32, #tpu.memory_space<vmem>>, %arg11: memref<10x1xf32, #tpu.memory_space<vmem>>, %arg12: memref<10x256x15xf32, #tpu.memory_space<vmem>>, %arg13: memref<1x15xf32, #tpu.memory_space<vmem>>, %arg14: memref<15x1xf32, #tpu.memory_space<vmem>>, %arg15: memref<1x1xf32, #tpu.memory_space<vmem>>, %arg16: memref<1x1x1xf32, #tpu.memory_space<vmem>>) attributes {dimension_semantics = [#tpu.dimension_semantics<parallel>], iteration_bounds = array<i64: 2>, scalar_prefetch = 0 : i64, scratch_operands = 0 : i64, tpu.core_type = #tpu.core_type<tc>, window_params = [{transform_indices = @transform_0, window_bounds = array<i64: 1, 1, 256>}, {pipeline_mode = #tpu.pipeline_mode<synchronous>, transform_indices = @transform_1, window_bounds = array<i64: 9, 6, 1>}, {pipeline_mode = #tpu.pipeline_mode<synchronous>, transform_indices = @transform_2, window_bounds = array<i64: 6, 1>}, {pipeline_mode = #tpu.pipeline_mode<synchronous>, transform_indices = @transform_3, window_bounds = array<i64: 6, 1>}, {pipeline_mode = #tpu.pipeline_mode<synchronous>, transform_indices = @transform_4, window_bounds = array<i64: 6, 1>}, {pipeline_mode = #tpu.pipeline_mode<synchronous>, transform_indices = @transform_5, window_bounds = array<i64: 9, 8, 6>}, {pipeline_mode = #tpu.pipeline_mode<synchronous>, transform_indices = @transform_6, window_bounds = array<i64: 8, 1>}, {pipeline_mode = #tpu.pipeline_mode<synchronous>, transform_indices = @transform_7, window_bounds = array<i64: 9, 10, 8>}, {pipeline_mode = #tpu.pipeline_mode<synchronous>, transform_indices = @transform_8, window_bounds = array<i64: 10, 1>}, {pipeline_mode = #tpu.pipeline_mode<synchronous>, transform_indices = @transform_9, window_bounds = array<i64: 10, 1>}, {pipeline_mode = #tpu.pipeline_mode<synchronous>, transform_indices = @transform_10, window_bounds = array<i64: 10, 1>}, {pipeline_mode = #tpu.pipeline_mode<synchronous>, transform_indices = @transform_11, window_bounds = array<i64: 10, 256, 15>}, {pipeline_mode = #tpu.pipeline_mode<synchronous>, transform_indices = @transform_12, window_bounds = array<i64: 1, 15>}, {pipeline_mode = #tpu.pipeline_mode<synchronous>, transform_indices = @transform_13, window_bounds = array<i64: 15, 1>}, {pipeline_mode = #tpu.pipeline_mode<synchronous>, transform_indices = @transform_14, window_bounds = array<i64: 1, 1>}, {transform_indices = @transform_15, window_bounds = array<i64: 1, 1, 1>}]} {
    %0 = tpu.iota {dimensions = array<i32: 1>} : vector<1x256xi32>
    %c4_i32 = arith.constant 4 : i32
    %1 = vector.broadcast %c4_i32 : i32 to vector<1x256xi32>
    %2 = arith.shrsi %0, %1 : vector<1x256xi32>
    %c15_i32 = arith.constant 15 : i32
    %3 = vector.broadcast %c15_i32 : i32 to vector<1x256xi32>
    %4 = arith.andi %0, %3 : vector<1x256xi32>
    %c0 = arith.constant 0 : index
    %c0_0 = arith.constant 0 : index
    %c0_1 = arith.constant 0 : index
    %5 = vector.load %arg1[%c0, %c0_0, %c0_1] : memref<1x1x256xf32, #tpu.memory_space<vmem>>, vector<1x1x256xf32>
    %6 = vector.shape_cast %5 : vector<1x1x256xf32> to vector<1x256xf32>
    %c17_i32 = arith.constant 17 : i32
    %7 = tpu.dynamic_rotate %6 by %c17_i32 dim 1 : vector<1x256xf32>, i32 -> vector<1x256xf32>
    %c1_i32 = arith.constant 1 : i32
    %8 = vector.broadcast %c1_i32 : i32 to vector<1x256xi32>
    %9 = arith.cmpi sge, %2, %8 : vector<1x256xi32>
    %c1_i32_2 = arith.constant 1 : i32
    %10 = vector.broadcast %c1_i32_2 : i32 to vector<1x256xi32>
    %11 = arith.cmpi sge, %4, %10 : vector<1x256xi32>
    %12 = arith.andi %9, %11 : vector<1x256xi1>
    %13 = arith.extui %12 : vector<1x256xi1> to vector<1x256xi32>
    %14 = arith.sitofp %13 : vector<1x256xi32> to vector<1x256xf32>
    %15 = arith.mulf %7, %14 : vector<1x256xf32>
    %c0_3 = arith.constant 0 : index
    %c0_4 = arith.constant 0 : index
    %c0_5 = arith.constant 0 : index
    %16 = vector.load %arg2[%c0_3, %c0_4, %c0_5] : memref<9x6x1xf32, #tpu.memory_space<vmem>>, vector<1x6x1xf32>
    %17 = vector.shape_cast %16 : vector<1x6x1xf32> to vector<6x1xf32>
    %18 = vector.broadcast %17 : vector<6x1xf32> to vector<6x256xf32>
    %19 = vector.broadcast %15 : vector<1x256xf32> to vector<6x256xf32>
    %20 = arith.mulf %18, %19 : vector<6x256xf32>
    %c16_i32 = arith.constant 16 : i32
    %21 = tpu.dynamic_rotate %6 by %c16_i32 dim 1 : vector<1x256xf32>, i32 -> vector<1x256xf32>
    %c1_i32_6 = arith.constant 1 : i32
    %22 = vector.broadcast %c1_i32_6 : i32 to vector<1x256xi32>
    %23 = arith.cmpi sge, %2, %22 : vector<1x256xi32>
    %24 = arith.extui %23 : vector<1x256xi1> to vector<1x256xi32>
    %25 = arith.sitofp %24 : vector<1x256xi32> to vector<1x256xf32>
    %26 = arith.mulf %21, %25 : vector<1x256xf32>
    %c1 = arith.constant 1 : index
    %c0_7 = arith.constant 0 : index
    %c0_8 = arith.constant 0 : index
    %27 = vector.load %arg2[%c1, %c0_7, %c0_8] : memref<9x6x1xf32, #tpu.memory_space<vmem>>, vector<1x6x1xf32>
    %28 = vector.shape_cast %27 : vector<1x6x1xf32> to vector<6x1xf32>
    %29 = vector.broadcast %28 : vector<6x1xf32> to vector<6x256xf32>
    %30 = vector.broadcast %26 : vector<1x256xf32> to vector<6x256xf32>
    %31 = arith.mulf %29, %30 : vector<6x256xf32>
    %32 = arith.addf %20, %31 : vector<6x256xf32>
    %c15_i32_9 = arith.constant 15 : i32
    %33 = tpu.dynamic_rotate %6 by %c15_i32_9 dim 1 : vector<1x256xf32>, i32 -> vector<1x256xf32>
    %c1_i32_10 = arith.constant 1 : i32
    %34 = vector.broadcast %c1_i32_10 : i32 to vector<1x256xi32>
    %35 = arith.cmpi sge, %2, %34 : vector<1x256xi32>
    %c14_i32 = arith.constant 14 : i32
    %36 = vector.broadcast %c14_i32 : i32 to vector<1x256xi32>
    %37 = arith.cmpi sle, %4, %36 : vector<1x256xi32>
    %38 = arith.andi %35, %37 : vector<1x256xi1>
    %39 = arith.extui %38 : vector<1x256xi1> to vector<1x256xi32>
    %40 = arith.sitofp %39 : vector<1x256xi32> to vector<1x256xf32>
    %41 = arith.mulf %33, %40 : vector<1x256xf32>
    %c2 = arith.constant 2 : index
    %c0_11 = arith.constant 0 : index
    %c0_12 = arith.constant 0 : index
    %42 = vector.load %arg2[%c2, %c0_11, %c0_12] : memref<9x6x1xf32, #tpu.memory_space<vmem>>, vector<1x6x1xf32>
    %43 = vector.shape_cast %42 : vector<1x6x1xf32> to vector<6x1xf32>
    %44 = vector.broadcast %43 : vector<6x1xf32> to vector<6x256xf32>
    %45 = vector.broadcast %41 : vector<1x256xf32> to vector<6x256xf32>
    %46 = arith.mulf %44, %45 : vector<6x256xf32>
    %47 = arith.addf %32, %46 : vector<6x256xf32>
    %c1_i32_13 = arith.constant 1 : i32
    %48 = tpu.dynamic_rotate %6 by %c1_i32_13 dim 1 : vector<1x256xf32>, i32 -> vector<1x256xf32>
    %c1_i32_14 = arith.constant 1 : i32
    %49 = vector.broadcast %c1_i32_14 : i32 to vector<1x256xi32>
    %50 = arith.cmpi sge, %4, %49 : vector<1x256xi32>
    %51 = arith.extui %50 : vector<1x256xi1> to vector<1x256xi32>
    %52 = arith.sitofp %51 : vector<1x256xi32> to vector<1x256xf32>
    %53 = arith.mulf %48, %52 : vector<1x256xf32>
    %c3 = arith.constant 3 : index
    %c0_15 = arith.constant 0 : index
    %c0_16 = arith.constant 0 : index
    %54 = vector.load %arg2[%c3, %c0_15, %c0_16] : memref<9x6x1xf32, #tpu.memory_space<vmem>>, vector<1x6x1xf32>
    %55 = vector.shape_cast %54 : vector<1x6x1xf32> to vector<6x1xf32>
    %56 = vector.broadcast %55 : vector<6x1xf32> to vector<6x256xf32>
    %57 = vector.broadcast %53 : vector<1x256xf32> to vector<6x256xf32>
    %58 = arith.mulf %56, %57 : vector<6x256xf32>
    %59 = arith.addf %47, %58 : vector<6x256xf32>
    %c4 = arith.constant 4 : index
    %c0_17 = arith.constant 0 : index
    %c0_18 = arith.constant 0 : index
    %60 = vector.load %arg2[%c4, %c0_17, %c0_18] : memref<9x6x1xf32, #tpu.memory_space<vmem>>, vector<1x6x1xf32>
    %61 = vector.shape_cast %60 : vector<1x6x1xf32> to vector<6x1xf32>
    %62 = vector.broadcast %61 : vector<6x1xf32> to vector<6x256xf32>
    %63 = vector.broadcast %6 : vector<1x256xf32> to vector<6x256xf32>
    %64 = arith.mulf %62, %63 : vector<6x256xf32>
    %65 = arith.addf %59, %64 : vector<6x256xf32>
    %c255_i32 = arith.constant 255 : i32
    %66 = tpu.dynamic_rotate %6 by %c255_i32 dim 1 : vector<1x256xf32>, i32 -> vector<1x256xf32>
    %c14_i32_19 = arith.constant 14 : i32
    %67 = vector.broadcast %c14_i32_19 : i32 to vector<1x256xi32>
    %68 = arith.cmpi sle, %4, %67 : vector<1x256xi32>
    %69 = arith.extui %68 : vector<1x256xi1> to vector<1x256xi32>
    %70 = arith.sitofp %69 : vector<1x256xi32> to vector<1x256xf32>
    %71 = arith.mulf %66, %70 : vector<1x256xf32>
    %c5 = arith.constant 5 : index
    %c0_20 = arith.constant 0 : index
    %c0_21 = arith.constant 0 : index
    %72 = vector.load %arg2[%c5, %c0_20, %c0_21] : memref<9x6x1xf32, #tpu.memory_space<vmem>>, vector<1x6x1xf32>
    %73 = vector.shape_cast %72 : vector<1x6x1xf32> to vector<6x1xf32>
    %74 = vector.broadcast %73 : vector<6x1xf32> to vector<6x256xf32>
    %75 = vector.broadcast %71 : vector<1x256xf32> to vector<6x256xf32>
    %76 = arith.mulf %74, %75 : vector<6x256xf32>
    %77 = arith.addf %65, %76 : vector<6x256xf32>
    %c241_i32 = arith.constant 241 : i32
    %78 = tpu.dynamic_rotate %6 by %c241_i32 dim 1 : vector<1x256xf32>, i32 -> vector<1x256xf32>
    %c14_i32_22 = arith.constant 14 : i32
    %79 = vector.broadcast %c14_i32_22 : i32 to vector<1x256xi32>
    %80 = arith.cmpi sle, %2, %79 : vector<1x256xi32>
    %c1_i32_23 = arith.constant 1 : i32
    %81 = vector.broadcast %c1_i32_23 : i32 to vector<1x256xi32>
    %82 = arith.cmpi sge, %4, %81 : vector<1x256xi32>
    %83 = arith.andi %80, %82 : vector<1x256xi1>
    %84 = arith.extui %83 : vector<1x256xi1> to vector<1x256xi32>
    %85 = arith.sitofp %84 : vector<1x256xi32> to vector<1x256xf32>
    %86 = arith.mulf %78, %85 : vector<1x256xf32>
    %c6 = arith.constant 6 : index
    %c0_24 = arith.constant 0 : index
    %c0_25 = arith.constant 0 : index
    %87 = vector.load %arg2[%c6, %c0_24, %c0_25] : memref<9x6x1xf32, #tpu.memory_space<vmem>>, vector<1x6x1xf32>
    %88 = vector.shape_cast %87 : vector<1x6x1xf32> to vector<6x1xf32>
    %89 = vector.broadcast %88 : vector<6x1xf32> to vector<6x256xf32>
    %90 = vector.broadcast %86 : vector<1x256xf32> to vector<6x256xf32>
    %91 = arith.mulf %89, %90 : vector<6x256xf32>
    %92 = arith.addf %77, %91 : vector<6x256xf32>
    %c240_i32 = arith.constant 240 : i32
    %93 = tpu.dynamic_rotate %6 by %c240_i32 dim 1 : vector<1x256xf32>, i32 -> vector<1x256xf32>
    %c14_i32_26 = arith.constant 14 : i32
    %94 = vector.broadcast %c14_i32_26 : i32 to vector<1x256xi32>
    %95 = arith.cmpi sle, %2, %94 : vector<1x256xi32>
    %96 = arith.extui %95 : vector<1x256xi1> to vector<1x256xi32>
    %97 = arith.sitofp %96 : vector<1x256xi32> to vector<1x256xf32>
    %98 = arith.mulf %93, %97 : vector<1x256xf32>
    %c7 = arith.constant 7 : index
    %c0_27 = arith.constant 0 : index
    %c0_28 = arith.constant 0 : index
    %99 = vector.load %arg2[%c7, %c0_27, %c0_28] : memref<9x6x1xf32, #tpu.memory_space<vmem>>, vector<1x6x1xf32>
    %100 = vector.shape_cast %99 : vector<1x6x1xf32> to vector<6x1xf32>
    %101 = vector.broadcast %100 : vector<6x1xf32> to vector<6x256xf32>
    %102 = vector.broadcast %98 : vector<1x256xf32> to vector<6x256xf32>
    %103 = arith.mulf %101, %102 : vector<6x256xf32>
    %104 = arith.addf %92, %103 : vector<6x256xf32>
    %c239_i32 = arith.constant 239 : i32
    %105 = tpu.dynamic_rotate %6 by %c239_i32 dim 1 : vector<1x256xf32>, i32 -> vector<1x256xf32>
    %c14_i32_29 = arith.constant 14 : i32
    %106 = vector.broadcast %c14_i32_29 : i32 to vector<1x256xi32>
    %107 = arith.cmpi sle, %2, %106 : vector<1x256xi32>
    %c14_i32_30 = arith.constant 14 : i32
    %108 = vector.broadcast %c14_i32_30 : i32 to vector<1x256xi32>
    %109 = arith.cmpi sle, %4, %108 : vector<1x256xi32>
    %110 = arith.andi %107, %109 : vector<1x256xi1>
    %111 = arith.extui %110 : vector<1x256xi1> to vector<1x256xi32>
    %112 = arith.sitofp %111 : vector<1x256xi32> to vector<1x256xf32>
    %113 = arith.mulf %105, %112 : vector<1x256xf32>
    %c8 = arith.constant 8 : index
    %c0_31 = arith.constant 0 : index
    %c0_32 = arith.constant 0 : index
    %114 = vector.load %arg2[%c8, %c0_31, %c0_32] : memref<9x6x1xf32, #tpu.memory_space<vmem>>, vector<1x6x1xf32>
    %115 = vector.shape_cast %114 : vector<1x6x1xf32> to vector<6x1xf32>
    %116 = vector.broadcast %115 : vector<6x1xf32> to vector<6x256xf32>
    %117 = vector.broadcast %113 : vector<1x256xf32> to vector<6x256xf32>
    %118 = arith.mulf %116, %117 : vector<6x256xf32>
    %119 = arith.addf %104, %118 : vector<6x256xf32>
    %c0_33 = arith.constant 0 : index
    %c0_34 = arith.constant 0 : index
    %120 = vector.load %arg3[%c0_33, %c0_34] : memref<6x1xf32, #tpu.memory_space<vmem>>, vector<6x1xf32>
    %121 = vector.broadcast %120 : vector<6x1xf32> to vector<6x256xf32>
    %122 = arith.addf %119, %121 : vector<6x256xf32>
    %cst = arith.constant 0.000000e+00 : f32
    %123 = vector.broadcast %cst : f32 to vector<6x256xf32>
    %124 = arith.maximumf %122, %123 : vector<6x256xf32>
    %c255_i32_35 = arith.constant 255 : i32
    %125 = tpu.dynamic_rotate %124 by %c255_i32_35 dim 1 : vector<6x256xf32>, i32 -> vector<6x256xf32>
    %126 = arith.maximumf %124, %125 : vector<6x256xf32>
    %c240_i32_36 = arith.constant 240 : i32
    %127 = tpu.dynamic_rotate %124 by %c240_i32_36 dim 1 : vector<6x256xf32>, i32 -> vector<6x256xf32>
    %c239_i32_37 = arith.constant 239 : i32
    %128 = tpu.dynamic_rotate %124 by %c239_i32_37 dim 1 : vector<6x256xf32>, i32 -> vector<6x256xf32>
    %129 = arith.maximumf %127, %128 : vector<6x256xf32>
    %130 = arith.maximumf %126, %129 : vector<6x256xf32>
    %c0_38 = arith.constant 0 : index
    %c0_39 = arith.constant 0 : index
    %131 = vector.load %arg4[%c0_38, %c0_39] : memref<6x1xf32, #tpu.memory_space<vmem>>, vector<6x1xf32>
    %132 = vector.broadcast %131 : vector<6x1xf32> to vector<6x256xf32>
    %133 = arith.mulf %130, %132 : vector<6x256xf32>
    %c0_40 = arith.constant 0 : index
    %c0_41 = arith.constant 0 : index
    %134 = vector.load %arg5[%c0_40, %c0_41] : memref<6x1xf32, #tpu.memory_space<vmem>>, vector<6x1xf32>
    %135 = vector.broadcast %134 : vector<6x1xf32> to vector<6x256xf32>
    %136 = arith.addf %133, %135 : vector<6x256xf32>
    %c15_i32_42 = arith.constant 15 : i32
    %137 = vector.broadcast %c15_i32_42 : i32 to vector<1x256xi32>
    %138 = arith.cmpi slt, %2, %137 : vector<1x256xi32>
    %c15_i32_43 = arith.constant 15 : i32
    %139 = vector.broadcast %c15_i32_43 : i32 to vector<1x256xi32>
    %140 = arith.cmpi slt, %4, %139 : vector<1x256xi32>
    %141 = arith.andi %138, %140 : vector<1x256xi1>
    %142 = arith.extui %141 : vector<1x256xi1> to vector<1x256xi32>
    %143 = arith.sitofp %142 : vector<1x256xi32> to vector<1x256xf32>
    %144 = vector.broadcast %143 : vector<1x256xf32> to vector<6x256xf32>
    %145 = arith.mulf %136, %144 : vector<6x256xf32>
    %c17_i32_44 = arith.constant 17 : i32
    %146 = tpu.dynamic_rotate %145 by %c17_i32_44 dim 1 : vector<6x256xf32>, i32 -> vector<6x256xf32>
    %c0_45 = arith.constant 0 : index
    %c0_46 = arith.constant 0 : index
    %c0_47 = arith.constant 0 : index
    %147 = vector.load %arg6[%c0_45, %c0_46, %c0_47] : memref<9x8x6xf32, #tpu.memory_space<vmem>>, vector<1x8x6xf32>
    %148 = vector.shape_cast %147 : vector<1x8x6xf32> to vector<8x6xf32>
    %cst_48 = arith.constant dense<0.000000e+00> : vector<8x256xf32>
    %149 = tpu.matmul %148, %146, %cst_48 {dimension_numbers = #tpu.dot_dimension_numbers<[1], [0], [0], [1], [0, 0, 1, 1], [], []>} : vector<8x6xf32>, vector<6x256xf32>, vector<8x256xf32> -> vector<8x256xf32>
    %c16_i32_49 = arith.constant 16 : i32
    %150 = tpu.dynamic_rotate %145 by %c16_i32_49 dim 1 : vector<6x256xf32>, i32 -> vector<6x256xf32>
    %c1_50 = arith.constant 1 : index
    %c0_51 = arith.constant 0 : index
    %c0_52 = arith.constant 0 : index
    %151 = vector.load %arg6[%c1_50, %c0_51, %c0_52] : memref<9x8x6xf32, #tpu.memory_space<vmem>>, vector<1x8x6xf32>
    %152 = vector.shape_cast %151 : vector<1x8x6xf32> to vector<8x6xf32>
    %cst_53 = arith.constant dense<0.000000e+00> : vector<8x256xf32>
    %153 = tpu.matmul %152, %150, %cst_53 {dimension_numbers = #tpu.dot_dimension_numbers<[1], [0], [0], [1], [0, 0, 1, 1], [], []>} : vector<8x6xf32>, vector<6x256xf32>, vector<8x256xf32> -> vector<8x256xf32>
    %154 = arith.addf %149, %153 : vector<8x256xf32>
    %c15_i32_54 = arith.constant 15 : i32
    %155 = tpu.dynamic_rotate %145 by %c15_i32_54 dim 1 : vector<6x256xf32>, i32 -> vector<6x256xf32>
    %c2_55 = arith.constant 2 : index
    %c0_56 = arith.constant 0 : index
    %c0_57 = arith.constant 0 : index
    %156 = vector.load %arg6[%c2_55, %c0_56, %c0_57] : memref<9x8x6xf32, #tpu.memory_space<vmem>>, vector<1x8x6xf32>
    %157 = vector.shape_cast %156 : vector<1x8x6xf32> to vector<8x6xf32>
    %cst_58 = arith.constant dense<0.000000e+00> : vector<8x256xf32>
    %158 = tpu.matmul %157, %155, %cst_58 {dimension_numbers = #tpu.dot_dimension_numbers<[1], [0], [0], [1], [0, 0, 1, 1], [], []>} : vector<8x6xf32>, vector<6x256xf32>, vector<8x256xf32> -> vector<8x256xf32>
    %159 = arith.addf %154, %158 : vector<8x256xf32>
    %c1_i32_59 = arith.constant 1 : i32
    %160 = tpu.dynamic_rotate %145 by %c1_i32_59 dim 1 : vector<6x256xf32>, i32 -> vector<6x256xf32>
    %c3_60 = arith.constant 3 : index
    %c0_61 = arith.constant 0 : index
    %c0_62 = arith.constant 0 : index
    %161 = vector.load %arg6[%c3_60, %c0_61, %c0_62] : memref<9x8x6xf32, #tpu.memory_space<vmem>>, vector<1x8x6xf32>
    %162 = vector.shape_cast %161 : vector<1x8x6xf32> to vector<8x6xf32>
    %cst_63 = arith.constant dense<0.000000e+00> : vector<8x256xf32>
    %163 = tpu.matmul %162, %160, %cst_63 {dimension_numbers = #tpu.dot_dimension_numbers<[1], [0], [0], [1], [0, 0, 1, 1], [], []>} : vector<8x6xf32>, vector<6x256xf32>, vector<8x256xf32> -> vector<8x256xf32>
    %164 = arith.addf %159, %163 : vector<8x256xf32>
    %c4_64 = arith.constant 4 : index
    %c0_65 = arith.constant 0 : index
    %c0_66 = arith.constant 0 : index
    %165 = vector.load %arg6[%c4_64, %c0_65, %c0_66] : memref<9x8x6xf32, #tpu.memory_space<vmem>>, vector<1x8x6xf32>
    %166 = vector.shape_cast %165 : vector<1x8x6xf32> to vector<8x6xf32>
    %cst_67 = arith.constant dense<0.000000e+00> : vector<8x256xf32>
    %167 = tpu.matmul %166, %145, %cst_67 {dimension_numbers = #tpu.dot_dimension_numbers<[1], [0], [0], [1], [0, 0, 1, 1], [], []>} : vector<8x6xf32>, vector<6x256xf32>, vector<8x256xf32> -> vector<8x256xf32>
    %168 = arith.addf %164, %167 : vector<8x256xf32>
    %c255_i32_68 = arith.constant 255 : i32
    %169 = tpu.dynamic_rotate %145 by %c255_i32_68 dim 1 : vector<6x256xf32>, i32 -> vector<6x256xf32>
    %c5_69 = arith.constant 5 : index
    %c0_70 = arith.constant 0 : index
    %c0_71 = arith.constant 0 : index
    %170 = vector.load %arg6[%c5_69, %c0_70, %c0_71] : memref<9x8x6xf32, #tpu.memory_space<vmem>>, vector<1x8x6xf32>
    %171 = vector.shape_cast %170 : vector<1x8x6xf32> to vector<8x6xf32>
    %cst_72 = arith.constant dense<0.000000e+00> : vector<8x256xf32>
    %172 = tpu.matmul %171, %169, %cst_72 {dimension_numbers = #tpu.dot_dimension_numbers<[1], [0], [0], [1], [0, 0, 1, 1], [], []>} : vector<8x6xf32>, vector<6x256xf32>, vector<8x256xf32> -> vector<8x256xf32>
    %173 = arith.addf %168, %172 : vector<8x256xf32>
    %c241_i32_73 = arith.constant 241 : i32
    %174 = tpu.dynamic_rotate %145 by %c241_i32_73 dim 1 : vector<6x256xf32>, i32 -> vector<6x256xf32>
    %c6_74 = arith.constant 6 : index
    %c0_75 = arith.constant 0 : index
    %c0_76 = arith.constant 0 : index
    %175 = vector.load %arg6[%c6_74, %c0_75, %c0_76] : memref<9x8x6xf32, #tpu.memory_space<vmem>>, vector<1x8x6xf32>
    %176 = vector.shape_cast %175 : vector<1x8x6xf32> to vector<8x6xf32>
    %cst_77 = arith.constant dense<0.000000e+00> : vector<8x256xf32>
    %177 = tpu.matmul %176, %174, %cst_77 {dimension_numbers = #tpu.dot_dimension_numbers<[1], [0], [0], [1], [0, 0, 1, 1], [], []>} : vector<8x6xf32>, vector<6x256xf32>, vector<8x256xf32> -> vector<8x256xf32>
    %178 = arith.addf %173, %177 : vector<8x256xf32>
    %c240_i32_78 = arith.constant 240 : i32
    %179 = tpu.dynamic_rotate %145 by %c240_i32_78 dim 1 : vector<6x256xf32>, i32 -> vector<6x256xf32>
    %c7_79 = arith.constant 7 : index
    %c0_80 = arith.constant 0 : index
    %c0_81 = arith.constant 0 : index
    %180 = vector.load %arg6[%c7_79, %c0_80, %c0_81] : memref<9x8x6xf32, #tpu.memory_space<vmem>>, vector<1x8x6xf32>
    %181 = vector.shape_cast %180 : vector<1x8x6xf32> to vector<8x6xf32>
    %cst_82 = arith.constant dense<0.000000e+00> : vector<8x256xf32>
    %182 = tpu.matmul %181, %179, %cst_82 {dimension_numbers = #tpu.dot_dimension_numbers<[1], [0], [0], [1], [0, 0, 1, 1], [], []>} : vector<8x6xf32>, vector<6x256xf32>, vector<8x256xf32> -> vector<8x256xf32>
    %183 = arith.addf %178, %182 : vector<8x256xf32>
    %c239_i32_83 = arith.constant 239 : i32
    %184 = tpu.dynamic_rotate %145 by %c239_i32_83 dim 1 : vector<6x256xf32>, i32 -> vector<6x256xf32>
    %c8_84 = arith.constant 8 : index
    %c0_85 = arith.constant 0 : index
    %c0_86 = arith.constant 0 : index
    %185 = vector.load %arg6[%c8_84, %c0_85, %c0_86] : memref<9x8x6xf32, #tpu.memory_space<vmem>>, vector<1x8x6xf32>
    %186 = vector.shape_cast %185 : vector<1x8x6xf32> to vector<8x6xf32>
    %cst_87 = arith.constant dense<0.000000e+00> : vector<8x256xf32>
    %187 = tpu.matmul %186, %184, %cst_87 {dimension_numbers = #tpu.dot_dimension_numbers<[1], [0], [0], [1], [0, 0, 1, 1], [], []>} : vector<8x6xf32>, vector<6x256xf32>, vector<8x256xf32> -> vector<8x256xf32>
    %188 = arith.addf %183, %187 : vector<8x256xf32>
    %c0_88 = arith.constant 0 : index
    %c0_89 = arith.constant 0 : index
    %189 = vector.load %arg7[%c0_88, %c0_89] : memref<8x1xf32, #tpu.memory_space<vmem>>, vector<8x1xf32>
    %190 = vector.broadcast %189 : vector<8x1xf32> to vector<8x256xf32>
    %191 = arith.addf %188, %190 : vector<8x256xf32>
    %cst_90 = arith.constant 0.000000e+00 : f32
    %192 = vector.broadcast %cst_90 : f32 to vector<8x256xf32>
    %193 = arith.maximumf %191, %192 : vector<8x256xf32>
    %c255_i32_91 = arith.constant 255 : i32
    %194 = tpu.dynamic_rotate %193 by %c255_i32_91 dim 1 : vector<8x256xf32>, i32 -> vector<8x256xf32>
    %195 = arith.maximumf %193, %194 : vector<8x256xf32>
    %c240_i32_92 = arith.constant 240 : i32
    %196 = tpu.dynamic_rotate %193 by %c240_i32_92 dim 1 : vector<8x256xf32>, i32 -> vector<8x256xf32>
    %c239_i32_93 = arith.constant 239 : i32
    %197 = tpu.dynamic_rotate %193 by %c239_i32_93 dim 1 : vector<8x256xf32>, i32 -> vector<8x256xf32>
    %198 = arith.maximumf %196, %197 : vector<8x256xf32>
    %199 = arith.maximumf %195, %198 : vector<8x256xf32>
    %c14_i32_94 = arith.constant 14 : i32
    %200 = vector.broadcast %c14_i32_94 : i32 to vector<1x256xi32>
    %201 = arith.cmpi slt, %2, %200 : vector<1x256xi32>
    %c14_i32_95 = arith.constant 14 : i32
    %202 = vector.broadcast %c14_i32_95 : i32 to vector<1x256xi32>
    %203 = arith.cmpi slt, %4, %202 : vector<1x256xi32>
    %204 = arith.andi %201, %203 : vector<1x256xi1>
    %205 = arith.extui %204 : vector<1x256xi1> to vector<1x256xi32>
    %206 = arith.sitofp %205 : vector<1x256xi32> to vector<1x256xf32>
    %207 = vector.broadcast %206 : vector<1x256xf32> to vector<8x256xf32>
    %208 = arith.mulf %199, %207 : vector<8x256xf32>
    %c17_i32_96 = arith.constant 17 : i32
    %209 = tpu.dynamic_rotate %208 by %c17_i32_96 dim 1 : vector<8x256xf32>, i32 -> vector<8x256xf32>
    %c0_97 = arith.constant 0 : index
    %c0_98 = arith.constant 0 : index
    %c0_99 = arith.constant 0 : index
    %210 = vector.load %arg8[%c0_97, %c0_98, %c0_99] : memref<9x10x8xf32, #tpu.memory_space<vmem>>, vector<1x10x8xf32>
    %211 = vector.shape_cast %210 : vector<1x10x8xf32> to vector<10x8xf32>
    %cst_100 = arith.constant dense<0.000000e+00> : vector<10x256xf32>
    %212 = tpu.matmul %211, %209, %cst_100 {dimension_numbers = #tpu.dot_dimension_numbers<[1], [0], [0], [1], [0, 0, 1, 1], [], []>} : vector<10x8xf32>, vector<8x256xf32>, vector<10x256xf32> -> vector<10x256xf32>
    %c16_i32_101 = arith.constant 16 : i32
    %213 = tpu.dynamic_rotate %208 by %c16_i32_101 dim 1 : vector<8x256xf32>, i32 -> vector<8x256xf32>
    %c1_102 = arith.constant 1 : index
    %c0_103 = arith.constant 0 : index
    %c0_104 = arith.constant 0 : index
    %214 = vector.load %arg8[%c1_102, %c0_103, %c0_104] : memref<9x10x8xf32, #tpu.memory_space<vmem>>, vector<1x10x8xf32>
    %215 = vector.shape_cast %214 : vector<1x10x8xf32> to vector<10x8xf32>
    %cst_105 = arith.constant dense<0.000000e+00> : vector<10x256xf32>
    %216 = tpu.matmul %215, %213, %cst_105 {dimension_numbers = #tpu.dot_dimension_numbers<[1], [0], [0], [1], [0, 0, 1, 1], [], []>} : vector<10x8xf32>, vector<8x256xf32>, vector<10x256xf32> -> vector<10x256xf32>
    %217 = arith.addf %212, %216 : vector<10x256xf32>
    %c15_i32_106 = arith.constant 15 : i32
    %218 = tpu.dynamic_rotate %208 by %c15_i32_106 dim 1 : vector<8x256xf32>, i32 -> vector<8x256xf32>
    %c2_107 = arith.constant 2 : index
    %c0_108 = arith.constant 0 : index
    %c0_109 = arith.constant 0 : index
    %219 = vector.load %arg8[%c2_107, %c0_108, %c0_109] : memref<9x10x8xf32, #tpu.memory_space<vmem>>, vector<1x10x8xf32>
    %220 = vector.shape_cast %219 : vector<1x10x8xf32> to vector<10x8xf32>
    %cst_110 = arith.constant dense<0.000000e+00> : vector<10x256xf32>
    %221 = tpu.matmul %220, %218, %cst_110 {dimension_numbers = #tpu.dot_dimension_numbers<[1], [0], [0], [1], [0, 0, 1, 1], [], []>} : vector<10x8xf32>, vector<8x256xf32>, vector<10x256xf32> -> vector<10x256xf32>
    %222 = arith.addf %217, %221 : vector<10x256xf32>
    %c1_i32_111 = arith.constant 1 : i32
    %223 = tpu.dynamic_rotate %208 by %c1_i32_111 dim 1 : vector<8x256xf32>, i32 -> vector<8x256xf32>
    %c3_112 = arith.constant 3 : index
    %c0_113 = arith.constant 0 : index
    %c0_114 = arith.constant 0 : index
    %224 = vector.load %arg8[%c3_112, %c0_113, %c0_114] : memref<9x10x8xf32, #tpu.memory_space<vmem>>, vector<1x10x8xf32>
    %225 = vector.shape_cast %224 : vector<1x10x8xf32> to vector<10x8xf32>
    %cst_115 = arith.constant dense<0.000000e+00> : vector<10x256xf32>
    %226 = tpu.matmul %225, %223, %cst_115 {dimension_numbers = #tpu.dot_dimension_numbers<[1], [0], [0], [1], [0, 0, 1, 1], [], []>} : vector<10x8xf32>, vector<8x256xf32>, vector<10x256xf32> -> vector<10x256xf32>
    %227 = arith.addf %222, %226 : vector<10x256xf32>
    %c4_116 = arith.constant 4 : index
    %c0_117 = arith.constant 0 : index
    %c0_118 = arith.constant 0 : index
    %228 = vector.load %arg8[%c4_116, %c0_117, %c0_118] : memref<9x10x8xf32, #tpu.memory_space<vmem>>, vector<1x10x8xf32>
    %229 = vector.shape_cast %228 : vector<1x10x8xf32> to vector<10x8xf32>
    %cst_119 = arith.constant dense<0.000000e+00> : vector<10x256xf32>
    %230 = tpu.matmul %229, %208, %cst_119 {dimension_numbers = #tpu.dot_dimension_numbers<[1], [0], [0], [1], [0, 0, 1, 1], [], []>} : vector<10x8xf32>, vector<8x256xf32>, vector<10x256xf32> -> vector<10x256xf32>
    %231 = arith.addf %227, %230 : vector<10x256xf32>
    %c255_i32_120 = arith.constant 255 : i32
    %232 = tpu.dynamic_rotate %208 by %c255_i32_120 dim 1 : vector<8x256xf32>, i32 -> vector<8x256xf32>
    %c5_121 = arith.constant 5 : index
    %c0_122 = arith.constant 0 : index
    %c0_123 = arith.constant 0 : index
    %233 = vector.load %arg8[%c5_121, %c0_122, %c0_123] : memref<9x10x8xf32, #tpu.memory_space<vmem>>, vector<1x10x8xf32>
    %234 = vector.shape_cast %233 : vector<1x10x8xf32> to vector<10x8xf32>
    %cst_124 = arith.constant dense<0.000000e+00> : vector<10x256xf32>
    %235 = tpu.matmul %234, %232, %cst_124 {dimension_numbers = #tpu.dot_dimension_numbers<[1], [0], [0], [1], [0, 0, 1, 1], [], []>} : vector<10x8xf32>, vector<8x256xf32>, vector<10x256xf32> -> vector<10x256xf32>
    %236 = arith.addf %231, %235 : vector<10x256xf32>
    %c241_i32_125 = arith.constant 241 : i32
    %237 = tpu.dynamic_rotate %208 by %c241_i32_125 dim 1 : vector<8x256xf32>, i32 -> vector<8x256xf32>
    %c6_126 = arith.constant 6 : index
    %c0_127 = arith.constant 0 : index
    %c0_128 = arith.constant 0 : index
    %238 = vector.load %arg8[%c6_126, %c0_127, %c0_128] : memref<9x10x8xf32, #tpu.memory_space<vmem>>, vector<1x10x8xf32>
    %239 = vector.shape_cast %238 : vector<1x10x8xf32> to vector<10x8xf32>
    %cst_129 = arith.constant dense<0.000000e+00> : vector<10x256xf32>
    %240 = tpu.matmul %239, %237, %cst_129 {dimension_numbers = #tpu.dot_dimension_numbers<[1], [0], [0], [1], [0, 0, 1, 1], [], []>} : vector<10x8xf32>, vector<8x256xf32>, vector<10x256xf32> -> vector<10x256xf32>
    %241 = arith.addf %236, %240 : vector<10x256xf32>
    %c240_i32_130 = arith.constant 240 : i32
    %242 = tpu.dynamic_rotate %208 by %c240_i32_130 dim 1 : vector<8x256xf32>, i32 -> vector<8x256xf32>
    %c7_131 = arith.constant 7 : index
    %c0_132 = arith.constant 0 : index
    %c0_133 = arith.constant 0 : index
    %243 = vector.load %arg8[%c7_131, %c0_132, %c0_133] : memref<9x10x8xf32, #tpu.memory_space<vmem>>, vector<1x10x8xf32>
    %244 = vector.shape_cast %243 : vector<1x10x8xf32> to vector<10x8xf32>
    %cst_134 = arith.constant dense<0.000000e+00> : vector<10x256xf32>
    %245 = tpu.matmul %244, %242, %cst_134 {dimension_numbers = #tpu.dot_dimension_numbers<[1], [0], [0], [1], [0, 0, 1, 1], [], []>} : vector<10x8xf32>, vector<8x256xf32>, vector<10x256xf32> -> vector<10x256xf32>
    %246 = arith.addf %241, %245 : vector<10x256xf32>
    %c239_i32_135 = arith.constant 239 : i32
    %247 = tpu.dynamic_rotate %208 by %c239_i32_135 dim 1 : vector<8x256xf32>, i32 -> vector<8x256xf32>
    %c8_136 = arith.constant 8 : index
    %c0_137 = arith.constant 0 : index
    %c0_138 = arith.constant 0 : index
    %248 = vector.load %arg8[%c8_136, %c0_137, %c0_138] : memref<9x10x8xf32, #tpu.memory_space<vmem>>, vector<1x10x8xf32>
    %249 = vector.shape_cast %248 : vector<1x10x8xf32> to vector<10x8xf32>
    %cst_139 = arith.constant dense<0.000000e+00> : vector<10x256xf32>
    %250 = tpu.matmul %249, %247, %cst_139 {dimension_numbers = #tpu.dot_dimension_numbers<[1], [0], [0], [1], [0, 0, 1, 1], [], []>} : vector<10x8xf32>, vector<8x256xf32>, vector<10x256xf32> -> vector<10x256xf32>
    %251 = arith.addf %246, %250 : vector<10x256xf32>
    %c0_140 = arith.constant 0 : index
    %c0_141 = arith.constant 0 : index
    %252 = vector.load %arg9[%c0_140, %c0_141] : memref<10x1xf32, #tpu.memory_space<vmem>>, vector<10x1xf32>
    %253 = vector.broadcast %252 : vector<10x1xf32> to vector<10x256xf32>
    %254 = arith.addf %251, %253 : vector<10x256xf32>
    %cst_142 = arith.constant 0.000000e+00 : f32
    %255 = vector.broadcast %cst_142 : f32 to vector<10x256xf32>
    %256 = arith.cmpf ogt, %254, %255 : vector<10x256xf32>
    %cst_143 = arith.constant 0.00999999977 : f32
    %257 = vector.broadcast %cst_143 : f32 to vector<10x256xf32>
    %258 = arith.mulf %257, %254 : vector<10x256xf32>
    %259 = arith.select %256, %254, %258 : vector<10x256xi1>, vector<10x256xf32>
    %c255_i32_144 = arith.constant 255 : i32
    %260 = tpu.dynamic_rotate %259 by %c255_i32_144 dim 1 : vector<10x256xf32>, i32 -> vector<10x256xf32>
    %261 = arith.maximumf %259, %260 : vector<10x256xf32>
    %c240_i32_145 = arith.constant 240 : i32
    %262 = tpu.dynamic_rotate %259 by %c240_i32_145 dim 1 : vector<10x256xf32>, i32 -> vector<10x256xf32>
    %c239_i32_146 = arith.constant 239 : i32
    %263 = tpu.dynamic_rotate %259 by %c239_i32_146 dim 1 : vector<10x256xf32>, i32 -> vector<10x256xf32>
    %264 = arith.maximumf %262, %263 : vector<10x256xf32>
    %265 = arith.maximumf %261, %264 : vector<10x256xf32>
    %c0_147 = arith.constant 0 : index
    %c0_148 = arith.constant 0 : index
    %266 = vector.load %arg10[%c0_147, %c0_148] : memref<10x1xf32, #tpu.memory_space<vmem>>, vector<10x1xf32>
    %267 = vector.broadcast %266 : vector<10x1xf32> to vector<10x256xf32>
    %268 = arith.mulf %265, %267 : vector<10x256xf32>
    %c0_149 = arith.constant 0 : index
    %c0_150 = arith.constant 0 : index
    %269 = vector.load %arg11[%c0_149, %c0_150] : memref<10x1xf32, #tpu.memory_space<vmem>>, vector<10x1xf32>
    %270 = vector.broadcast %269 : vector<10x1xf32> to vector<10x256xf32>
    %271 = arith.addf %268, %270 : vector<10x256xf32>
    %c13_i32 = arith.constant 13 : i32
    %272 = vector.broadcast %c13_i32 : i32 to vector<1x256xi32>
    %273 = arith.cmpi slt, %2, %272 : vector<1x256xi32>
    %c13_i32_151 = arith.constant 13 : i32
    %274 = vector.broadcast %c13_i32_151 : i32 to vector<1x256xi32>
    %275 = arith.cmpi slt, %4, %274 : vector<1x256xi32>
    %276 = arith.andi %273, %275 : vector<1x256xi1>
    %277 = arith.extui %276 : vector<1x256xi1> to vector<1x256xi32>
    %278 = arith.sitofp %277 : vector<1x256xi32> to vector<1x256xf32>
    %279 = vector.broadcast %278 : vector<1x256xf32> to vector<10x256xf32>
    %280 = arith.mulf %271, %279 : vector<10x256xf32>
    %c0_152 = arith.constant 0 : index
    %c0_153 = arith.constant 0 : index
    %281 = vector.load %arg13[%c0_152, %c0_153] : memref<1x15xf32, #tpu.memory_space<vmem>>, vector<1x15xf32>
    %282 = vector.extract_strided_slice %280 {offsets = [0, 0], sizes = [1, 256], strides = [1, 1]} : vector<10x256xf32> to vector<1x256xf32>
    %c0_154 = arith.constant 0 : index
    %c0_155 = arith.constant 0 : index
    %c0_156 = arith.constant 0 : index
    %283 = vector.load %arg12[%c0_154, %c0_155, %c0_156] : memref<10x256x15xf32, #tpu.memory_space<vmem>>, vector<1x256x15xf32>
    %284 = vector.shape_cast %283 : vector<1x256x15xf32> to vector<256x15xf32>
    %cst_157 = arith.constant dense<0.000000e+00> : vector<1x15xf32>
    %285 = tpu.matmul %282, %284, %cst_157 {dimension_numbers = #tpu.dot_dimension_numbers<[1], [0], [0], [1], [0, 0, 1, 1], [], []>} : vector<1x256xf32>, vector<256x15xf32>, vector<1x15xf32> -> vector<1x15xf32>
    %286 = arith.addf %281, %285 : vector<1x15xf32>
    %287 = vector.extract_strided_slice %280 {offsets = [1, 0], sizes = [1, 256], strides = [1, 1]} : vector<10x256xf32> to vector<1x256xf32>
    %c1_158 = arith.constant 1 : index
    %c0_159 = arith.constant 0 : index
    %c0_160 = arith.constant 0 : index
    %288 = vector.load %arg12[%c1_158, %c0_159, %c0_160] : memref<10x256x15xf32, #tpu.memory_space<vmem>>, vector<1x256x15xf32>
    %289 = vector.shape_cast %288 : vector<1x256x15xf32> to vector<256x15xf32>
    %cst_161 = arith.constant dense<0.000000e+00> : vector<1x15xf32>
    %290 = tpu.matmul %287, %289, %cst_161 {dimension_numbers = #tpu.dot_dimension_numbers<[1], [0], [0], [1], [0, 0, 1, 1], [], []>} : vector<1x256xf32>, vector<256x15xf32>, vector<1x15xf32> -> vector<1x15xf32>
    %291 = arith.addf %286, %290 : vector<1x15xf32>
    %292 = vector.extract_strided_slice %280 {offsets = [2, 0], sizes = [1, 256], strides = [1, 1]} : vector<10x256xf32> to vector<1x256xf32>
    %c2_162 = arith.constant 2 : index
    %c0_163 = arith.constant 0 : index
    %c0_164 = arith.constant 0 : index
    %293 = vector.load %arg12[%c2_162, %c0_163, %c0_164] : memref<10x256x15xf32, #tpu.memory_space<vmem>>, vector<1x256x15xf32>
    %294 = vector.shape_cast %293 : vector<1x256x15xf32> to vector<256x15xf32>
    %cst_165 = arith.constant dense<0.000000e+00> : vector<1x15xf32>
    %295 = tpu.matmul %292, %294, %cst_165 {dimension_numbers = #tpu.dot_dimension_numbers<[1], [0], [0], [1], [0, 0, 1, 1], [], []>} : vector<1x256xf32>, vector<256x15xf32>, vector<1x15xf32> -> vector<1x15xf32>
    %296 = arith.addf %291, %295 : vector<1x15xf32>
    %297 = vector.extract_strided_slice %280 {offsets = [3, 0], sizes = [1, 256], strides = [1, 1]} : vector<10x256xf32> to vector<1x256xf32>
    %c3_166 = arith.constant 3 : index
    %c0_167 = arith.constant 0 : index
    %c0_168 = arith.constant 0 : index
    %298 = vector.load %arg12[%c3_166, %c0_167, %c0_168] : memref<10x256x15xf32, #tpu.memory_space<vmem>>, vector<1x256x15xf32>
    %299 = vector.shape_cast %298 : vector<1x256x15xf32> to vector<256x15xf32>
    %cst_169 = arith.constant dense<0.000000e+00> : vector<1x15xf32>
    %300 = tpu.matmul %297, %299, %cst_169 {dimension_numbers = #tpu.dot_dimension_numbers<[1], [0], [0], [1], [0, 0, 1, 1], [], []>} : vector<1x256xf32>, vector<256x15xf32>, vector<1x15xf32> -> vector<1x15xf32>
    %301 = arith.addf %296, %300 : vector<1x15xf32>
    %302 = vector.extract_strided_slice %280 {offsets = [4, 0], sizes = [1, 256], strides = [1, 1]} : vector<10x256xf32> to vector<1x256xf32>
    %c4_170 = arith.constant 4 : index
    %c0_171 = arith.constant 0 : index
    %c0_172 = arith.constant 0 : index
    %303 = vector.load %arg12[%c4_170, %c0_171, %c0_172] : memref<10x256x15xf32, #tpu.memory_space<vmem>>, vector<1x256x15xf32>
    %304 = vector.shape_cast %303 : vector<1x256x15xf32> to vector<256x15xf32>
    %cst_173 = arith.constant dense<0.000000e+00> : vector<1x15xf32>
    %305 = tpu.matmul %302, %304, %cst_173 {dimension_numbers = #tpu.dot_dimension_numbers<[1], [0], [0], [1], [0, 0, 1, 1], [], []>} : vector<1x256xf32>, vector<256x15xf32>, vector<1x15xf32> -> vector<1x15xf32>
    %306 = arith.addf %301, %305 : vector<1x15xf32>
    %307 = vector.extract_strided_slice %280 {offsets = [5, 0], sizes = [1, 256], strides = [1, 1]} : vector<10x256xf32> to vector<1x256xf32>
    %c5_174 = arith.constant 5 : index
    %c0_175 = arith.constant 0 : index
    %c0_176 = arith.constant 0 : index
    %308 = vector.load %arg12[%c5_174, %c0_175, %c0_176] : memref<10x256x15xf32, #tpu.memory_space<vmem>>, vector<1x256x15xf32>
    %309 = vector.shape_cast %308 : vector<1x256x15xf32> to vector<256x15xf32>
    %cst_177 = arith.constant dense<0.000000e+00> : vector<1x15xf32>
    %310 = tpu.matmul %307, %309, %cst_177 {dimension_numbers = #tpu.dot_dimension_numbers<[1], [0], [0], [1], [0, 0, 1, 1], [], []>} : vector<1x256xf32>, vector<256x15xf32>, vector<1x15xf32> -> vector<1x15xf32>
    %311 = arith.addf %306, %310 : vector<1x15xf32>
    %312 = vector.extract_strided_slice %280 {offsets = [6, 0], sizes = [1, 256], strides = [1, 1]} : vector<10x256xf32> to vector<1x256xf32>
    %c6_178 = arith.constant 6 : index
    %c0_179 = arith.constant 0 : index
    %c0_180 = arith.constant 0 : index
    %313 = vector.load %arg12[%c6_178, %c0_179, %c0_180] : memref<10x256x15xf32, #tpu.memory_space<vmem>>, vector<1x256x15xf32>
    %314 = vector.shape_cast %313 : vector<1x256x15xf32> to vector<256x15xf32>
    %cst_181 = arith.constant dense<0.000000e+00> : vector<1x15xf32>
    %315 = tpu.matmul %312, %314, %cst_181 {dimension_numbers = #tpu.dot_dimension_numbers<[1], [0], [0], [1], [0, 0, 1, 1], [], []>} : vector<1x256xf32>, vector<256x15xf32>, vector<1x15xf32> -> vector<1x15xf32>
    %316 = arith.addf %311, %315 : vector<1x15xf32>
    %317 = vector.extract_strided_slice %280 {offsets = [7, 0], sizes = [1, 256], strides = [1, 1]} : vector<10x256xf32> to vector<1x256xf32>
    %c7_182 = arith.constant 7 : index
    %c0_183 = arith.constant 0 : index
    %c0_184 = arith.constant 0 : index
    %318 = vector.load %arg12[%c7_182, %c0_183, %c0_184] : memref<10x256x15xf32, #tpu.memory_space<vmem>>, vector<1x256x15xf32>
    %319 = vector.shape_cast %318 : vector<1x256x15xf32> to vector<256x15xf32>
    %cst_185 = arith.constant dense<0.000000e+00> : vector<1x15xf32>
    %320 = tpu.matmul %317, %319, %cst_185 {dimension_numbers = #tpu.dot_dimension_numbers<[1], [0], [0], [1], [0, 0, 1, 1], [], []>} : vector<1x256xf32>, vector<256x15xf32>, vector<1x15xf32> -> vector<1x15xf32>
    %321 = arith.addf %316, %320 : vector<1x15xf32>
    %322 = vector.extract_strided_slice %280 {offsets = [8, 0], sizes = [1, 256], strides = [1, 1]} : vector<10x256xf32> to vector<1x256xf32>
    %c8_186 = arith.constant 8 : index
    %c0_187 = arith.constant 0 : index
    %c0_188 = arith.constant 0 : index
    %323 = vector.load %arg12[%c8_186, %c0_187, %c0_188] : memref<10x256x15xf32, #tpu.memory_space<vmem>>, vector<1x256x15xf32>
    %324 = vector.shape_cast %323 : vector<1x256x15xf32> to vector<256x15xf32>
    %cst_189 = arith.constant dense<0.000000e+00> : vector<1x15xf32>
    %325 = tpu.matmul %322, %324, %cst_189 {dimension_numbers = #tpu.dot_dimension_numbers<[1], [0], [0], [1], [0, 0, 1, 1], [], []>} : vector<1x256xf32>, vector<256x15xf32>, vector<1x15xf32> -> vector<1x15xf32>
    %326 = arith.addf %321, %325 : vector<1x15xf32>
    %327 = vector.extract_strided_slice %280 {offsets = [9, 0], sizes = [1, 256], strides = [1, 1]} : vector<10x256xf32> to vector<1x256xf32>
    %c9 = arith.constant 9 : index
    %c0_190 = arith.constant 0 : index
    %c0_191 = arith.constant 0 : index
    %328 = vector.load %arg12[%c9, %c0_190, %c0_191] : memref<10x256x15xf32, #tpu.memory_space<vmem>>, vector<1x256x15xf32>
    %329 = vector.shape_cast %328 : vector<1x256x15xf32> to vector<256x15xf32>
    %cst_192 = arith.constant dense<0.000000e+00> : vector<1x15xf32>
    %330 = tpu.matmul %327, %329, %cst_192 {dimension_numbers = #tpu.dot_dimension_numbers<[1], [0], [0], [1], [0, 0, 1, 1], [], []>} : vector<1x256xf32>, vector<256x15xf32>, vector<1x15xf32> -> vector<1x15xf32>
    %331 = arith.addf %326, %330 : vector<1x15xf32>
    %c0_193 = arith.constant 0 : index
    %c0_194 = arith.constant 0 : index
    %332 = vector.load %arg14[%c0_193, %c0_194] : memref<15x1xf32, #tpu.memory_space<vmem>>, vector<15x1xf32>
    %cst_195 = arith.constant dense<0.000000e+00> : vector<1x1xf32>
    %333 = tpu.matmul %331, %332, %cst_195 {dimension_numbers = #tpu.dot_dimension_numbers<[1], [0], [0], [1], [0, 0, 1, 1], [], []>} : vector<1x15xf32>, vector<15x1xf32>, vector<1x1xf32> -> vector<1x1xf32>
    %c0_196 = arith.constant 0 : index
    %c0_197 = arith.constant 0 : index
    %334 = vector.load %arg15[%c0_196, %c0_197] : memref<1x1xf32, #tpu.memory_space<vmem>>, vector<1x1xf32>
    %335 = arith.addf %333, %334 : vector<1x1xf32>
    %cst_198 = arith.constant 0.000000e+00 : f32
    %336 = vector.broadcast %cst_198 : f32 to vector<1x1xf32>
    %337 = arith.subf %336, %335 : vector<1x1xf32>
    %338 = math.exp %337 : vector<1x1xf32>
    %cst_199 = arith.constant 1.000000e+00 : f32
    %339 = vector.broadcast %cst_199 : f32 to vector<1x1xf32>
    %340 = arith.addf %339, %338 : vector<1x1xf32>
    %cst_200 = arith.constant 1.000000e+00 : f32
    %341 = vector.broadcast %cst_200 : f32 to vector<1x1xf32>
    %342 = arith.divf %341, %340 : vector<1x1xf32>
    %c0_201 = arith.constant 0 : index
    %c0_202 = arith.constant 0 : index
    %c0_203 = arith.constant 0 : index
    %343 = vector.load %arg16[%c0_201, %c0_202, %c0_203] : memref<1x1x1xf32, #tpu.memory_space<vmem>>, vector<1x1x1xf32>
    %344 = vector.shape_cast %343 : vector<1x1x1xf32> to vector<1x1xf32>
    %345 = vector.shape_cast %342 : vector<1x1xf32> to vector<1x1x1xf32>
    tpu.vector_store %arg16[%c0_201, %c0_202, %c0_203], %345 {strides = array<i32>} : memref<1x1x1xf32, #tpu.memory_space<vmem>>, vector<1x1x1xf32>,
    return
  }
  func.func @transform_0(%arg0: i32) -> (i32, i32, i32) {
    %c0_i32 = arith.constant 0 : i32
    %c0_i32_0 = arith.constant 0 : i32
    %c0_i32_1 = arith.constant 0 : i32
    return %arg0, %c0_i32, %c0_i32_0 : i32, i32, i32
  }
  func.func @transform_1(%arg0: i32) -> (i32, i32, i32) {
    %c0_i32 = arith.constant 0 : i32
    %c0_i32_0 = arith.constant 0 : i32
    %c0_i32_1 = arith.constant 0 : i32
    %c0_i32_2 = arith.constant 0 : i32
    return %c0_i32, %c0_i32_0, %c0_i32_1 : i32, i32, i32
  }
  func.func @transform_2(%arg0: i32) -> (i32, i32) {
    %c0_i32 = arith.constant 0 : i32
    %c0_i32_0 = arith.constant 0 : i32
    %c0_i32_1 = arith.constant 0 : i32
    return %c0_i32, %c0_i32_0 : i32, i32
  }
  func.func @transform_3(%arg0: i32) -> (i32, i32) {
    %c0_i32 = arith.constant 0 : i32
    %c0_i32_0 = arith.constant 0 : i32
    %c0_i32_1 = arith.constant 0 : i32
    return %c0_i32, %c0_i32_0 : i32, i32
  }
  func.func @transform_4(%arg0: i32) -> (i32, i32) {
    %c0_i32 = arith.constant 0 : i32
    %c0_i32_0 = arith.constant 0 : i32
    %c0_i32_1 = arith.constant 0 : i32
    return %c0_i32, %c0_i32_0 : i32, i32
  }
  func.func @transform_5(%arg0: i32) -> (i32, i32, i32) {
    %c0_i32 = arith.constant 0 : i32
    %c0_i32_0 = arith.constant 0 : i32
    %c0_i32_1 = arith.constant 0 : i32
    %c0_i32_2 = arith.constant 0 : i32
    return %c0_i32, %c0_i32_0, %c0_i32_1 : i32, i32, i32
  }
  func.func @transform_6(%arg0: i32) -> (i32, i32) {
    %c0_i32 = arith.constant 0 : i32
    %c0_i32_0 = arith.constant 0 : i32
    %c0_i32_1 = arith.constant 0 : i32
    return %c0_i32, %c0_i32_0 : i32, i32
  }
  func.func @transform_7(%arg0: i32) -> (i32, i32, i32) {
    %c0_i32 = arith.constant 0 : i32
    %c0_i32_0 = arith.constant 0 : i32
    %c0_i32_1 = arith.constant 0 : i32
    %c0_i32_2 = arith.constant 0 : i32
    return %c0_i32, %c0_i32_0, %c0_i32_1 : i32, i32, i32
  }
  func.func @transform_8(%arg0: i32) -> (i32, i32) {
    %c0_i32 = arith.constant 0 : i32
    %c0_i32_0 = arith.constant 0 : i32
    %c0_i32_1 = arith.constant 0 : i32
    return %c0_i32, %c0_i32_0 : i32, i32
  }
  func.func @transform_9(%arg0: i32) -> (i32, i32) {
    %c0_i32 = arith.constant 0 : i32
    %c0_i32_0 = arith.constant 0 : i32
    %c0_i32_1 = arith.constant 0 : i32
    return %c0_i32, %c0_i32_0 : i32, i32
  }
  func.func @transform_10(%arg0: i32) -> (i32, i32) {
    %c0_i32 = arith.constant 0 : i32
    %c0_i32_0 = arith.constant 0 : i32
    %c0_i32_1 = arith.constant 0 : i32
    return %c0_i32, %c0_i32_0 : i32, i32
  }
  func.func @transform_11(%arg0: i32) -> (i32, i32, i32) {
    %c0_i32 = arith.constant 0 : i32
    %c0_i32_0 = arith.constant 0 : i32
    %c0_i32_1 = arith.constant 0 : i32
    %c0_i32_2 = arith.constant 0 : i32
    return %c0_i32, %c0_i32_0, %c0_i32_1 : i32, i32, i32
  }
  func.func @transform_12(%arg0: i32) -> (i32, i32) {
    %c0_i32 = arith.constant 0 : i32
    %c0_i32_0 = arith.constant 0 : i32
    %c0_i32_1 = arith.constant 0 : i32
    return %c0_i32, %c0_i32_0 : i32, i32
  }
  func.func @transform_13(%arg0: i32) -> (i32, i32) {
    %c0_i32 = arith.constant 0 : i32
    %c0_i32_0 = arith.constant 0 : i32
    %c0_i32_1 = arith.constant 0 : i32
    return %c0_i32, %c0_i32_0 : i32, i32
  }
  func.func @transform_14(%arg0: i32) -> (i32, i32) {
    %c0_i32 = arith.constant 0 : i32
    %c0_i32_0 = arith.constant 0 : i32
    %c0_i32_1 = arith.constant 0 : i32
    return %c0_i32, %c0_i32_0 : i32, i32
  }
  func.func @transform_15(%arg0: i32) -> (i32, i32, i32) {
    %c0_i32 = arith.constant 0 : i32
    %c0_i32_0 = arith.constant 0 : i32
    %c0_i32_1 = arith.constant 0 : i32
    return %arg0, %c0_i32, %c0_i32_0 : i32, i32, i32
  }
}

</mosaic_0001>

<bundles_post_ra>
// kernel: tpu_custom_call.1
= control target key start
LH: loop header
LB: loop body
LE: loop exit
PB: predicated region body
PF: predicated region fallthrough
CT: control target
= control target key end

     0   :  { %s4766_s20 = smov 0   ;;  %s6423_s0 = inlined_call_operand.vmem [shape: f32[2,1,256], index: 0, kind: input, shape index: {}]   ;;  %s6424_s1 = inlined_call_operand.vmem [shape: f32[9,6,1], index: 1, kind: input, shape index: {}]   ;;  %s6425_s2 = inlined_call_operand.vmem [shape: f32[6,1], index: 2, kind: input, shape index: {}]   ;;  %s6426_s3 = inlined_call_operand.vmem [shape: f32[6,1], index: 3, kind: input, shape index: {}]   ;;  %s6427_s4 = inlined_call_operand.vmem [shape: f32[6,1], index: 4, kind: input, shape index: {}]   ;;  %s6428_s5 = inlined_call_operand.vmem [shape: f32[9,8,6], index: 5, kind: input, shape index: {}]   ;;  %s6429_s6 = inlined_call_operand.vmem [shape: f32[8,1], index: 6, kind: input, shape index: {}]   ;;  %s6430_s7 = inlined_call_operand.vmem [shape: f32[9,10,8], index: 7, kind: input, shape index: {}]   ;;  %s6431_s8 = inlined_call_operand.vmem [shape: f32[10,1], index: 8, kind: input, shape index: {}]   ;;  %s6432_s9 = inlined_call_operand.vmem [shape: f32[10,1], index: 9, kind: input, shape index: {}]   ;;  %s6433_s10 = inlined_call_operand.vmem [shape: f32[10,1], index: 10, kind: input, shape index: {}]   ;;  %s6434_s11 = inlined_call_operand.vmem [shape: f32[10,256,15], index: 11, kind: input, shape index: {}]   ;;  %s6435_s12 = inlined_call_operand.vmem [shape: f32[1,15], index: 12, kind: input, shape index: {}]   ;;  %s6436_s13 = inlined_call_operand.vmem [shape: f32[15,1], index: 13, kind: input, shape index: {}]   ;;  %s6437_s14 = inlined_call_operand.<no memory space> [shape: f32[1,1], index: 14, kind: input, shape index: {}]   ;;  %s6438_s15 = inlined_call_operand.vmem [shape: f32[2,1,1], index: 15, kind: output, shape index: {}]  }
   0x1   :  { %v20_v0 = vstv %s6437_s14 }
   0x2   :  { %21 = vst [vmem:[#allocation2] sm:$0x1] %v20_v0 }
   0x3 LB: > { %s3882_s21 = sadd.s32 4294967295, %s4670_s20   ;;  %p3886_p0 = scmp.ge.s32.totalorder %s4670_s20, 1  ;;  %s4670_s20 = sphi %s4766_s20, %s27_s20  }
   0x4   : > { %p438_p1 = scmp.lt.s32.totalorder %s4670_s20, 3 }
   0x6   : > { %p439_p2 = pnand %p3886_p0, %p438_p1 }
   0x7   : > { %p483_p3 = scmp.lt.s32.totalorder (!%p439_p2), %s3882_s21, 1  ;;  %s4674_s29 = smov (!%p439_p2), 17  }
   0x8   : > { %442 = sbr.rel (%p439_p2) target bundleno = 1896 (0x768), region = 80  ;;  %s4675_s30 = smov (!%p439_p2), 16  }
   0x9   : > { %s4676_s16 = smov (!%p439_p2), 15   ;;  %s4677_s17 = smov (!%p439_p2), 1  }
   0xa   : > { %s4679_s26 = smov (!%p439_p2), 113   ;;  %s4680_s22 = smov (!%p439_p2), 112  }
   0xb   : > { %s4681_s23 = smov (!%p439_p2), 111  }
   0xd   : > { %v528_v1 = vld [vmem:[%s6424_s1] sm:$0x3f]  ;;  %v490_v2 = vlaneseq  ;;  %v4672_v3 = vmov 0   ;;  %s6442_s21 = smov (!%p483_p3, %s3882_s21), 1  ;;  %v3892_v5 = vld [vmem:[%s6424_s1 + $0x8] sm:$0x3f] }
   0xe   : > { %4658 = vset.pattern.permute.xlu1 %v4672_v3  ;;  %4659 = vset.pattern.permute.xlu0 %v4672_v3  ;;  %s3887_s25 = sshll.u32 %s6442_s21, 1  ;;  %v4673_v9 = vmov 0.0   ;;  %v3895_v12 = vld [vmem:[%s6424_s1 + $0x10] sm:$0x3f]  ;;  %v3899_v13 = vld [vmem:[%s6424_s1 + $0x20] sm:$0x3f] }
   0xf   : > { %531 = vperm.xlu1 %4658, %v528_v1   ;;  %v500_v4 = vshrl.u32 %v490_v2, 7  ;;  %s486_s28 = scalar_lea.vmem %s6423_s0, %s3887_s25  ;;  %941 = vmatprep.mubr.f32.mxu0 %v4673_v9  ;;  %v3898_v14 = vld [vmem:[%s6424_s1 + $0x18] sm:$0x3f]  ;;  %s4678_s25 = smov 127   ;;  %v3902_v15 = vld [vmem:[%s6424_s1 + $0x28] sm:$0x3f] }
  0x10   : > { %v497_v8 = vld [vmem:[%s486_s28] sm:$0x3]  ;;  %1021 = vmatprep.mubr.f32.mxu1 %v4673_v9  ;;  %v3905_v16 = vld [vmem:[%s6424_s1 + $0x30] sm:$0x3f]  ;;  %v3908_v17 = vld [vmem:[%s6424_s1 + $0x38] sm:$0x3f]  ;;  %s489_s28 = scalar_lea.vmem %s6438_s15, %s6442_s21 }
  0x11   : > { %v4784_v6 = vsub.s32 0, %v500_v4  ;;  %v505_v7 = vsub.s32 1, %v500_v4  ;;  %v3911_v18 = vld [vmem:[%s6424_s1 + $0x40] sm:$0x3f]  ;;  %v4857_v25 = vand.u32 127, %v490_v2 }
  0x12   : > { %v789_v19 = vld [vmem:[%s6425_s2] sm:$0x3f] }
  0x13   : > { %561 = vperm.xlu1 %4658, %v3892_v5   ;;  %v4791_v10 = vrot.slane %v497_v8, %v4784_v6  ;;  %v4796_v11 = vrot.slane %v497_v8, %v505_v7  ;;  %v492_v27 = vadd.s32 128, %v4857_v25  ;;  %v4861_v29 = vshra.s32 %v4857_v25, 4 }
  0x14   : > { %v4864_v30 = vand.u32 15, %v4857_v25  ;;  %vm548_vm4 = vcmp.lt.s32.totalorder %v4857_v25, 16  ;;  %vm513_vm8 = vcmp.lt.s32.totalorder %v4857_v25, 17  ;;  %vm580_vm11 = vcmp.lt.s32.totalorder %v4857_v25, 15 }
  0x15   : > { %509 = vrot.lane.b32.xlu0 %v4791_v10, %s4674_s29  ;;  %v4866_v32 = vshra.s32 %v492_v27, 4  ;;  %v4868_v33 = vand.u32 15, %v492_v27  ;;  %vm516_vm0 = vcmp.ge.s32.totalorder %v4861_v29, 1  ;;  %vm616_vm13 = vcmp.lt.s32.totalorder %v4857_v25, 1 }
  0x16   : > { %vm518_vm1 = vcmp.ge.s32.totalorder %v4864_v30, 1  ;;  %vm583_vm5 = vcmp.le.s32.totalorder %v4864_v30, 14  ;;  %v3890_v38 = vsel %vm516_vm0, 1.0, %v4673_v9  ;;  %vm694_vm14 = vcmp.le.s32.totalorder %v4861_v29, 14 }
  0x17   : > { %544 = vrot.lane.b32.xlu1 %v4791_v10, %s4675_s30  ;;  %vm517_vm2 = vcmp.ge.s32.totalorder %v4866_v32, 1  ;;  %vm519_vm3 = vcmp.ge.s32.totalorder %v4868_v33, 1  ;;  %vm520_vm6 = vmand %vm516_vm0, %vm518_vm1  ;;  %vm584_vm7 = vcmp.le.s32.totalorder %v4868_v33, 14  ;;  %v3896_v56 = vsel %vm518_vm1, 1.0, %v4673_v9 }
  0x18   : > { %vm521_vm9 = vmand %vm517_vm2, %vm519_vm3  ;;  %v3891_v39 = vsel %vm517_vm2, 1.0, %v4673_v9  ;;  %v3888_v42 = vsel %vm520_vm6, 1.0, %v4673_v9  ;;  %v3897_v57 = vsel %vm519_vm3, 1.0, %v4673_v9  ;;  %vm695_vm15 = vcmp.le.s32.totalorder %v4866_v32, 14 }
  0x19   : > { %511 = vrot.lane.b32.xlu0 %v4796_v11, %s4674_s29  ;;  %vm585_vm10 = vmand %vm516_vm0, %vm583_vm5  ;;  %v3889_v43 = vsel %vm521_vm9, 1.0, %v4673_v9  ;;  %vm659_vm0 = vcmp.lt.s32.totalorder %v4857_v25, 127  ;;  %v3900_v8 = vsel %vm583_vm5, 1.0, %v4673_v9 }
  0x1a   : > { %vm586_vm12 = vmand %vm517_vm2, %vm584_vm7  ;;  %v3893_v50 = vsel %vm585_vm10, 1.0, %v4673_v9 }
  0x1b   : > { %578 = vrot.lane.b32.xlu1 %v4796_v11, %s4676_s16  ;;  %v3894_v51 = vsel %vm586_vm12, 1.0, %v4673_v9  ;;  %vm4941_vm2 = vmand %vm694_vm14, %vm518_vm1  ;;  %vm691_vm1 = vcmp.lt.s32.totalorder %v4857_v25, 113  ;;  %vm841_vm12 = vcmp.lt.s32.totalorder %v4864_v30, 15 }
  0x1c   : > { %vm697_vm6 = vmand %vm695_vm15, %vm519_vm3  ;;  %vm727_vm3 = vcmp.lt.s32.totalorder %v4857_v25, 112 }
  0x1d   : > { %546 = vrot.lane.b32.xlu0 %v4796_v11, %s4675_s30  ;;  %vm762_vm9 = vmand %vm694_vm14, %vm583_vm5  ;;  %vm759_vm5 = vcmp.lt.s32.totalorder %v4857_v25, 111 }
  0x1e   : > { %vm763_vm10 = vmand %vm695_vm15, %vm584_vm7 }
  0x1f   : > { %612 = vrot.lane.b32.xlu1 %v4791_v10, %s4677_s17 }
  0x21   : > { %576 = vrot.lane.b32.xlu0 %v4791_v10, %s4676_s16 }
  0x23   : > { %614 = vrot.lane.b32.xlu1 %v4796_v11, %s4677_s17 }
  0x25   : > { %597 = vperm.xlu0 %4659, %v3895_v12  }
  0x27   : > { %648 = vperm.xlu1 %4658, %v3899_v13  }
  0x29   : > { %629 = vperm.xlu0 %4659, %v3898_v14  }
  0x2b   : > { %657 = vrot.lane.b32.xlu1 %v4796_v11, %s4678_s25 }
  0x2d   : > { %655 = vrot.lane.b32.xlu0 %v4791_v10, %s4678_s25 }
  0x2f   : > { %687 = vrot.lane.b32.xlu1 %v4791_v10, %s4679_s26 }
  0x31   : > { %672 = vperm.xlu0 %4659, %v3902_v15   ;;  %v3901_v15 = vsel %vm584_vm7, 1.0, %v4673_v9  ;;  %vm839_vm7 = vcmp.lt.s32.totalorder %v4861_v29, 15 }
  0x33   : > { %708 = vperm.xlu1 %4658, %v3905_v16  }
  0x35   : > { %689 = vrot.lane.b32.xlu0 %v4796_v11, %s4679_s26 }
  0x37   : > { %725 = vrot.lane.b32.xlu1 %v4796_v11, %s4680_s22 }
  0x39   : > { %723 = vrot.lane.b32.xlu0 %v4791_v10, %s4680_s22 }
  0x3b   : > { %755 = vrot.lane.b32.xlu1 %v4791_v10, %s4681_s23 }
  0x3d   : > { %740 = vperm.xlu0 %4659, %v3908_v17  }
  0x3f   : > { %774 = vperm.xlu1 %4658, %v3911_v18  }
  0x41   : > { %757 = vrot.lane.b32.xlu0 %v4796_v11, %s4681_s23 }
  0x45   : > { %792 = vperm.xlu0 %4659, %v789_v19  }
  0x87   : > { %v510_v21 = vpop.permute.xlu0 %509 }
  0x8a   : > { %v4852_v20 = vpop.permute.xlu1 %531 }
  0x8b   : > { %v512_v23 = vpop.permute.xlu0 %511 }
  0x8c   : > { %v514_v44 = vsel %vm513_vm8, %v510_v21, %v512_v23  ;;  %v515_v45 = vsel %vm513_vm8, %v512_v23, %v510_v21 }
  0x8d   : > { %v526_v52 = vmul.f32 %v3888_v42, %v515_v45  ;;  %v527_v53 = vmul.f32 %v3889_v43, %v514_v44  ;;  %v3907_v45 = vsel %vm695_vm15, 1.0, %v4673_v9  ;;  %vm842_vm15 = vcmp.lt.s32.totalorder %v4868_v33, 15 }
  0x8e   : > { %v4854_v22 = vpop.permute.xlu1 %561 }
  0x8f   : > { %v547_v28 = vpop.permute.xlu0 %546  ;;  %v537_v2 = vrot.slane %v526_v52, %v4784_v6  ;;  %v541_v3 = vrot.slane %v527_v53, %v4784_v6 }
  0x91   : > { %v542_v23 = vmul.f32 %v537_v2, %v4852_v20 }
  0x92   : > { %v545_v24 = vpop.permute.xlu1 %544 }
  0x93   : > { %v577_v34 = vpop.permute.xlu0 %576  ;;  %v549_v40 = vsel %vm548_vm4, %v545_v24, %v547_v28  ;;  %v550_v41 = vsel %vm548_vm4, %v547_v28, %v545_v24  ;;  %v3903_v24 = vsel %vm4941_vm2, 1.0, %v4673_v9  ;;  %vm843_vm2 = vmand %vm839_vm7, %vm841_vm12  ;;  %vm1686_vm7 = vcmp.lt.s32.totalorder %v4861_v29, 14 }
  0x94   : > { %v555_v47 = vmul.f32 %v3890_v38, %v550_v41  ;;  %v556_v48 = vmul.f32 %v3891_v39, %v549_v40  ;;  %vm1688_vm12 = vcmp.lt.s32.totalorder %v4864_v30, 14 }
  0x96   : > { %v579_v26 = vpop.permute.xlu1 %578  ;;  %v567_v59 = vrot.slane %v555_v47, %v4784_v6  ;;  %v571_v60 = vrot.slane %v556_v48, %v4784_v6 }
  0x97   : > { %v581_v54 = vsel %vm580_vm11, %v577_v34, %v579_v26  ;;  %v582_v55 = vsel %vm580_vm11, %v579_v26, %v577_v34  ;;  %v3904_v26 = vsel %vm697_vm6, 1.0, %v4673_v9 }
  0x98   : > { %v591_v0 = vmul.f32 %v3893_v50, %v582_v55  ;;  %v592_v1 = vmul.f32 %v3894_v51, %v581_v54  ;;  %v572_v13 = vmul.f32 %v567_v59, %v4854_v22  ;;  %v573_v14 = vmul.f32 %v571_v60, %v4854_v22 }
  0x99   : > { %v543_v22 = vmul.f32 %v541_v3, %v4852_v20 }
  0x9a   : > { %v613_v31 = vpop.permute.xlu1 %612  ;;  %v603_v16 = vrot.slane %v591_v0, %v4784_v6  ;;  %v607_v17 = vrot.slane %v592_v1, %v4784_v6  ;;  %v574_v41 = vadd.f32 %v572_v13, %v542_v23  ;;  %v3909_v13 = vsel %vm762_vm9, 1.0, %v4673_v9 }
  0x9b   : > { %v575_v42 = vadd.f32 %v573_v14, %v543_v22  ;;  %v3910_v14 = vsel %vm763_vm10, 1.0, %v4673_v9  ;;  %vm870_vm9 = vcmask 1045504   ;;  %vm866_vm10 = vcmask 48128  }
  0x9e   : > { %v615_v35 = vpop.permute.xlu1 %614 }
  0x9f   : > { %v617_v61 = vsel %vm616_vm13, %v613_v31, %v615_v35  ;;  %v618_v62 = vsel %vm616_vm13, %v615_v35, %v613_v31 }
  0xa0   : > { %v598_v36 = vpop.permute.xlu0 %597  ;;  %v623_v5 = vmul.f32 %v3896_v56, %v618_v62  ;;  %v624_v7 = vmul.f32 %v3897_v57, %v617_v61 }
  0xa1   : > { %v608_v27 = vmul.f32 %v603_v16, %v598_v36  ;;  %v609_v28 = vmul.f32 %v607_v17, %v598_v36  ;;  %v3906_v36 = vsel %vm694_vm14, 1.0, %v4673_v9  ;;  %vm840_vm14 = vcmp.lt.s32.totalorder %v4866_v32, 15 }
  0xa2   : > { %v4886_v37 = vpop.permute.xlu1 %648  ;;  %v635_v31 = vrot.slane %v623_v5, %v4784_v6  ;;  %v639_v34 = vrot.slane %v624_v7, %v4784_v6  ;;  %vm844_vm6 = vmand %vm840_vm14, %vm842_vm15  ;;  %vm1687_vm14 = vcmp.lt.s32.totalorder %v4866_v32, 14  ;;  %vm1689_vm15 = vcmp.lt.s32.totalorder %v4868_v33, 14 }
  0xa3   : > { %v610_v47 = vadd.f32 %v608_v27, %v574_v41  ;;  %v611_v48 = vadd.f32 %v609_v28, %v575_v42  ;;  %v652_v0 = vmul.f32 %v4886_v37, %v4796_v11 }
  0xa4   : > { %v630_v46 = vpop.permute.xlu0 %629 }
  0xa5   : > { %v640_v43 = vmul.f32 %v635_v31, %v630_v46  ;;  %v641_v44 = vmul.f32 %v639_v34, %v630_v46 }
  0xa6   : > { %v658_v49 = vpop.permute.xlu1 %657 }
  0xa7   : > { %v643_v59 = vadd.f32 %v641_v44, %v611_v48 }
  0xa8   : > { %v656_v58 = vpop.permute.xlu0 %655 }
  0xa9   : > { %v660_v18 = vsel %vm659_vm0, %v656_v58, %v658_v49  ;;  %v661_v19 = vsel %vm659_vm0, %v658_v49, %v656_v58  ;;  %v642_v58 = vadd.f32 %v640_v43, %v610_v47  ;;  %v654_v7 = vadd.f32 %v652_v0, %v643_v59 }
  0xaa   : > { %v688_v63 = vpop.permute.xlu1 %687  ;;  %v666_v38 = vmul.f32 %v3900_v8, %v660_v18  ;;  %v667_v39 = vmul.f32 %v3901_v15, %v661_v19 }
  0xac   : > { %v673_v12 = vpop.permute.xlu0 %672  ;;  %v678_v53 = vrot.slane %v666_v38, %v4784_v6  ;;  %v682_v54 = vrot.slane %v667_v39, %v4784_v6 }
  0xae   : > { %v709_v21 = vpop.permute.xlu1 %708  ;;  %v683_v1 = vmul.f32 %v678_v53, %v673_v12  ;;  %v684_v2 = vmul.f32 %v682_v54, %v673_v12 }
  0xb0   : > { %v690_v35 = vpop.permute.xlu0 %689  ;;  %v686_v11 = vadd.f32 %v684_v2, %v654_v7 }
  0xb1   : > { %v692_v40 = vsel %vm691_vm1, %v688_v63, %v690_v35  ;;  %v693_v20 = vsel %vm691_vm1, %v690_v35, %v688_v63  ;;  %v651_v63 = vmul.f32 %v4886_v37, %v4791_v10 }
  0xb2   : > { %v702_v49 = vmul.f32 %v3903_v24, %v692_v40  ;;  %v703_v50 = vmul.f32 %v3904_v26, %v693_v20  ;;  %v726_v51 = vpop.permute.xlu1 %725 }
  0xb3   : > { %v653_v5 = vadd.f32 %v651_v63, %v642_v58 }
  0xb4   : > { %v724_v52 = vpop.permute.xlu0 %723  ;;  %v714_v60 = vrot.slane %v702_v49, %v4784_v6  ;;  %v718_v61 = vrot.slane %v703_v50, %v4784_v6 }
  0xb5   : > { %v728_v46 = vsel %vm727_vm3, %v724_v52, %v726_v51  ;;  %v729_v55 = vsel %vm727_vm3, %v726_v51, %v724_v52  ;;  %v685_v17 = vadd.f32 %v683_v1, %v653_v5 }
  0xb6   : > { %v734_v56 = vmul.f32 %v3906_v36, %v728_v46  ;;  %v735_v57 = vmul.f32 %v3907_v45, %v729_v55  ;;  %v756_v8 = vpop.permute.xlu1 %755  ;;  %v719_v15 = vmul.f32 %v714_v60, %v709_v21  ;;  %v720_v10 = vmul.f32 %v718_v61, %v709_v21  ;;  %v823_v36 = vld [vmem:[%s6426_s3] sm:$0x3f] }
  0xb8   : > { %v741_v62 = vpop.permute.xlu0 %740  ;;  %v746_v3 = vrot.slane %v734_v56, %v4784_v6  ;;  %v750_v4 = vrot.slane %v735_v57, %v4784_v6  ;;  %v721_v24 = vadd.f32 %v719_v15, %v685_v17  ;;  %v722_v26 = vadd.f32 %v720_v10, %v686_v11  ;;  %v3914_v11 = vld [vmem:[%s6428_s5 + $0x8] sm:$0xff] }
  0xba   : > { %v751_v18 = vmul.f32 %v746_v3, %v741_v62  ;;  %v752_v19 = vmul.f32 %v750_v4, %v741_v62  ;;  %v775_v21 = vpop.permute.xlu1 %774  ;;  %v3912_v3 = vsel %vm843_vm2, 1.0, %v4673_v9  ;;  %v3913_v4 = vsel %vm844_vm6, 1.0, %v4673_v9  ;;  %vm1690_vm2 = vmand %vm1686_vm7, %vm1688_vm12 }
  0xbb   : > { %vm1691_vm6 = vmand %vm1687_vm14, %vm1689_vm15 }
  0xbc   : > { %v758_v16 = vpop.permute.xlu0 %757  ;;  %v753_v31 = vadd.f32 %v751_v18, %v721_v24  ;;  %v754_v34 = vadd.f32 %v752_v19, %v722_v26 }
  0xbd   : > { %v760_v37 = vsel %vm759_vm5, %v756_v8, %v758_v16  ;;  %v761_v12 = vsel %vm759_vm5, %v758_v16, %v756_v8 }
  0xbe   : > { %v768_v23 = vmul.f32 %v3909_v13, %v760_v37  ;;  %v769_v22 = vmul.f32 %v3910_v14, %v761_v12  ;;  %v1652_v14 = vld [vmem:[%s6429_s6] sm:$0xff] }
  0xc0   : > { %v780_v27 = vrot.slane %v768_v23, %v4784_v6  ;;  %v784_v28 = vrot.slane %v769_v22, %v4784_v6  ;;  %v793_v20 = vpop.permute.xlu0 %792  ;;  %v831_v6 = vld [vmem:[%s6427_s4] sm:$0x3f] }
  0xc1   : > { %v857_v23 = vld [vmem:[%s6428_s5] sm:$0xff] }
  0xc2   : > { %v785_v35 = vmul.f32 %v780_v27, %v775_v21  ;;  %v786_v38 = vmul.f32 %v784_v28, %v775_v21  ;;  %v3921_v28 = vld [vmem:[%s6428_s5 + $0x10] sm:$0xff] }
  0xc4   : > { %v787_v39 = vadd.f32 %v785_v35, %v753_v31  ;;  %v788_v40 = vadd.f32 %v786_v38, %v754_v34  ;;  %v3925_v38 = vld [vmem:[%s6428_s5 + $0x18] sm:$0xff] }
  0xc6   : > { %v795_v41 = vadd.f32 %v793_v20, %v787_v39  ;;  %v796_v42 = vadd.f32 %v793_v20, %v788_v40  ;;  %v3929_v39 = vld [vmem:[%s6428_s5 + $0x20] sm:$0xff] }
  0xc8   : > { %v797_v43 = vmax.f32 %v795_v41, 0.0  ;;  %v798_v44 = vmax.f32 %v796_v42, 0.0 }
  0xca   : > { %801 = vrot.lane.b32.xlu0 %v798_v44, %s4678_s25  ;;  %799 = vrot.lane.b32.xlu1 %v797_v43, %s4678_s25 }
  0xce   : > { %809 = vrot.lane.b32.xlu0 %v798_v44, %s4680_s22  ;;  %807 = vrot.lane.b32.xlu1 %v797_v43, %s4680_s22 }
  0xd2   : > { %815 = vrot.lane.b32.xlu0 %v798_v44, %s4681_s23  ;;  %813 = vrot.lane.b32.xlu1 %v797_v43, %s4681_s23 }
  0xd6   : > { %834 = vperm.xlu0 %4659, %v831_v6   ;;  %826 = vperm.xlu1 %4658, %v823_v36  }
 0x13c   : > { %v802_v45 = vpop.permute.xlu0 %801  ;;  %v800_v47 = vpop.permute.xlu1 %799 }
 0x13d   : > { %v803_v54 = vsel %vm659_vm0, %v800_v47, %v802_v45  ;;  %v804_v46 = vsel %vm659_vm0, %v802_v45, %v800_v47  ;;  %v3937_v47 = vld [vmem:[%s6428_s5 + $0x30] sm:$0xff] }
 0x13e   : > { %v805_v59 = vmax.f32 %v797_v43, %v803_v54  ;;  %v806_v60 = vmax.f32 %v798_v44, %v804_v46  ;;  %v3933_v43 = vld [vmem:[%s6428_s5 + $0x28] sm:$0xff] }
 0x140   : > { %v810_v48 = vpop.permute.xlu0 %809  ;;  %v808_v49 = vpop.permute.xlu1 %807 }
 0x141   : > { %v811_v55 = vsel %vm727_vm3, %v808_v49, %v810_v48  ;;  %v812_v56 = vsel %vm727_vm3, %v810_v48, %v808_v49 }
 0x144   : > { %v816_v50 = vpop.permute.xlu0 %815  ;;  %v814_v51 = vpop.permute.xlu1 %813 }
 0x145   : > { %v817_v52 = vsel %vm759_vm5, %v814_v51, %v816_v50  ;;  %v818_v53 = vsel %vm759_vm5, %v816_v50, %v814_v51 }
 0x146   : > { %v819_v57 = vmax.f32 %v811_v55, %v817_v52  ;;  %v820_v58 = vmax.f32 %v812_v56, %v818_v53  ;;  %v3941_v52 = vld [vmem:[%s6428_s5 + $0x38] sm:$0xff]  ;;  %v3945_v56 = vld [vmem:[%s6428_s5 + $0x40] sm:$0xff] }
 0x148   : > { %v821_v61 = vmax.f32 %v805_v59, %v819_v57  ;;  %v822_v62 = vmax.f32 %v806_v60, %v820_v58 }
 0x151   : > { %v827_v63 = vpop.permute.xlu1 %826  ;;  %v835_v2 = vpop.permute.xlu0 %834 }
 0x152   : > { %v829_v0 = vmul.f32 %v827_v63, %v821_v61  ;;  %v830_v1 = vmul.f32 %v827_v63, %v822_v62 }
 0x154   : > { %v837_v5 = vadd.f32 %v835_v2, %v829_v0  ;;  %v838_v7 = vadd.f32 %v835_v2, %v830_v1 }
 0x156   : > { %v849_v8 = vmul.f32 %v3912_v3, %v837_v5  ;;  %v850_v13 = vmul.f32 %v3913_v4, %v838_v7 }
 0x158   : > { %860 = vrot.lane.b32.xlu0 %v850_v13, %s4675_s30  ;;  %858 = vrot.lane.b32.xlu1 %v849_v8, %s4675_s30 }
 0x15c   : > { %853 = vrot.lane.b32.xlu0 %v850_v13, %s4674_s29  ;;  %851 = vrot.lane.b32.xlu1 %v849_v8, %s4674_s29 }
 0x160   : > { %1030 = vrot.lane.b32.xlu0 %v850_v13, %s4676_s16  ;;  %1028 = vrot.lane.b32.xlu1 %v849_v8, %s4676_s16 }
 0x164   : > { %1120 = vrot.lane.b32.xlu0 %v850_v13, %s4677_s17  ;;  %1118 = vrot.lane.b32.xlu1 %v849_v8, %s4677_s17 }
 0x168   : > { %1294 = vrot.lane.b32.xlu0 %v850_v13, %s4678_s25  ;;  %1292 = vrot.lane.b32.xlu1 %v849_v8, %s4678_s25 }
 0x16c   : > { %1384 = vrot.lane.b32.xlu0 %v850_v13, %s4679_s26  ;;  %1382 = vrot.lane.b32.xlu1 %v849_v8, %s4679_s26 }
 0x170   : > { %1474 = vrot.lane.b32.xlu0 %v850_v13, %s4680_s22  ;;  %1472 = vrot.lane.b32.xlu1 %v849_v8, %s4680_s22 }
 0x174   : > { %1564 = vrot.lane.b32.xlu0 %v850_v13, %s4681_s23  ;;  %1562 = vrot.lane.b32.xlu1 %v849_v8, %s4681_s23 }
 0x178   : > { %1655 = vperm.xlu1 %4658, %v1652_v14  }
 0x1ca   : > { %v861_v15 = vpop.permute.xlu0 %860  ;;  %v859_v10 = vpop.permute.xlu1 %858 }
 0x1cb   : > { %v862_v16 = vsel %vm548_vm4, %v859_v10, %v861_v15  ;;  %v863_v17 = vsel %vm548_vm4, %v861_v15, %v859_v10 }
 0x1cc   : > { %3915 = vmatprep.subr.msk.mxu0 %vm870_vm9, %v862_v16 }
 0x1cd   : > { %3916 = vmatpush1.msk.msra.mxu0 %vm870_vm9, %v863_v17 }
 0x1ce   : > { %v854_v37 = vpop.permute.xlu0 %853  ;;  %v852_v12 = vpop.permute.xlu1 %851  ;;  %3917 = vmatmul.mubr.msk.f32.vlgmr.msra.gmra.mxu0 %vm866_vm10, %v3914_v11 }
 0x1cf   : > { %v855_v18 = vsel %vm513_vm8, %v852_v12, %v854_v37  ;;  %v856_v19 = vsel %vm513_vm8, %v854_v37, %v852_v12  ;;  %1109 = vmatprep.mubr.f32.mxu0 %v4673_v9 }
 0x1d0   : > { %3918 = vmatprep.subr.msk.mxu1 %vm870_vm9, %v855_v18 }
 0x1d1   : > { %3919 = vmatpush1.msk.msra.mxu1 %vm870_vm9, %v856_v19 }
 0x1d2   : > { %v1031_v22 = vpop.permute.xlu0 %1030  ;;  %v1029_v24 = vpop.permute.xlu1 %1028  ;;  %3920 = vmatmul.mubr.msk.f32.vlgmr.msra.gmra.mxu1 %vm866_vm10, %v857_v23 }
 0x1d3   : > { %v1032_v26 = vsel %vm580_vm11, %v1029_v24, %v1031_v22  ;;  %v1033_v27 = vsel %vm580_vm11, %v1031_v22, %v1029_v24  ;;  %1199 = vmatprep.mubr.f32.mxu1 %v4673_v9 }
 0x1d4   : > { %3922 = vmatprep.subr.msk.mxu0 %vm870_vm9, %v1032_v26 }
 0x1d5   : > { %3923 = vmatpush1.msk.msra.mxu0 %vm870_vm9, %v1033_v27 }
 0x1d6   : > { %v1121_v21 = vpop.permute.xlu0 %1120  ;;  %3930 = vmatprep.subr.msk.mxu0 %vm870_vm9, %v850_v13  ;;  %v1119_v31 = vpop.permute.xlu1 %1118  ;;  %3924 = vmatmul.mubr.msk.f32.vlgmr.msra.gmra.mxu0 %vm866_vm10, %v3921_v28 }
 0x1d7   : > { %v1122_v34 = vsel %vm616_vm13, %v1119_v31, %v1121_v21  ;;  %v1123_v35 = vsel %vm616_vm13, %v1121_v21, %v1119_v31  ;;  %3931 = vmatpush1.msk.msra.mxu0 %vm870_vm9, %v849_v8  ;;  %1283 = vmatprep.mubr.f32.mxu0 %v4673_v9 }
 0x1d8   : > { %3926 = vmatprep.subr.msk.mxu1 %vm870_vm9, %v1122_v34 }
 0x1d9   : > { %3927 = vmatpush1.msk.msra.mxu1 %vm870_vm9, %v1123_v35 }
 0x1da   : > { %v1295_v40 = vpop.permute.xlu0 %1294  ;;  %v1293_v20 = vpop.permute.xlu1 %1292  ;;  %3928 = vmatmul.mubr.msk.f32.vlgmr.msra.gmra.mxu1 %vm866_vm10, %v3925_v38  ;;  %3932 = vmatmul.mubr.msk.f32.vlgmr.msra.gmra.mxu0 %vm866_vm10, %v3929_v39 }
 0x1db   : > { %v1296_v41 = vsel %vm659_vm0, %v1293_v20, %v1295_v40  ;;  %v1297_v42 = vsel %vm659_vm0, %v1295_v40, %v1293_v20  ;;  %1373 = vmatprep.mubr.f32.mxu1 %v4673_v9  ;;  %1463 = vmatprep.mubr.f32.mxu0 %v4673_v9 }
 0x1dc   : > { %3934 = vmatprep.subr.msk.mxu1 %vm870_vm9, %v1297_v42 }
 0x1dd   : > { %3935 = vmatpush1.msk.msra.mxu1 %vm870_vm9, %v1296_v41 }
 0x1de   : > { %v1385_v44 = vpop.permute.xlu0 %1384  ;;  %v1383_v6 = vpop.permute.xlu1 %1382  ;;  %3936 = vmatmul.mubr.msk.f32.vlgmr.msra.gmra.mxu1 %vm866_vm10, %v3933_v43 }
 0x1df   : > { %v1386_v36 = vsel %vm691_vm1, %v1383_v6, %v1385_v44  ;;  %v1387_v45 = vsel %vm691_vm1, %v1385_v44, %v1383_v6  ;;  %1553 = vmatprep.mubr.f32.mxu1 %v4673_v9 }
 0x1e0   : > { %3938 = vmatprep.subr.msk.mxu0 %vm870_vm9, %v1387_v45 }
 0x1e1   : > { %3939 = vmatpush1.msk.msra.mxu0 %vm870_vm9, %v1386_v36 }
 0x1e2   : > { %v1475_v48 = vpop.permute.xlu0 %1474  ;;  %3940 = vmatmul.mubr.msk.f32.vlgmr.msra.gmra.mxu0 %vm866_vm10, %v3937_v47  ;;  %v1473_v49 = vpop.permute.xlu1 %1472 }
 0x1e3   : > { %v1476_v50 = vsel %vm727_vm3, %v1473_v49, %v1475_v48  ;;  %v1477_v51 = vsel %vm727_vm3, %v1475_v48, %v1473_v49  ;;  %1643 = vmatprep.mubr.f32.mxu0 %v4673_v9 }
 0x1e4   : > { %3942 = vmatprep.subr.msk.mxu1 %vm870_vm9, %v1477_v51 }
 0x1e5   : > { %3943 = vmatpush1.msk.msra.mxu1 %vm870_vm9, %v1476_v50 }
 0x1e6   : > { %v1565_v53 = vpop.permute.xlu0 %1564  ;;  %3944 = vmatmul.mubr.msk.f32.vlgmr.msra.gmra.mxu1 %vm866_vm10, %v3941_v52  ;;  %v1563_v54 = vpop.permute.xlu1 %1562 }
 0x1e7   : > { %v1566_v46 = vsel %vm759_vm5, %v1563_v54, %v1565_v53  ;;  %v1567_v55 = vsel %vm759_vm5, %v1565_v53, %v1563_v54  ;;  %1786 = vmatprep.mubr.f32.mxu1 %v4673_v9 }
 0x1e8   : > { %3946 = vmatprep.subr.msk.mxu0 %vm870_vm9, %v1567_v55  ;;  %v3950_v55 = vsel %vm1691_vm6, 1.0, %v4673_v9 }
 0x1e9   : > { %3947 = vmatpush1.msk.msra.mxu0 %vm870_vm9, %v1566_v46  ;;  %v3949_v46 = vsel %vm1690_vm2, 1.0, %v4673_v9  ;;  %vm1715_vm9 = vcmask 64512   ;;  %vm3833_vm2 = vcmask 0  }
 0x1ea   : > { %3948 = vmatmul.mubr.msk.f32.vlgmr.msra.gmra.mxu0 %vm866_vm10, %v3945_v56  ;;  %vm2659_vm10 = vcmp.lt.s32.totalorder %v4868_v33, 13 }
 0x1eb   : > { %1869 = vmatprep.mubr.f32.mxu0 %v4673_v9 }
 0x1f3   : > { %v1656_v21 = vpop.permute.xlu1 %1655 }
 0x28e   : > { %v943_v57 = vpop.f32.mrf.mxu0 }
 0x290   : > { %v945_v58 = vpop.f32.mrf.mxu0 }
 0x292   : > { %v1023_v59 = vpop.f32.mrf.mxu1 }
 0x293   : > { %v1024_v60 = vadd.f32 %v1023_v59, %v943_v57 }
 0x294   : > { %v1025_v61 = vpop.f32.mrf.mxu1 }
 0x295   : > { %v1026_v62 = vadd.f32 %v1025_v61, %v945_v58 }
 0x296   : > { %v1111_v63 = vpop.f32.mrf.mxu0 }
 0x297   : > { %v1116_v0 = vadd.f32 %v1111_v63, %v1024_v60  ;;  %v2548_v60 = vld [vmem:[%s6431_s8] sm:$0xff] }
 0x298   : > { %v1113_v1 = vpop.f32.mrf.mxu0 }
 0x299   : > { %v1117_v2 = vadd.f32 %v1113_v1, %v1026_v62  ;;  %v3951_v1 = vld [vmem:[%s6430_s7 + $0x10] sm:$0xff] }
 0x29a   : > { %v1201_v3 = vpop.f32.mrf.mxu1  ;;  %v1285_v4 = vpop.f32.mrf.mxu0 }
 0x29b   : > { %v1206_v5 = vadd.f32 %v1201_v3, %v1116_v0 }
 0x29c   : > { %v1203_v7 = vpop.f32.mrf.mxu1  ;;  %v1287_v14 = vpop.f32.mrf.mxu0 }
 0x29d   : > { %v1207_v8 = vadd.f32 %v1203_v7, %v1117_v2  ;;  %v1290_v13 = vadd.f32 %v1285_v4, %v1206_v5  ;;  %v3952_v7 = vld [vmem:[%s6430_s7 + $0x18] sm:$0x3] }
 0x29e   : > { %v1375_v15 = vpop.f32.mrf.mxu1 }
 0x29f   : > { %v1291_v10 = vadd.f32 %v1287_v14, %v1207_v8  ;;  %v1380_v16 = vadd.f32 %v1375_v15, %v1290_v13  ;;  %v1704_v8 = vld [vmem:[%s6430_s7] sm:$0xff] }
 0x2a0   : > { %v1377_v17 = vpop.f32.mrf.mxu1 }
 0x2a1   : > { %v1381_v37 = vadd.f32 %v1377_v17, %v1291_v10  ;;  %v3957_v17 = vld [vmem:[%s6430_s7 + $0x20] sm:$0xff] }
 0x2a2   : > { %v1465_v11 = vpop.f32.mrf.mxu0 }
 0x2a3   : > { %v1470_v12 = vadd.f32 %v1465_v11, %v1380_v16  ;;  %v1705_v16 = vld [vmem:[%s6430_s7 + $0x8] sm:$0x3] }
 0x2a4   : > { %v1467_v18 = vpop.f32.mrf.mxu0 }
 0x2a5   : > { %v1471_v22 = vadd.f32 %v1467_v18, %v1381_v37 }
 0x2a6   : > { %v1555_v19 = vpop.f32.mrf.mxu1 }
 0x2a7   : > { %v1560_v24 = vadd.f32 %v1555_v19, %v1470_v12  ;;  %v3958_v19 = vld [vmem:[%s6430_s7 + $0x28] sm:$0x3] }
 0x2a8   : > { %v1557_v23 = vpop.f32.mrf.mxu1 }
 0x2a9   : > { %v1561_v27 = vadd.f32 %v1557_v23, %v1471_v22  ;;  %v3961_v23 = vld [vmem:[%s6430_s7 + $0x30] sm:$0xff] }
 0x2aa   : > { %v1645_v26 = vpop.f32.mrf.mxu0 }
 0x2ab   : > { %v1650_v28 = vadd.f32 %v1645_v26, %v1560_v24 }
 0x2ac   : > { %v1647_v31 = vpop.f32.mrf.mxu0 }
 0x2ad   : > { %v1658_v34 = vadd.f32 %v1656_v21, %v1650_v28  ;;  %v1651_v35 = vadd.f32 %v1647_v31, %v1561_v27  ;;  %v3962_v28 = vld [vmem:[%s6430_s7 + $0x38] sm:$0x3] }
 0x2af   : > { %v1660_v38 = vmax.f32 %v1658_v34, 0.0  ;;  %v1659_v39 = vadd.f32 %v1656_v21, %v1651_v35  ;;  %v3965_v21 = vld [vmem:[%s6430_s7 + $0x40] sm:$0xff] }
 0x2b1   : > { %v1661_v40 = vmax.f32 %v1659_v39, 0.0  ;;  %1662 = vrot.lane.b32.xlu0 %v1660_v38, %s4678_s25  ;;  %v3966_v39 = vld [vmem:[%s6430_s7 + $0x48] sm:$0x3] }
 0x2b3   : > { %1664 = vrot.lane.b32.xlu1 %v1661_v40, %s4678_s25 }
 0x2b5   : > { %1670 = vrot.lane.b32.xlu0 %v1660_v38, %s4680_s22 }
 0x2b7   : > { %1672 = vrot.lane.b32.xlu1 %v1661_v40, %s4680_s22 }
 0x2b9   : > { %1676 = vrot.lane.b32.xlu0 %v1660_v38, %s4681_s23 }
 0x2bb   : > { %1678 = vrot.lane.b32.xlu1 %v1661_v40, %s4681_s23 }
 0x323   : > { %v1663_v20 = vpop.permute.xlu0 %1662 }
 0x325   : > { %v1665_v41 = vpop.permute.xlu1 %1664 }
 0x326   : > { %v1666_v44 = vsel %vm659_vm0, %v1663_v20, %v1665_v41  ;;  %v1667_v6 = vsel %vm659_vm0, %v1665_v41, %v1663_v20 }
 0x327   : > { %v1671_v42 = vpop.permute.xlu0 %1670  ;;  %v1668_v51 = vmax.f32 %v1660_v38, %v1666_v44  ;;  %v1669_v52 = vmax.f32 %v1661_v40, %v1667_v6  ;;  %v3969_v40 = vld [vmem:[%s6430_s7 + $0x50] sm:$0xff]  ;;  %v3970_v44 = vld [vmem:[%s6430_s7 + $0x58] sm:$0x3]  ;;  %v3973_v6 = vld [vmem:[%s6430_s7 + $0x60] sm:$0xff] }
 0x329   : > { %v1673_v43 = vpop.permute.xlu1 %1672 }
 0x32a   : > { %v1674_v47 = vsel %vm727_vm3, %v1671_v42, %v1673_v43  ;;  %v1675_v48 = vsel %vm727_vm3, %v1673_v43, %v1671_v42 }
 0x32b   : > { %v1677_v36 = vpop.permute.xlu0 %1676 }
 0x32d   : > { %v1679_v45 = vpop.permute.xlu1 %1678 }
 0x32e   : > { %v1680_v49 = vsel %vm759_vm5, %v1677_v36, %v1679_v45  ;;  %v1681_v50 = vsel %vm759_vm5, %v1679_v45, %v1677_v36 }
 0x32f   : > { %v1682_v53 = vmax.f32 %v1674_v47, %v1680_v49  ;;  %v1683_v54 = vmax.f32 %v1675_v48, %v1681_v50  ;;  %v3974_v49 = vld [vmem:[%s6430_s7 + $0x68] sm:$0x3]  ;;  %v3977_v50 = vld [vmem:[%s6430_s7 + $0x70] sm:$0xff] }
 0x331   : > { %v1684_v56 = vmax.f32 %v1668_v51, %v1682_v53  ;;  %v1685_v57 = vmax.f32 %v1669_v52, %v1683_v54  ;;  %v3978_v51 = vld [vmem:[%s6430_s7 + $0x78] sm:$0x3]  ;;  %v3981_v52 = vld [vmem:[%s6430_s7 + $0x80] sm:$0xff]  ;;  %v3982_v53 = vld [vmem:[%s6430_s7 + $0x88] sm:$0x3] }
 0x332   : > { %v2702_v54 = vld [vmem:[%s6434_s11 + $0xf8] sm:$0xff] }
 0x333   : > { %v1696_v58 = vmul.f32 %v3949_v46, %v1684_v56  ;;  %v1697_v59 = vmul.f32 %v3950_v55, %v1685_v57  ;;  %v2686_v46 = vld [vmem:[%s6434_s11 + $0x78] sm:$0xff]  ;;  %v2701_v55 = vld [vmem:[%s6434_s11 + $0xf0] sm:$0xff] }
 0x334   : > { %v4018_v56 = vld [vmem:[%s6434_s11 + $0x1f8] sm:$0xff]  ;;  %v2685_v57 = vld [vmem:[%s6434_s11 + $0x70] sm:$0xff] }
 0x335   : > { %1708 = vrot.lane.b32.xlu1 %v1697_v59, %s4675_s30  ;;  %1706 = vrot.lane.b32.xlu0 %v1696_v58, %s4675_s30 }
 0x339   : > { %1700 = vrot.lane.b32.xlu1 %v1697_v59, %s4674_s29  ;;  %1698 = vrot.lane.b32.xlu0 %v1696_v58, %s4674_s29 }
 0x33d   : > { %1884 = vrot.lane.b32.xlu1 %v1697_v59, %s4676_s16  ;;  %1882 = vrot.lane.b32.xlu0 %v1696_v58, %s4676_s16 }
 0x341   : > { %1980 = vrot.lane.b32.xlu1 %v1697_v59, %s4677_s17  ;;  %1978 = vrot.lane.b32.xlu0 %v1696_v58, %s4677_s17 }
 0x345   : > { %2166 = vrot.lane.b32.xlu1 %v1697_v59, %s4678_s25  ;;  %2164 = vrot.lane.b32.xlu0 %v1696_v58, %s4678_s25 }
 0x349   : > { %2262 = vrot.lane.b32.xlu1 %v1697_v59, %s4679_s26  ;;  %2260 = vrot.lane.b32.xlu0 %v1696_v58, %s4679_s26 }
 0x34d   : > { %2358 = vrot.lane.b32.xlu1 %v1697_v59, %s4680_s22  ;;  %2356 = vrot.lane.b32.xlu0 %v1696_v58, %s4680_s22 }
 0x351   : > { %2454 = vrot.lane.b32.xlu1 %v1697_v59, %s4681_s23  ;;  %2452 = vrot.lane.b32.xlu0 %v1696_v58, %s4681_s23 }
 0x355   : > { %2552 = vperm.xlu0 %4659, %v2548_v60   ;;  %v4017_v60 = vld [vmem:[%s6434_s11 + $0x1f0] sm:$0xff] }
 0x3a7   : > { %v1709_v61 = vpop.permute.xlu1 %1708  ;;  %v1707_v62 = vpop.permute.xlu0 %1706 }
 0x3a8   : > { %v1711_v63 = vsel %vm548_vm4, %v1709_v61, %v1707_v62  ;;  %v1710_v0 = vsel %vm548_vm4, %v1707_v62, %v1709_v61 }
 0x3a9   : > { %1752 = vmatprep.subr.mxu1 %v1710_v0 }
 0x3aa   : > { %1753 = vmatpush1.msra.mxu1 %v1711_v63 }
 0x3ab   : > { %v1701_v2 = vpop.permute.xlu1 %1700  ;;  %3953 = vmatmul.mubr.msk.f32.vlgmr.msra.gmra.mxu1 %vm1715_vm9, %v3951_v1  ;;  %v1699_v3 = vpop.permute.xlu0 %1698 }
 0x3ac   : > { %v1703_v4 = vsel %vm513_vm8, %v1701_v2, %v1699_v3  ;;  %v1702_v5 = vsel %vm513_vm8, %v1699_v3, %v1701_v2  ;;  %1792 = vmatprep.mubr.f32.mxu1 %v4673_v9 }
 0x3ad   : > { %1835 = vmatprep.subr.mxu0 %v1702_v5 }
 0x3ae   : > { %1836 = vmatpush1.msra.mxu0 %v1703_v4 }
 0x3af   : > { %v1885_v13 = vpop.permute.xlu1 %1884  ;;  %3954 = vmatmul.mubr.msk.f32.gmra.mxu1 %vm1715_vm9, %v3952_v7  ;;  %3955 = vmatmul.mubr.msk.f32.vlgmr.msra.gmra.mxu0 %vm1715_vm9, %v1704_v8  ;;  %v1883_v14 = vpop.permute.xlu0 %1882 }
 0x3b0   : > { %v1887_v15 = vsel %vm580_vm11, %v1885_v13, %v1883_v14  ;;  %v1886_v10 = vsel %vm580_vm11, %v1883_v14, %v1885_v13  ;;  %1875 = vmatprep.mubr.f32.mxu0 %v4673_v9  ;;  %1961 = vmatprep.mubr.f32.mxu1 %v4673_v9  ;;  %vm2656_vm11 = vcmp.lt.s32.totalorder %v4861_v29, 13 }
 0x3b1   : > { %1927 = vmatprep.subr.mxu1 %v1886_v10 }
 0x3b2   : > { %1928 = vmatpush1.msra.mxu1 %v1887_v15 }
 0x3b3   : > { %v1981_v11 = vpop.permute.xlu1 %1980  ;;  %3956 = vmatmul.mubr.msk.f32.gmra.mxu0 %vm1715_vm9, %v1705_v16  ;;  %3959 = vmatmul.mubr.msk.f32.vlgmr.msra.gmra.mxu1 %vm1715_vm9, %v3957_v17  ;;  %v1979_v37 = vpop.permute.xlu0 %1978 }
 0x3b4   : > { %2113 = vmatprep.subr.mxu1 %v1697_v59  ;;  %v1983_v12 = vsel %vm616_vm13, %v1981_v11, %v1979_v37  ;;  %v1982_v18 = vsel %vm616_vm13, %v1979_v37, %v1981_v11  ;;  %1967 = vmatprep.mubr.f32.mxu1 %v4673_v9  ;;  %v2700_v59 = vld [vmem:[%s6434_s11 + $0xe8] sm:$0xff]  ;;  %vm2658_vm13 = vcmp.lt.s32.totalorder %v4864_v30, 13 }
 0x3b5   : > { %2114 = vmatpush1.msra.mxu1 %v1696_v58  ;;  %2023 = vmatprep.subr.mxu0 %v1982_v18  ;;  %v4002_v58 = vld [vmem:[%s6434_s11 + $0x178] sm:$0xff]  ;;  %vm2660_vm7 = vmand %vm2656_vm11, %vm2658_vm13 }
 0x3b6   : > { %2024 = vmatpush1.msra.mxu0 %v1983_v12  ;;  %2057 = vmatprep.mubr.f32.mxu0 %v4673_v9 }
 0x3b7   : > { %v2167_v22 = vpop.permute.xlu1 %2166  ;;  %3960 = vmatmul.mubr.msk.f32.gmra.mxu1 %vm1715_vm9, %v3958_v19  ;;  %3963 = vmatmul.mubr.msk.f32.vlgmr.msra.gmra.mxu0 %vm1715_vm9, %v3961_v23  ;;  %v2165_v24 = vpop.permute.xlu0 %2164 }
 0x3b8   : > { %v2168_v26 = vsel %vm659_vm0, %v2165_v24, %v2167_v22  ;;  %v2169_v27 = vsel %vm659_vm0, %v2167_v22, %v2165_v24  ;;  %2063 = vmatprep.mubr.f32.mxu0 %v4673_v9  ;;  %2147 = vmatprep.mubr.f32.mxu1 %v4673_v9 }
 0x3b9   : > { %2209 = vmatprep.subr.mxu0 %v2169_v27 }
 0x3ba   : > { %2210 = vmatpush1.msra.mxu0 %v2168_v26 }
 0x3bb   : > { %v2263_v31 = vpop.permute.xlu1 %2262  ;;  %3964 = vmatmul.mubr.msk.f32.gmra.mxu0 %vm1715_vm9, %v3962_v28  ;;  %3967 = vmatmul.mubr.msk.f32.vlgmr.msra.gmra.mxu1 %vm1715_vm9, %v3965_v21  ;;  %v2261_v34 = vpop.permute.xlu0 %2260 }
 0x3bc   : > { %v2264_v35 = vsel %vm691_vm1, %v2261_v34, %v2263_v31  ;;  %v2265_v38 = vsel %vm691_vm1, %v2263_v31, %v2261_v34  ;;  %2153 = vmatprep.mubr.f32.mxu1 %v4673_v9  ;;  %2243 = vmatprep.mubr.f32.mxu0 %v4673_v9  ;;  %vm2657_vm1 = vcmp.lt.s32.totalorder %v4866_v32, 13  ;;  %v5569_v32 = vsel %vm2660_vm7, 1.0, %v4673_v9 }
 0x3bd   : > { %2305 = vmatprep.subr.mxu1 %v2265_v38  ;;  %vm2661_vm12 = vmand %vm2657_vm1, %vm2659_vm10 }
 0x3be   : > { %2306 = vmatpush1.msra.mxu1 %v2264_v35  ;;  %v5572_v33 = vsel %vm2661_vm12, 1.0, %v4673_v9 }
 0x3bf   : > { %v2359_v20 = vpop.permute.xlu1 %2358  ;;  %3968 = vmatmul.mubr.msk.f32.gmra.mxu1 %vm1715_vm9, %v3966_v39  ;;  %3971 = vmatmul.mubr.msk.f32.vlgmr.msra.gmra.mxu0 %vm1715_vm9, %v3969_v40  ;;  %v2357_v41 = vpop.permute.xlu0 %2356 }
 0x3c0   : > { %v2360_v42 = vsel %vm727_vm3, %v2357_v41, %v2359_v20  ;;  %v2361_v43 = vsel %vm727_vm3, %v2359_v20, %v2357_v41  ;;  %2249 = vmatprep.mubr.f32.mxu0 %v4673_v9  ;;  %2339 = vmatprep.mubr.f32.mxu1 %v4673_v9 }
 0x3c1   : > { %2401 = vmatprep.subr.mxu0 %v2361_v43 }
 0x3c2   : > { %2402 = vmatpush1.msra.mxu0 %v2360_v42 }
 0x3c3   : > { %v2455_v36 = vpop.permute.xlu1 %2454  ;;  %3972 = vmatmul.mubr.msk.f32.gmra.mxu0 %vm1715_vm9, %v3970_v44  ;;  %3975 = vmatmul.mubr.msk.f32.vlgmr.msra.gmra.mxu1 %vm1715_vm9, %v3973_v6  ;;  %v2453_v45 = vpop.permute.xlu0 %2452 }
 0x3c4   : > { %v2456_v47 = vsel %vm759_vm5, %v2453_v45, %v2455_v36  ;;  %v2457_v48 = vsel %vm759_vm5, %v2455_v36, %v2453_v45  ;;  %2345 = vmatprep.mubr.f32.mxu1 %v4673_v9  ;;  %2435 = vmatprep.mubr.f32.mxu0 %v4673_v9  ;;  %v2684_v45 = vld [vmem:[%s6434_s11 + $0x68] sm:$0xff] }
 0x3c5   : > { %2497 = vmatprep.subr.mxu1 %v2457_v48  ;;  %4279 = vmatprep.subr.mxu0 %v2702_v54  ;;  %v2699_v48 = vld [vmem:[%s6434_s11 + $0xe0] sm:$0xff] }
 0x3c6   : > { %2498 = vmatpush1.msra.mxu1 %v2456_v47  ;;  %v4001_v47 = vld [vmem:[%s6434_s11 + $0x170] sm:$0xff] }
 0x3c7   : > { %3976 = vmatmul.mubr.msk.f32.gmra.mxu1 %vm1715_vm9, %v3974_v49  ;;  %3979 = vmatmul.mubr.msk.f32.vlgmr.msra.gmra.mxu0 %vm1715_vm9, %v3977_v50 }
 0x3c8   : > { %2441 = vmatprep.mubr.f32.mxu0 %v4673_v9  ;;  %2531 = vmatprep.mubr.f32.mxu1 %v4673_v9 }
 0x3c9   : > { %4280 = vmatpush3.msra.mxu0 %v2686_v46  ;;  %4314 = vmatprep.subr.mxu1 %v4018_v56 }
 0x3ca   : > { %4281 = vmatprep.subr.mxu0 %v2701_v55 }
 0x3cb   : > { %3980 = vmatmul.mubr.msk.f32.gmra.mxu0 %vm1715_vm9, %v3978_v51  ;;  %3983 = vmatmul.mubr.msk.f32.vlgmr.msra.gmra.mxu1 %vm1715_vm9, %v3981_v52  ;;  %v4016_v52 = vld [vmem:[%s6434_s11 + $0x1e8] sm:$0xff] }
 0x3cc   : > { %2537 = vmatprep.mubr.f32.mxu1 %v4673_v9  ;;  %4315 = vmatpush3.msra.mxu1 %v4002_v58  ;;  %v4000_v58 = vld [vmem:[%s6434_s11 + $0x168] sm:$0xff] }
 0x3cd   : > { %4282 = vmatpush3.msra.mxu0 %v2685_v57  ;;  %4316 = vmatprep.subr.mxu1 %v4017_v60  ;;  %v2683_v57 = vld [vmem:[%s6434_s11 + $0x60] sm:$0xff] }
 0x3ce   : > { %4283 = vmatprep.subr.mxu0 %v2700_v59  ;;  %4317 = vmatpush3.msra.mxu1 %v4001_v47  ;;  %v2691_v47 = vld [vmem:[%s6434_s11 + $0xa0] sm:$0xff] }
 0x3cf   : > { %3984 = vmatmul.mubr.msk.f32.gmra.mxu1 %vm1715_vm9, %v3982_v53  ;;  %4284 = vmatpush3.msra.mxu0 %v2684_v45  ;;  %v3993_v45 = vld [vmem:[%s6434_s11 + $0x130] sm:$0xff] }
 0x3d0   : > { %4285 = vmatprep.subr.mxu0 %v2699_v48  ;;  %4318 = vmatprep.subr.mxu1 %v4016_v52  ;;  %v4008_v48 = vld [vmem:[%s6434_s11 + $0x1a8] sm:$0xff]  ;;  %v4007_v52 = vld [vmem:[%s6434_s11 + $0x1a0] sm:$0xff] }
 0x3d1   : > { %4286 = vmatpush3.msra.mxu0 %v2683_v57  ;;  %4319 = vmatpush3.msra.mxu1 %v4000_v58  ;;  %v4006_v57 = vld [vmem:[%s6434_s11 + $0x198] sm:$0xff]  ;;  %v2673_v58 = vld [vmem:[%s6434_s11 + $0x10] sm:$0xff] }
 0x46b   : > { %v1788_v61 = vpop.f32.mrf.mxu1 }
 0x46d   : > { %v1790_v62 = vpop.f32.mrf.mxu1 }
 0x46f   : > { %v1794_v63 = vpop.f32.mrf.mxu1  ;;  %v1871_v0 = vpop.f32.mrf.mxu0 }
 0x470   : > { %v1872_v22 = vadd.f32 %v1871_v0, %v1788_v61  ;;  %v2698_v61 = vld [vmem:[%s6434_s11 + $0xd8] sm:$0xff] }
 0x471   : > { %v1796_v1 = vpop.f32.mrf.mxu1  ;;  %v1873_v2 = vpop.f32.mrf.mxu0  ;;  %4287 = vmatprep.subr.mxu0 %v2698_v61  ;;  %v2688_v61 = vld [vmem:[%s6434_s11 + $0x88] sm:$0xff] }
 0x472   : > { %v1874_v28 = vadd.f32 %v1873_v2, %v1790_v62  ;;  %v4015_v62 = vld [vmem:[%s6434_s11 + $0x1e0] sm:$0xff] }
 0x473   : > { %v1877_v3 = vpop.f32.mrf.mxu0  ;;  %v1963_v4 = vpop.f32.mrf.mxu1  ;;  %4320 = vmatprep.subr.mxu1 %v4015_v62  ;;  %v4005_v62 = vld [vmem:[%s6434_s11 + $0x190] sm:$0xff] }
 0x474   : > { %v1878_v5 = vadd.f32 %v1877_v3, %v1794_v63  ;;  %v1974_v21 = vadd.f32 %v1963_v4, %v1872_v22  ;;  %v2682_v63 = vld [vmem:[%s6434_s11 + $0x58] sm:$0xff]  ;;  %v3999_v3 = vld [vmem:[%s6434_s11 + $0x160] sm:$0xff]  ;;  %v2697_v4 = vld [vmem:[%s6434_s11 + $0xd0] sm:$0xff] }
 0x475   : > { %v1879_v7 = vpop.f32.mrf.mxu0  ;;  %v1965_v8 = vpop.f32.mrf.mxu1  ;;  %4288 = vmatpush3.msra.mxu0 %v2682_v63  ;;  %4321 = vmatpush3.msra.mxu1 %v3999_v3  ;;  %v4012_v22 = vld [vmem:[%s6434_s11 + $0x1c8] sm:$0xff]  ;;  %v2687_v3 = vld [vmem:[%s6434_s11 + $0x80] sm:$0xff] }
 0x476   : > { %v1880_v13 = vadd.f32 %v1879_v7, %v1796_v1  ;;  %v1975_v38 = vadd.f32 %v1965_v8, %v1874_v28  ;;  %4289 = vmatprep.subr.mxu0 %v2697_v4  ;;  %v3996_v28 = vld [vmem:[%s6434_s11 + $0x148] sm:$0xff] }
 0x477   : > { %v1969_v14 = vpop.f32.mrf.mxu1  ;;  %v2059_v15 = vpop.f32.mrf.mxu0  ;;  %v2549_v63 = vld [vmem:[%s6431_s8 + $0x8] sm:$0x3] }
 0x478   : > { %v1976_v10 = vadd.f32 %v1969_v14, %v1878_v5  ;;  %v2070_v39 = vadd.f32 %v2059_v15, %v1974_v21  ;;  %v4014_v5 = vld [vmem:[%s6434_s11 + $0x1d8] sm:$0xff]  ;;  %v2681_v14 = vld [vmem:[%s6434_s11 + $0x50] sm:$0xff]  ;;  %v4004_v4 = vld [vmem:[%s6434_s11 + $0x188] sm:$0xff] }
 0x479   : > { %v1971_v16 = vpop.f32.mrf.mxu1  ;;  %v2061_v17 = vpop.f32.mrf.mxu0  ;;  %4322 = vmatprep.subr.mxu1 %v4014_v5  ;;  %v3998_v15 = vld [vmem:[%s6434_s11 + $0x158] sm:$0xff]  ;;  %4290 = vmatpush3.msra.mxu0 %v2681_v14  ;;  %v2671_v5 = vld [vmem:[%s6434_s11] sm:$0xff] }
 0x47a   : > { %v1977_v11 = vadd.f32 %v1971_v16, %v1880_v13  ;;  %v2071_v42 = vadd.f32 %v2061_v17, %v1975_v38  ;;  %v2553_v16 = vpop.permute.xlu0 %2552  ;;  %4323 = vmatpush3.msra.mxu1 %v3998_v15  ;;  %v2694_v21 = vld [vmem:[%s6434_s11 + $0xb8] sm:$0xff]  ;;  %v3987_v14 = vld [vmem:[%s6434_s11 + $0x100] sm:$0xff] }
 0x47b   : > { %v2065_v37 = vpop.f32.mrf.mxu0  ;;  %v2149_v12 = vpop.f32.mrf.mxu1  ;;  %v4082_v15 = vld [vmem:[%s6434_s11 + $0x3f8] sm:$0xff] }
 0x47c   : > { %v2072_v18 = vadd.f32 %v2065_v37, %v1976_v10  ;;  %v2160_v43 = vadd.f32 %v2149_v12, %v2070_v39  ;;  %v2696_v10 = vld [vmem:[%s6434_s11 + $0xc8] sm:$0xff]  ;;  %v3997_v12 = vld [vmem:[%s6434_s11 + $0x150] sm:$0xff]  ;;  %v3995_v39 = vld [vmem:[%s6434_s11 + $0x140] sm:$0xff] }
 0x47d   : > { %v2067_v19 = vpop.f32.mrf.mxu0  ;;  %v2151_v23 = vpop.f32.mrf.mxu1  ;;  %v2680_v37 = vld [vmem:[%s6434_s11 + $0x48] sm:$0xff]  ;;  %4291 = vmatprep.subr.mxu0 %v2696_v10 }
 0x47e   : > { %v2073_v24 = vadd.f32 %v2067_v19, %v1977_v11  ;;  %v2161_v49 = vadd.f32 %v2151_v23, %v2071_v42  ;;  %v4013_v11 = vld [vmem:[%s6434_s11 + $0x1d0] sm:$0xff]  ;;  %v2695_v23 = vld [vmem:[%s6434_s11 + $0xc0] sm:$0xff]  ;;  %4292 = vmatpush3.msra.mxu0 %v2680_v37  ;;  %v3994_v42 = vld [vmem:[%s6434_s11 + $0x138] sm:$0xff] }
 0x47f   : > { %v2155_v26 = vpop.f32.mrf.mxu1  ;;  %v2245_v27 = vpop.f32.mrf.mxu0  ;;  %4324 = vmatprep.subr.mxu1 %v4013_v11  ;;  %4293 = vmatprep.subr.mxu0 %v2695_v23 }
 0x480   : > { %v2162_v31 = vadd.f32 %v2155_v26, %v2072_v18  ;;  %v2256_v50 = vadd.f32 %v2245_v27, %v2160_v43  ;;  %4325 = vmatpush3.msra.mxu1 %v3997_v12  ;;  %v2679_v27 = vld [vmem:[%s6434_s11 + $0x40] sm:$0xff] }
 0x481   : > { %v2157_v34 = vpop.f32.mrf.mxu1  ;;  %v2247_v35 = vpop.f32.mrf.mxu0  ;;  %4326 = vmatprep.subr.mxu1 %v4012_v22  ;;  %4294 = vmatpush3.msra.mxu0 %v2679_v27 }
 0x482   : > { %v2163_v40 = vadd.f32 %v2157_v34, %v2073_v24  ;;  %v2257_v46 = vadd.f32 %v2247_v35, %v2161_v49  ;;  %4327 = vmatpush3.msra.mxu1 %v3996_v28  ;;  %v2678_v34 = vld [vmem:[%s6434_s11 + $0x38] sm:$0xff]  ;;  %4295 = vmatprep.subr.mxu0 %v2694_v21  ;;  %v2675_v49 = vld [vmem:[%s6434_s11 + $0x20] sm:$0xff] }
 0x483   : > { %v2251_v20 = vpop.f32.mrf.mxu0  ;;  %v2341_v41 = vpop.f32.mrf.mxu1  ;;  %4296 = vmatpush3.msra.mxu0 %v2678_v34 }
 0x484   : > { %v2258_v44 = vadd.f32 %v2251_v20, %v2162_v31  ;;  %v2352_v55 = vadd.f32 %v2341_v41, %v2256_v50  ;;  %v4011_v31 = vld [vmem:[%s6434_s11 + $0x1c0] sm:$0xff]  ;;  %v4010_v20 = vld [vmem:[%s6434_s11 + $0x1b8] sm:$0xff]  ;;  %v2677_v41 = vld [vmem:[%s6434_s11 + $0x30] sm:$0xff] }
 0x485   : > { %v2253_v6 = vpop.f32.mrf.mxu0  ;;  %v2343_v36 = vpop.f32.mrf.mxu1  ;;  %4328 = vmatprep.subr.mxu1 %v4011_v31  ;;  %v3992_v50 = vld [vmem:[%s6434_s11 + $0x128] sm:$0xff] }
 0x486   : > { %v2259_v51 = vadd.f32 %v2253_v6, %v2163_v40  ;;  %v2353_v0 = vadd.f32 %v2343_v36, %v2257_v46  ;;  %v2693_v40 = vld [vmem:[%s6434_s11 + $0xb0] sm:$0xff]  ;;  %4329 = vmatpush3.msra.mxu1 %v3995_v39  ;;  %v2676_v36 = vld [vmem:[%s6434_s11 + $0x28] sm:$0xff]  ;;  %v2624_v46 = vld [vmem:[%s6432_s9] sm:$0xff] }
 0x487   : > { %v2347_v53 = vpop.f32.mrf.mxu1  ;;  %v2437_v54 = vpop.f32.mrf.mxu0  ;;  %4297 = vmatprep.subr.mxu0 %v2693_v40  ;;  %4330 = vmatprep.subr.mxu1 %v4010_v20  ;;  %v4009_v6 = vld [vmem:[%s6434_s11 + $0x1b0] sm:$0xff] }
 0x488   : > { %v5357_v56 = vadd.f32 %v2347_v53, %v2258_v44  ;;  %v2448_v1 = vadd.f32 %v2437_v54, %v2352_v55  ;;  %v2692_v44 = vld [vmem:[%s6434_s11 + $0xa8] sm:$0xff]  ;;  %4298 = vmatpush3.msra.mxu0 %v2677_v41  ;;  %4331 = vmatpush3.msra.mxu1 %v3994_v42  ;;  %v2674_v53 = vld [vmem:[%s6434_s11 + $0x18] sm:$0xff]  ;;  %v3991_v54 = vld [vmem:[%s6434_s11 + $0x120] sm:$0xff] }
 0x489   : > { %v2349_v59 = vpop.f32.mrf.mxu1  ;;  %v2439_v60 = vpop.f32.mrf.mxu0  ;;  %4299 = vmatprep.subr.mxu0 %v2692_v44  ;;  %4332 = vmatprep.subr.mxu1 %v4009_v6  ;;  %v2689_v55 = vld [vmem:[%s6434_s11 + $0x90] sm:$0xff] }
 0x48a   : > { %v5374_v2 = vadd.f32 %v2349_v59, %v2259_v51  ;;  %v2449_v8 = vadd.f32 %v2439_v60, %v2353_v0  ;;  %4300 = vmatpush3.msra.mxu0 %v2676_v36  ;;  %4333 = vmatpush3.msra.mxu1 %v3993_v45  ;;  %v2690_v51 = vld [vmem:[%s6434_s11 + $0x98] sm:$0xff]  ;;  %v2640_v59 = vld [vmem:[%s6433_s10] sm:$0xff]  ;;  %v2672_v0 = vld [vmem:[%s6434_s11 + $0x8] sm:$0xff] }
 0x48b   : > { %v2533_v7 = vpop.f32.mrf.mxu1  ;;  %4301 = vmatprep.subr.mxu0 %v2691_v47  ;;  %4334 = vmatprep.subr.mxu1 %v4008_v48  ;;  %v3990_v60 = vld [vmem:[%s6434_s11 + $0x118] sm:$0xff]  ;;  %v2443_v23 = vpop.f32.mrf.mxu0 }
 0x48c   : > { %v2544_v13 = vadd.f32 %v2533_v7, %v2448_v1  ;;  %4302 = vmatpush3.msra.mxu0 %v2675_v49  ;;  %4335 = vmatpush3.msra.mxu1 %v3992_v50  ;;  %v3989_v1 = vld [vmem:[%s6434_s11 + $0x110] sm:$0xff]  ;;  %v3988_v7 = vld [vmem:[%s6434_s11 + $0x108] sm:$0xff]  ;;  %v2450_v29 = vadd.f32 %v2443_v23, %v5357_v56 }
 0x48d   : > { %v2535_v17 = vpop.f32.mrf.mxu1  ;;  %4303 = vmatprep.subr.mxu0 %v2690_v51  ;;  %4336 = vmatprep.subr.mxu1 %v4007_v52  ;;  %v2445_v39 = vpop.f32.mrf.mxu0  ;;  %v4034_v51 = vld [vmem:[%s6434_s11 + $0x278] sm:$0xff]  ;;  %v4049_v52 = vld [vmem:[%s6434_s11 + $0x2f0] sm:$0xff] }
 0x48e   : > { %v2560_v18 = vadd.f32 %v2553_v16, %v2544_v13  ;;  %v2545_v19 = vadd.f32 %v2535_v17, %v2449_v8  ;;  %4304 = vmatpush3.msra.mxu0 %v2674_v53  ;;  %4337 = vmatpush3.msra.mxu1 %v3991_v54  ;;  %v4050_v8 = vld [vmem:[%s6434_s11 + $0x2f8] sm:$0xff]  ;;  %v4003_v13 = vld [vmem:[%s6434_s11 + $0x180] sm:$0xff]  ;;  %v2451_v30 = vadd.f32 %v2445_v39, %v5374_v2  ;;  %v4061_v23 = vld [vmem:[%s6434_s11 + $0x350] sm:$0xff] }
 0x48f   : > { %4305 = vmatprep.subr.mxu0 %v2689_v55  ;;  %4338 = vmatprep.subr.mxu1 %v4006_v57  ;;  %v2539_v31 = vpop.f32.mrf.mxu1  ;;  %v4059_v39 = vld [vmem:[%s6434_s11 + $0x340] sm:$0xff] }
 0x490   : > { %v2568_v24 = vmul.f32 0.01, %v2560_v18  ;;  %v2561_v26 = vadd.f32 %v2553_v16, %v2545_v19  ;;  %vm2564_vm4 = vcmp.gt.f32.partialorder %v2560_v18, 0.0  ;;  %4306 = vmatpush3.msra.mxu0 %v2673_v58  ;;  %4339 = vmatpush3.msra.mxu1 %v3990_v60  ;;  %v4033_v58 = vld [vmem:[%s6434_s11 + $0x270] sm:$0xff] }
 0x491   : > { %4307 = vmatprep.subr.mxu0 %v2688_v61  ;;  %4340 = vmatprep.subr.mxu1 %v4005_v62  ;;  %v2541_v41 = vpop.f32.mrf.mxu1  ;;  %v4048_v62 = vld [vmem:[%s6434_s11 + $0x2e8] sm:$0xff] }
 0x492   : > { %v2569_v35 = vmul.f32 0.01, %v2561_v26  ;;  %v5424_v38 = vsel %vm2564_vm4, %v2560_v18, %v2568_v24  ;;  %vm2565_vm8 = vcmp.gt.f32.partialorder %v2561_v26, 0.0  ;;  %4308 = vmatpush3.msra.mxu0 %v2672_v0  ;;  %4341 = vmatpush3.msra.mxu1 %v3989_v1  ;;  %v2547_v36 = vadd.f32 %v2541_v41, %v2451_v30  ;;  %v4032_v1 = vld [vmem:[%s6434_s11 + $0x268] sm:$0xff]  ;;  %v4025_v41 = vld [vmem:[%s6434_s11 + $0x230] sm:$0xff] }
 0x493   : > { %2576 = vrot.lane.b32.xlu1 %v5424_v38, %s4678_s25  ;;  %4309 = vmatprep.subr.mxu0 %v2687_v3  ;;  %v4065_v3 = vld [vmem:[%s6434_s11 + $0x370] sm:$0xff] }
 0x494   : > { %v5443_v43 = vsel %vm2565_vm8, %v2561_v26, %v2569_v35  ;;  %4342 = vmatprep.subr.mxu1 %v4004_v4  ;;  %4310 = vmatpush3.msra.mxu0 %v2671_v5  ;;  %v4047_v4 = vld [vmem:[%s6434_s11 + $0x2e0] sm:$0xff]  ;;  %v4080_v5 = vld [vmem:[%s6434_s11 + $0x3e8] sm:$0xff]  ;;  %v4073_v30 = vld [vmem:[%s6434_s11 + $0x3b0] sm:$0xff] }
 0x495   : > { %2580 = vrot.lane.b32.xlu0 %v5443_v43, %s4678_s25  ;;  %4343 = vmatpush3.msra.mxu1 %v3988_v7  ;;  %v4031_v7 = vld [vmem:[%s6434_s11 + $0x260] sm:$0xff] }
 0x496   : > { %4349 = vmatprep.subr.mxu0 %v4050_v8  ;;  %4344 = vmatprep.subr.mxu1 %v4003_v13  ;;  %v4064_v8 = vld [vmem:[%s6434_s11 + $0x368] sm:$0xff]  ;;  %v4046_v13 = vld [vmem:[%s6434_s11 + $0x2d8] sm:$0xff] }
 0x497   : > { %2592 = vrot.lane.b32.xlu1 %v5424_v38, %s4680_s22  ;;  %4345 = vmatpush3.msra.mxu1 %v3987_v14  ;;  %v4079_v14 = vld [vmem:[%s6434_s11 + $0x3e0] sm:$0xff] }
 0x498   : > { %4384 = vmatprep.subr.mxu1 %v4082_v15  ;;  %v4030_v15 = vld [vmem:[%s6434_s11 + $0x258] sm:$0xff] }
 0x499   : > { %2596 = vrot.lane.b32.xlu0 %v5443_v43, %s4680_s22 }
 0x49b   : > { %2604 = vrot.lane.b32.xlu1 %v5424_v38, %s4681_s23 }
 0x49d   : > { %2608 = vrot.lane.b32.xlu0 %v5443_v43, %s4681_s23 }
 0x49f   : > { %2628 = vperm.xlu1 %4658, %v2624_v46  }
 0x4a1   : > { %2644 = vperm.xlu0 %4659, %v2640_v59   ;;  %v4066_v59 = vld [vmem:[%s6434_s11 + $0x378] sm:$0xff] }
 0x4a3   : > { %2557 = vperm.xlu1 %4658, %v2549_v63   ;;  %v4081_v63 = vld [vmem:[%s6434_s11 + $0x3f0] sm:$0xff] }
 0x505   : > { %v2577_v10 = vpop.permute.xlu1 %2576 }
 0x507   : > { %v2581_v16 = vpop.permute.xlu0 %2580 }
 0x508   : > { %v2584_v22 = vsel %vm659_vm0, %v2577_v10, %v2581_v16  ;;  %v2586_v24 = vsel %vm659_vm0, %v2581_v16, %v2577_v10  ;;  %v4063_v10 = vld [vmem:[%s6434_s11 + $0x360] sm:$0xff]  ;;  %v4045_v16 = vld [vmem:[%s6434_s11 + $0x2d0] sm:$0xff] }
 0x509   : > { %v2593_v17 = vpop.permute.xlu1 %2592  ;;  %v2588_v34 = vmax.f32 %v5424_v38, %v2584_v22  ;;  %v2589_v35 = vmax.f32 %v5443_v43, %v2586_v24  ;;  %v2546_v43 = vadd.f32 %v2539_v31, %v2450_v29  ;;  %v4043_v22 = vld [vmem:[%s6434_s11 + $0x2c0] sm:$0xff]  ;;  %v4076_v24 = vld [vmem:[%s6434_s11 + $0x3c8] sm:$0xff]  ;;  %v4042_v31 = vld [vmem:[%s6434_s11 + $0x2b8] sm:$0xff] }
 0x50a   : > { %v4040_v29 = vld [vmem:[%s6434_s11 + $0x2a8] sm:$0xff] }
 0x50b   : > { %v2597_v11 = vpop.permute.xlu0 %2596 }
 0x50c   : > { %v2600_v26 = vsel %vm727_vm3, %v2593_v17, %v2597_v11  ;;  %v2602_v27 = vsel %vm727_vm3, %v2597_v11, %v2593_v17  ;;  %v4078_v17 = vld [vmem:[%s6434_s11 + $0x3d8] sm:$0xff]  ;;  %v4029_v11 = vld [vmem:[%s6434_s11 + $0x250] sm:$0xff] }
 0x50d   : > { %v2605_v12 = vpop.permute.xlu1 %2604 }
 0x50f   : > { %v2609_v37 = vpop.permute.xlu0 %2608 }
 0x510   : > { %v2612_v18 = vsel %vm759_vm5, %v2605_v12, %v2609_v37  ;;  %v2614_v19 = vsel %vm759_vm5, %v2609_v37, %v2605_v12  ;;  %v4062_v37 = vld [vmem:[%s6434_s11 + $0x358] sm:$0xff]  ;;  %v4044_v12 = vld [vmem:[%s6434_s11 + $0x2c8] sm:$0xff] }
 0x511   : > { %v2616_v28 = vmax.f32 %v2600_v26, %v2612_v18  ;;  %v2617_v21 = vmax.f32 %v2602_v27, %v2614_v19  ;;  %v4077_v18 = vld [vmem:[%s6434_s11 + $0x3d0] sm:$0xff]  ;;  %v4028_v19 = vld [vmem:[%s6434_s11 + $0x248] sm:$0xff]  ;;  %v4027_v26 = vld [vmem:[%s6434_s11 + $0x240] sm:$0xff] }
 0x512   : > { %v4060_v27 = vld [vmem:[%s6434_s11 + $0x348] sm:$0xff] }
 0x513   : > { %v2620_v40 = vmax.f32 %v2588_v34, %v2616_v28  ;;  %v2621_v20 = vmax.f32 %v2589_v35, %v2617_v21  ;;  %v2641_v28 = vld [vmem:[%s6433_s10 + $0x8] sm:$0x3]  ;;  %v4075_v34 = vld [vmem:[%s6434_s11 + $0x3c0] sm:$0xff]  ;;  %v4026_v35 = vld [vmem:[%s6434_s11 + $0x238] sm:$0xff] }
 0x514   : > { %v2625_v21 = vld [vmem:[%s6432_s9 + $0x8] sm:$0x3] }
 0x51a   : > { %v2629_v42 = vpop.permute.xlu1 %2628 }
 0x51b   : > { %v2636_v44 = vmul.f32 %v2629_v42, %v2620_v40  ;;  %v2637_v6 = vmul.f32 %v2629_v42, %v2621_v20  ;;  %v4041_v40 = vld [vmem:[%s6434_s11 + $0x2b0] sm:$0xff]  ;;  %v4074_v20 = vld [vmem:[%s6434_s11 + $0x3b8] sm:$0xff] }
 0x51c   : > { %v2645_v38 = vpop.permute.xlu0 %2644  ;;  %v4058_v42 = vld [vmem:[%s6434_s11 + $0x338] sm:$0xff] }
 0x51d   : > { %v2652_v45 = vadd.f32 %v2645_v38, %v2636_v44  ;;  %v2653_v47 = vadd.f32 %v2645_v38, %v2637_v6  ;;  %v4024_v44 = vld [vmem:[%s6434_s11 + $0x228] sm:$0xff]  ;;  %v4057_v6 = vld [vmem:[%s6434_s11 + $0x330] sm:$0xff]  ;;  %v4039_v38 = vld [vmem:[%s6434_s11 + $0x2a0] sm:$0xff] }
 0x51e   : > { %v2558_v48 = vpop.permute.xlu1 %2557 }
 0x51f   : > { %v5575_v49 = vmul.f32 %v5569_v32, %v2652_v45  ;;  %v5578_v56 = vmul.f32 %v5572_v33, %v2653_v47  ;;  %v2562_v2 = vadd.f32 %v2558_v48, %v2546_v43  ;;  %v2563_v50 = vadd.f32 %v2558_v48, %v2547_v36  ;;  %v4072_v43 = vld [vmem:[%s6434_s11 + $0x3a8] sm:$0xff]  ;;  %v4023_v36 = vld [vmem:[%s6434_s11 + $0x220] sm:$0xff]  ;;  %v4038_v47 = vld [vmem:[%s6434_s11 + $0x298] sm:$0xff] }
 0x520   : > { %v4056_v45 = vld [vmem:[%s6434_s11 + $0x328] sm:$0xff]  ;;  %v4071_v48 = vld [vmem:[%s6434_s11 + $0x3a0] sm:$0xff] }
 0x521   : > { %v2570_v53 = vmul.f32 0.01, %v2562_v2  ;;  %v2571_v54 = vmul.f32 0.01, %v2563_v50  ;;  %2767 = vmatprep.mubr.f32.mxu0 %v5578_v56  ;;  %v2810_v46 = vrot.slane %v5578_v56, 1  ;;  %v2918_v55 = vrot.slane %v5578_v56, 2 }
 0x522   : > { %2768 = vmatmul.mubr.f32.vlgmr.msra.gmra.mxu0 %v5575_v49  ;;  %v2809_v57 = vrot.slane %v5575_v49, 1  ;;  %vm2567_vm14 = vcmp.gt.f32.partialorder %v2563_v50, 0.0  ;;  %vm2566_vm15 = vcmp.gt.f32.partialorder %v2562_v2, 0.0  ;;  %v3026_v0 = vrot.slane %v5578_v56, 3 }
 0x523   : > { %4350 = vmatpush3.msra.mxu0 %v4034_v51  ;;  %2877 = vmatprep.mubr.f32.mxu1 %v2810_v46  ;;  %v5597_v60 = vsel %vm2567_vm14, %v2563_v50, %v2571_v54  ;;  %v5599_v61 = vsel %vm2566_vm15, %v2562_v2, %v2570_v53  ;;  %v4022_v2 = vld [vmem:[%s6434_s11 + $0x218] sm:$0xff]  ;;  %v4055_v50 = vld [vmem:[%s6434_s11 + $0x320] sm:$0xff]  ;;  %v4037_v51 = vld [vmem:[%s6434_s11 + $0x290] sm:$0xff] }
 0x524   : > { %4351 = vmatprep.subr.mxu0 %v4049_v52  ;;  %2985 = vmatprep.mubr.f32.mxu0 %v2918_v55  ;;  %v4070_v52 = vld [vmem:[%s6434_s11 + $0x398] sm:$0xff]  ;;  %v4021_v53 = vld [vmem:[%s6434_s11 + $0x210] sm:$0xff]  ;;  %v4036_v46 = vld [vmem:[%s6434_s11 + $0x288] sm:$0xff] }
 0x525   : > { %2878 = vmatmul.mubr.f32.vlgmr.msra.gmra.mxu1 %v2809_v57  ;;  %4352 = vmatpush3.msra.mxu0 %v4033_v58  ;;  %v4054_v54 = vld [vmem:[%s6434_s11 + $0x318] sm:$0xff]  ;;  %v4069_v55 = vld [vmem:[%s6434_s11 + $0x390] sm:$0xff]  ;;  %v4020_v57 = vld [vmem:[%s6434_s11 + $0x208] sm:$0xff] }
 0x526   : > { %4385 = vmatpush3.msra.mxu1 %v4066_v59  ;;  %2582 = vrot.lane.b32.xlu1 %v5597_v60, %s4678_s25  ;;  %v4053_v58 = vld [vmem:[%s6434_s11 + $0x310] sm:$0xff]  ;;  %v4035_v59 = vld [vmem:[%s6434_s11 + $0x280] sm:$0xff] }
 0x527   : > { %2578 = vrot.lane.b32.xlu0 %v5599_v61, %s4678_s25  ;;  %4353 = vmatprep.subr.mxu0 %v4048_v62  ;;  %v4068_v62 = vld [vmem:[%s6434_s11 + $0x388] sm:$0xff] }
 0x528   : > { %4386 = vmatprep.subr.mxu1 %v4081_v63  ;;  %3093 = vmatprep.mubr.f32.mxu1 %v3026_v0  ;;  %v4019_v63 = vld [vmem:[%s6434_s11 + $0x200] sm:$0xff]  ;;  %v4052_v0 = vld [vmem:[%s6434_s11 + $0x308] sm:$0xff] }
 0x529   : > { %4354 = vmatpush3.msra.mxu0 %v4032_v1  ;;  %4387 = vmatpush3.msra.mxu1 %v4065_v3  ;;  %v4067_v1 = vld [vmem:[%s6434_s11 + $0x380] sm:$0xff]  ;;  %v2917_v3 = vrot.slane %v5575_v49, 2 }
 0x52a   : > { %4355 = vmatprep.subr.mxu0 %v4047_v4  ;;  %4388 = vmatprep.subr.mxu1 %v4080_v5  ;;  %v4114_v4 = vld [vmem:[%s6434_s11 + $0x4f8] sm:$0xff]  ;;  %v4051_v5 = vld [vmem:[%s6434_s11 + $0x300] sm:$0xff] }
 0x52b   : > { %4356 = vmatpush3.msra.mxu0 %v4031_v7  ;;  %4389 = vmatpush3.msra.mxu1 %v4064_v8  ;;  %v4098_v7 = vld [vmem:[%s6434_s11 + $0x478] sm:$0xff]  ;;  %v3134_v8 = vrot.slane %v5578_v56, 4 }
 0x52c   : > { %2598 = vrot.lane.b32.xlu1 %v5597_v60, %s4680_s22  ;;  %2594 = vrot.lane.b32.xlu0 %v5599_v61, %s4680_s22 }
 0x52d   : > { %4357 = vmatprep.subr.mxu0 %v4046_v13  ;;  %4390 = vmatprep.subr.mxu1 %v4079_v14  ;;  %v4113_v13 = vld [vmem:[%s6434_s11 + $0x4f0] sm:$0xff]  ;;  %v3025_v14 = vrot.slane %v5575_v49, 3 }
 0x52e   : > { %4358 = vmatpush3.msra.mxu0 %v4030_v15  ;;  %4391 = vmatpush3.msra.mxu1 %v4063_v10  ;;  %v4146_v15 = vld [vmem:[%s6434_s11 + $0x5f8] sm:$0xff]  ;;  %v4097_v10 = vld [vmem:[%s6434_s11 + $0x470] sm:$0xff] }
 0x52f   : > { %4359 = vmatprep.subr.mxu0 %v4045_v16  ;;  %4392 = vmatprep.subr.mxu1 %v4078_v17  ;;  %v4130_v16 = vld [vmem:[%s6434_s11 + $0x578] sm:$0xff]  ;;  %v3242_v17 = vrot.slane %v5578_v56, 5 }
 0x530   : > { %4360 = vmatpush3.msra.mxu0 %v4029_v11  ;;  %4393 = vmatpush3.msra.mxu1 %v4062_v37  ;;  %v4112_v11 = vld [vmem:[%s6434_s11 + $0x4e8] sm:$0xff]  ;;  %v4145_v37 = vld [vmem:[%s6434_s11 + $0x5f0] sm:$0xff] }
 0x531   : > { %2610 = vrot.lane.b32.xlu1 %v5597_v60, %s4681_s23  ;;  %2606 = vrot.lane.b32.xlu0 %v5599_v61, %s4681_s23 }
 0x532   : > { %4361 = vmatprep.subr.mxu0 %v4044_v12  ;;  %4394 = vmatprep.subr.mxu1 %v4077_v18  ;;  %v4096_v12 = vld [vmem:[%s6434_s11 + $0x468] sm:$0xff]  ;;  %v4129_v18 = vld [vmem:[%s6434_s11 + $0x570] sm:$0xff] }
 0x533   : > { %4362 = vmatpush3.msra.mxu0 %v4028_v19  ;;  %4395 = vmatpush3.msra.mxu1 %v4061_v23  ;;  %v4111_v19 = vld [vmem:[%s6434_s11 + $0x4e0] sm:$0xff]  ;;  %v4144_v23 = vld [vmem:[%s6434_s11 + $0x5e8] sm:$0xff] }
 0x534   : > { %4363 = vmatprep.subr.mxu0 %v4043_v22  ;;  %4396 = vmatprep.subr.mxu1 %v4076_v24  ;;  %v4095_v22 = vld [vmem:[%s6434_s11 + $0x460] sm:$0xff]  ;;  %v4128_v24 = vld [vmem:[%s6434_s11 + $0x568] sm:$0xff] }
 0x535   : > { %4364 = vmatpush3.msra.mxu0 %v4027_v26  ;;  %4397 = vmatpush3.msra.mxu1 %v4060_v27  ;;  %v4110_v26 = vld [vmem:[%s6434_s11 + $0x4d8] sm:$0xff]  ;;  %v4143_v27 = vld [vmem:[%s6434_s11 + $0x5e0] sm:$0xff] }
 0x536   : > { %2649 = vperm.xlu1 %4658, %v2641_v28   ;;  %2633 = vperm.xlu0 %4659, %v2625_v21   ;;  %v4094_v28 = vld [vmem:[%s6434_s11 + $0x458] sm:$0xff]  ;;  %v4127_v21 = vld [vmem:[%s6434_s11 + $0x560] sm:$0xff] }
 0x537   : > { %4365 = vmatprep.subr.mxu0 %v4042_v31  ;;  %4398 = vmatprep.subr.mxu1 %v4075_v34  ;;  %v4109_v31 = vld [vmem:[%s6434_s11 + $0x4d0] sm:$0xff]  ;;  %v4142_v34 = vld [vmem:[%s6434_s11 + $0x5d8] sm:$0xff] }
 0x538   : > { %4366 = vmatpush3.msra.mxu0 %v4026_v35  ;;  %4399 = vmatpush3.msra.mxu1 %v4059_v39  ;;  %v4093_v35 = vld [vmem:[%s6434_s11 + $0x450] sm:$0xff]  ;;  %v4126_v39 = vld [vmem:[%s6434_s11 + $0x558] sm:$0xff] }
 0x539   : > { %4367 = vmatprep.subr.mxu0 %v4041_v40  ;;  %4400 = vmatprep.subr.mxu1 %v4074_v20  ;;  %v4108_v40 = vld [vmem:[%s6434_s11 + $0x4c8] sm:$0xff]  ;;  %v4141_v20 = vld [vmem:[%s6434_s11 + $0x5d0] sm:$0xff] }
 0x53a   : > { %4368 = vmatpush3.msra.mxu0 %v4025_v41  ;;  %4401 = vmatpush3.msra.mxu1 %v4058_v42  ;;  %v4092_v41 = vld [vmem:[%s6434_s11 + $0x448] sm:$0xff]  ;;  %v4125_v42 = vld [vmem:[%s6434_s11 + $0x550] sm:$0xff] }
 0x53b   : > { %4369 = vmatprep.subr.mxu0 %v4040_v29  ;;  %4402 = vmatprep.subr.mxu1 %v4073_v30  ;;  %v4107_v29 = vld [vmem:[%s6434_s11 + $0x4c0] sm:$0xff]  ;;  %v4140_v30 = vld [vmem:[%s6434_s11 + $0x5c8] sm:$0xff] }
 0x53c   : > { %4370 = vmatpush3.msra.mxu0 %v4024_v44  ;;  %4403 = vmatpush3.msra.mxu1 %v4057_v6  ;;  %v4091_v44 = vld [vmem:[%s6434_s11 + $0x440] sm:$0xff]  ;;  %v4124_v6 = vld [vmem:[%s6434_s11 + $0x548] sm:$0xff] }
 0x53d   : > { %4371 = vmatprep.subr.mxu0 %v4039_v38  ;;  %4404 = vmatprep.subr.mxu1 %v4072_v43  ;;  %v4106_v38 = vld [vmem:[%s6434_s11 + $0x4b8] sm:$0xff]  ;;  %v4139_v43 = vld [vmem:[%s6434_s11 + $0x5c0] sm:$0xff] }
 0x53e   : > { %4372 = vmatpush3.msra.mxu0 %v4023_v36  ;;  %4405 = vmatpush3.msra.mxu1 %v4056_v45  ;;  %v4090_v36 = vld [vmem:[%s6434_s11 + $0x438] sm:$0xff]  ;;  %v4123_v45 = vld [vmem:[%s6434_s11 + $0x540] sm:$0xff] }
 0x53f   : > { %4373 = vmatprep.subr.mxu0 %v4038_v47  ;;  %4406 = vmatprep.subr.mxu1 %v4071_v48  ;;  %v4105_v47 = vld [vmem:[%s6434_s11 + $0x4b0] sm:$0xff]  ;;  %v4138_v48 = vld [vmem:[%s6434_s11 + $0x5b8] sm:$0xff] }
 0x540   : > { %4374 = vmatpush3.msra.mxu0 %v4022_v2  ;;  %4407 = vmatpush3.msra.mxu1 %v4055_v50  ;;  %v4089_v2 = vld [vmem:[%s6434_s11 + $0x430] sm:$0xff]  ;;  %v4122_v50 = vld [vmem:[%s6434_s11 + $0x538] sm:$0xff] }
 0x541   : > { %4375 = vmatprep.subr.mxu0 %v4037_v51  ;;  %4408 = vmatprep.subr.mxu1 %v4070_v52  ;;  %v4104_v51 = vld [vmem:[%s6434_s11 + $0x4a8] sm:$0xff]  ;;  %v4137_v52 = vld [vmem:[%s6434_s11 + $0x5b0] sm:$0xff] }
 0x542   : > { %4376 = vmatpush3.msra.mxu0 %v4021_v53  ;;  %4409 = vmatpush3.msra.mxu1 %v4054_v54  ;;  %v4088_v53 = vld [vmem:[%s6434_s11 + $0x428] sm:$0xff]  ;;  %v4121_v54 = vld [vmem:[%s6434_s11 + $0x530] sm:$0xff] }
 0x543   : > { %4377 = vmatprep.subr.mxu0 %v4036_v46  ;;  %4410 = vmatprep.subr.mxu1 %v4069_v55  ;;  %v4103_v46 = vld [vmem:[%s6434_s11 + $0x4a0] sm:$0xff]  ;;  %v4136_v55 = vld [vmem:[%s6434_s11 + $0x5a8] sm:$0xff] }
 0x544   : > { %4378 = vmatpush3.msra.mxu0 %v4020_v57  ;;  %4411 = vmatpush3.msra.mxu1 %v4053_v58  ;;  %v4087_v57 = vld [vmem:[%s6434_s11 + $0x420] sm:$0xff]  ;;  %v4120_v58 = vld [vmem:[%s6434_s11 + $0x528] sm:$0xff] }
 0x545   : > { %4379 = vmatprep.subr.mxu0 %v4035_v59  ;;  %4412 = vmatprep.subr.mxu1 %v4068_v62  ;;  %v4102_v59 = vld [vmem:[%s6434_s11 + $0x498] sm:$0xff]  ;;  %v4135_v62 = vld [vmem:[%s6434_s11 + $0x5a0] sm:$0xff] }
 0x546   : > { %4380 = vmatpush3.msra.mxu0 %v4019_v63  ;;  %4413 = vmatpush3.msra.mxu1 %v4052_v0  ;;  %v4086_v63 = vld [vmem:[%s6434_s11 + $0x418] sm:$0xff]  ;;  %v4119_v0 = vld [vmem:[%s6434_s11 + $0x520] sm:$0xff] }
 0x547   : > { %2986 = vmatmul.mubr.f32.vlgmr.msra.gmra.mxu0 %v2917_v3  ;;  %4414 = vmatprep.subr.mxu1 %v4067_v1  ;;  %v4101_v1 = vld [vmem:[%s6434_s11 + $0x490] sm:$0xff]  ;;  %v4134_v3 = vld [vmem:[%s6434_s11 + $0x598] sm:$0xff] }
 0x548   : > { %4419 = vmatprep.subr.mxu0 %v4114_v4  ;;  %4415 = vmatpush3.msra.mxu1 %v4051_v5  ;;  %v4085_v4 = vld [vmem:[%s6434_s11 + $0x410] sm:$0xff]  ;;  %v4118_v5 = vld [vmem:[%s6434_s11 + $0x518] sm:$0xff] }
 0x549   : > { %4420 = vmatpush3.msra.mxu0 %v4098_v7  ;;  %3201 = vmatprep.mubr.f32.mxu0 %v3134_v8  ;;  %v4100_v7 = vld [vmem:[%s6434_s11 + $0x488] sm:$0xff]  ;;  %v4133_v8 = vld [vmem:[%s6434_s11 + $0x590] sm:$0xff] }
 0x54a   : > { %3094 = vmatmul.mubr.f32.vlgmr.msra.gmra.mxu1 %v3025_v14  ;;  %4421 = vmatprep.subr.mxu0 %v4113_v13  ;;  %v4084_v13 = vld [vmem:[%s6434_s11 + $0x408] sm:$0xff]  ;;  %v4117_v14 = vld [vmem:[%s6434_s11 + $0x510] sm:$0xff] }
 0x54b   : > { %4454 = vmatprep.subr.mxu1 %v4146_v15  ;;  %4422 = vmatpush3.msra.mxu0 %v4097_v10  ;;  %v4099_v15 = vld [vmem:[%s6434_s11 + $0x480] sm:$0xff]  ;;  %v4132_v10 = vld [vmem:[%s6434_s11 + $0x588] sm:$0xff] }
 0x54c   : > { %4455 = vmatpush3.msra.mxu1 %v4130_v16  ;;  %3309 = vmatprep.mubr.f32.mxu1 %v3242_v17  ;;  %v4083_v16 = vld [vmem:[%s6434_s11 + $0x400] sm:$0xff]  ;;  %v4116_v17 = vld [vmem:[%s6434_s11 + $0x508] sm:$0xff] }
 0x54d   : > { %4423 = vmatprep.subr.mxu0 %v4112_v11  ;;  %4456 = vmatprep.subr.mxu1 %v4145_v37  ;;  %v4131_v11 = vld [vmem:[%s6434_s11 + $0x580] sm:$0xff]  ;;  %v3133_v37 = vrot.slane %v5575_v49, 4 }
 0x54e   : > { %4424 = vmatpush3.msra.mxu0 %v4096_v12  ;;  %4457 = vmatpush3.msra.mxu1 %v4129_v18  ;;  %v4178_v12 = vld [vmem:[%s6434_s11 + $0x6f8] sm:$0xff]  ;;  %v4115_v18 = vld [vmem:[%s6434_s11 + $0x500] sm:$0xff] }
 0x54f   : > { %4425 = vmatprep.subr.mxu0 %v4111_v19  ;;  %4458 = vmatprep.subr.mxu1 %v4144_v23  ;;  %v4162_v19 = vld [vmem:[%s6434_s11 + $0x678] sm:$0xff]  ;;  %v3350_v23 = vrot.slane %v5578_v56, 6 }
 0x550   : > { %4426 = vmatpush3.msra.mxu0 %v4095_v22  ;;  %4459 = vmatpush3.msra.mxu1 %v4128_v24  ;;  %v4177_v22 = vld [vmem:[%s6434_s11 + $0x6f0] sm:$0xff]  ;;  %v3241_v24 = vrot.slane %v5575_v49, 5 }
 0x551   : > { %4427 = vmatprep.subr.mxu0 %v4110_v26  ;;  %4460 = vmatprep.subr.mxu1 %v4143_v27  ;;  %v4210_v26 = vld [vmem:[%s6434_s11 + $0x7f8] sm:$0xff]  ;;  %v4161_v27 = vld [vmem:[%s6434_s11 + $0x670] sm:$0xff] }
 0x552   : > { %4428 = vmatpush3.msra.mxu0 %v4094_v28  ;;  %4461 = vmatpush3.msra.mxu1 %v4127_v21  ;;  %v4194_v28 = vld [vmem:[%s6434_s11 + $0x778] sm:$0xff]  ;;  %v3458_v21 = vrot.slane %v5578_v56, 7  ;;  %v4175_v56 = vld [vmem:[%s6434_s11 + $0x6e0] sm:$0xff] }
 0x553   : > { %4429 = vmatprep.subr.mxu0 %v4109_v31  ;;  %4462 = vmatprep.subr.mxu1 %v4142_v34  ;;  %v4176_v31 = vld [vmem:[%s6434_s11 + $0x6e8] sm:$0xff]  ;;  %v4209_v34 = vld [vmem:[%s6434_s11 + $0x7f0] sm:$0xff] }
 0x554   : > { %4430 = vmatpush3.msra.mxu0 %v4093_v35  ;;  %4463 = vmatpush3.msra.mxu1 %v4126_v39  ;;  %v4160_v35 = vld [vmem:[%s6434_s11 + $0x668] sm:$0xff]  ;;  %v4193_v39 = vld [vmem:[%s6434_s11 + $0x770] sm:$0xff] }
 0x555   : > { %4431 = vmatprep.subr.mxu0 %v4108_v40  ;;  %4464 = vmatprep.subr.mxu1 %v4141_v20  ;;  %v4208_v40 = vld [vmem:[%s6434_s11 + $0x7e8] sm:$0xff]  ;;  %v4159_v20 = vld [vmem:[%s6434_s11 + $0x660] sm:$0xff] }
 0x556   : > { %4432 = vmatpush3.msra.mxu0 %v4092_v41  ;;  %4465 = vmatpush3.msra.mxu1 %v4125_v42  ;;  %v4192_v41 = vld [vmem:[%s6434_s11 + $0x768] sm:$0xff]  ;;  %v4174_v42 = vld [vmem:[%s6434_s11 + $0x6d8] sm:$0xff] }
 0x557   : > { %4433 = vmatprep.subr.mxu0 %v4107_v29  ;;  %4466 = vmatprep.subr.mxu1 %v4140_v30  ;;  %v4207_v29 = vld [vmem:[%s6434_s11 + $0x7e0] sm:$0xff]  ;;  %v4158_v30 = vld [vmem:[%s6434_s11 + $0x658] sm:$0xff] }
 0x558   : > { %4434 = vmatpush3.msra.mxu0 %v4091_v44  ;;  %4467 = vmatpush3.msra.mxu1 %v4124_v6  ;;  %v4191_v44 = vld [vmem:[%s6434_s11 + $0x760] sm:$0xff]  ;;  %v4173_v6 = vld [vmem:[%s6434_s11 + $0x6d0] sm:$0xff] }
 0x559   : > { %4435 = vmatprep.subr.mxu0 %v4106_v38  ;;  %4468 = vmatprep.subr.mxu1 %v4139_v43  ;;  %v4206_v38 = vld [vmem:[%s6434_s11 + $0x7d8] sm:$0xff]  ;;  %v4157_v43 = vld [vmem:[%s6434_s11 + $0x650] sm:$0xff] }
 0x55a   : > { %4436 = vmatpush3.msra.mxu0 %v4090_v36  ;;  %4469 = vmatpush3.msra.mxu1 %v4123_v45  ;;  %v4190_v36 = vld [vmem:[%s6434_s11 + $0x758] sm:$0xff]  ;;  %v4172_v45 = vld [vmem:[%s6434_s11 + $0x6c8] sm:$0xff] }
 0x55b   : > { %4437 = vmatprep.subr.mxu0 %v4105_v47  ;;  %4470 = vmatprep.subr.mxu1 %v4138_v48  ;;  %v4205_v47 = vld [vmem:[%s6434_s11 + $0x7d0] sm:$0xff]  ;;  %v4156_v48 = vld [vmem:[%s6434_s11 + $0x648] sm:$0xff] }
 0x55c   : > { %4438 = vmatpush3.msra.mxu0 %v4089_v2  ;;  %4471 = vmatpush3.msra.mxu1 %v4122_v50  ;;  %v4189_v2 = vld [vmem:[%s6434_s11 + $0x750] sm:$0xff]  ;;  %v4171_v50 = vld [vmem:[%s6434_s11 + $0x6c0] sm:$0xff] }
 0x55d   : > { %4439 = vmatprep.subr.mxu0 %v4104_v51  ;;  %4472 = vmatprep.subr.mxu1 %v4137_v52  ;;  %v4204_v51 = vld [vmem:[%s6434_s11 + $0x7c8] sm:$0xff]  ;;  %v4155_v52 = vld [vmem:[%s6434_s11 + $0x640] sm:$0xff] }
 0x55e   : > { %4440 = vmatpush3.msra.mxu0 %v4088_v53  ;;  %4473 = vmatpush3.msra.mxu1 %v4121_v54  ;;  %v4188_v53 = vld [vmem:[%s6434_s11 + $0x748] sm:$0xff]  ;;  %v4170_v54 = vld [vmem:[%s6434_s11 + $0x6b8] sm:$0xff] }
 0x55f   : > { %4441 = vmatprep.subr.mxu0 %v4103_v46  ;;  %4474 = vmatprep.subr.mxu1 %v4136_v55  ;;  %v4203_v46 = vld [vmem:[%s6434_s11 + $0x7c0] sm:$0xff]  ;;  %v4154_v55 = vld [vmem:[%s6434_s11 + $0x638] sm:$0xff] }
 0x560   : > { %4442 = vmatpush3.msra.mxu0 %v4087_v57  ;;  %4475 = vmatpush3.msra.mxu1 %v4120_v58  ;;  %v4187_v57 = vld [vmem:[%s6434_s11 + $0x740] sm:$0xff]  ;;  %v4169_v58 = vld [vmem:[%s6434_s11 + $0x6b0] sm:$0xff] }
 0x561   : > { %4443 = vmatprep.subr.mxu0 %v4102_v59  ;;  %4476 = vmatprep.subr.mxu1 %v4135_v62  ;;  %v4202_v59 = vld [vmem:[%s6434_s11 + $0x7b8] sm:$0xff]  ;;  %v4153_v62 = vld [vmem:[%s6434_s11 + $0x630] sm:$0xff] }
 0x562   : > { %4444 = vmatpush3.msra.mxu0 %v4086_v63  ;;  %4477 = vmatpush3.msra.mxu1 %v4119_v0  ;;  %v4186_v63 = vld [vmem:[%s6434_s11 + $0x738] sm:$0xff]  ;;  %v4168_v0 = vld [vmem:[%s6434_s11 + $0x6a8] sm:$0xff] }
 0x563   : > { %4445 = vmatprep.subr.mxu0 %v4101_v1  ;;  %4478 = vmatprep.subr.mxu1 %v4134_v3  ;;  %v4201_v1 = vld [vmem:[%s6434_s11 + $0x7b0] sm:$0xff]  ;;  %v4152_v3 = vld [vmem:[%s6434_s11 + $0x628] sm:$0xff] }
 0x564   : > { %4446 = vmatpush3.msra.mxu0 %v4085_v4  ;;  %4479 = vmatpush3.msra.mxu1 %v4118_v5  ;;  %v4185_v4 = vld [vmem:[%s6434_s11 + $0x730] sm:$0xff]  ;;  %v4167_v5 = vld [vmem:[%s6434_s11 + $0x6a0] sm:$0xff] }
 0x565   : > { %4447 = vmatprep.subr.mxu0 %v4100_v7  ;;  %4480 = vmatprep.subr.mxu1 %v4133_v8  ;;  %v4200_v7 = vld [vmem:[%s6434_s11 + $0x7a8] sm:$0xff]  ;;  %v4151_v8 = vld [vmem:[%s6434_s11 + $0x620] sm:$0xff] }
 0x566   : > { %4448 = vmatpush3.msra.mxu0 %v4084_v13  ;;  %4481 = vmatpush3.msra.mxu1 %v4117_v14  ;;  %v4184_v13 = vld [vmem:[%s6434_s11 + $0x728] sm:$0xff]  ;;  %v4166_v14 = vld [vmem:[%s6434_s11 + $0x698] sm:$0xff] }
 0x567   : > { %4449 = vmatprep.subr.mxu0 %v4099_v15  ;;  %4482 = vmatprep.subr.mxu1 %v4132_v10  ;;  %v4199_v15 = vld [vmem:[%s6434_s11 + $0x7a0] sm:$0xff]  ;;  %v4150_v10 = vld [vmem:[%s6434_s11 + $0x618] sm:$0xff] }
 0x568   : > { %4450 = vmatpush3.msra.mxu0 %v4083_v16  ;;  %4483 = vmatpush3.msra.mxu1 %v4116_v17  ;;  %v4183_v16 = vld [vmem:[%s6434_s11 + $0x720] sm:$0xff]  ;;  %v4165_v17 = vld [vmem:[%s6434_s11 + $0x690] sm:$0xff] }
 0x569   : > { %3202 = vmatmul.mubr.f32.vlgmr.msra.gmra.mxu0 %v3133_v37  ;;  %4484 = vmatprep.subr.mxu1 %v4131_v11  ;;  %v4198_v11 = vld [vmem:[%s6434_s11 + $0x798] sm:$0xff]  ;;  %v4149_v37 = vld [vmem:[%s6434_s11 + $0x610] sm:$0xff] }
 0x56a   : > { %4489 = vmatprep.subr.mxu0 %v4178_v12  ;;  %4485 = vmatpush3.msra.mxu1 %v4115_v18  ;;  %v4182_v12 = vld [vmem:[%s6434_s11 + $0x718] sm:$0xff]  ;;  %v4164_v18 = vld [vmem:[%s6434_s11 + $0x688] sm:$0xff] }
 0x56b   : > { %4490 = vmatpush3.msra.mxu0 %v4162_v19  ;;  %3417 = vmatprep.mubr.f32.mxu0 %v3350_v23  ;;  %v4197_v19 = vld [vmem:[%s6434_s11 + $0x790] sm:$0xff]  ;;  %v4148_v23 = vld [vmem:[%s6434_s11 + $0x608] sm:$0xff] }
 0x56c   : > { %3310 = vmatmul.mubr.f32.vlgmr.msra.gmra.mxu1 %v3241_v24  ;;  %4491 = vmatprep.subr.mxu0 %v4177_v22  ;;  %v4181_v22 = vld [vmem:[%s6434_s11 + $0x710] sm:$0xff]  ;;  %v4163_v24 = vld [vmem:[%s6434_s11 + $0x680] sm:$0xff] }
 0x56d   : > { %4524 = vmatprep.subr.mxu1 %v4210_v26  ;;  %4492 = vmatpush3.msra.mxu0 %v4161_v27  ;;  %v4196_v26 = vld [vmem:[%s6434_s11 + $0x788] sm:$0xff]  ;;  %v4147_v27 = vld [vmem:[%s6434_s11 + $0x600] sm:$0xff] }
 0x56e   : > { %4525 = vmatpush3.msra.mxu1 %v4194_v28  ;;  %3525 = vmatprep.mubr.f32.mxu1 %v3458_v21  ;;  %v4180_v28 = vld [vmem:[%s6434_s11 + $0x708] sm:$0xff]  ;;  %v4195_v21 = vld [vmem:[%s6434_s11 + $0x780] sm:$0xff] }
 0x56f   : > { %4493 = vmatprep.subr.mxu0 %v4176_v31  ;;  %4526 = vmatprep.subr.mxu1 %v4209_v34  ;;  %v3349_v31 = vrot.slane %v5575_v49, 6  ;;  %v4179_v34 = vld [vmem:[%s6434_s11 + $0x700] sm:$0xff] }
 0x570   : > { %4494 = vmatpush3.msra.mxu0 %v4160_v35  ;;  %4527 = vmatpush3.msra.mxu1 %v4193_v39  ;;  %v4242_v35 = vld [vmem:[%s6434_s11 + $0x8f8] sm:$0xff] }
 0x571   : > { %4495 = vmatprep.subr.mxu0 %v4175_v56  ;;  %4528 = vmatprep.subr.mxu1 %v4208_v40  ;;  %v4226_v39 = vld [vmem:[%s6434_s11 + $0x878] sm:$0xff]  ;;  %v3457_v56 = vrot.slane %v5575_v49, 7  ;;  %v4241_v40 = vld [vmem:[%s6434_s11 + $0x8f0] sm:$0xff]  ;;  %v4240_v49 = vld [vmem:[%s6434_s11 + $0x8e8] sm:$0xff] }
 0x572   : > { %4496 = vmatpush3.msra.mxu0 %v4159_v20  ;;  %4529 = vmatpush3.msra.mxu1 %v4192_v41  ;;  %v4274_v20 = vld [vmem:[%s6434_s11 + $0x9f8] sm:$0xff]  ;;  %v4225_v41 = vld [vmem:[%s6434_s11 + $0x870] sm:$0xff] }
 0x573   : > { %4497 = vmatprep.subr.mxu0 %v4174_v42  ;;  %4530 = vmatprep.subr.mxu1 %v4207_v29  ;;  %v4258_v42 = vld [vmem:[%s6434_s11 + $0x978] sm:$0xff]  ;;  %v4273_v29 = vld [vmem:[%s6434_s11 + $0x9f0] sm:$0xff] }
 0x574   : > { %4498 = vmatpush3.msra.mxu0 %v4158_v30  ;;  %4531 = vmatpush3.msra.mxu1 %v4191_v44  ;;  %v4224_v30 = vld [vmem:[%s6434_s11 + $0x868] sm:$0xff]  ;;  %v4257_v44 = vld [vmem:[%s6434_s11 + $0x970] sm:$0xff] }
 0x575   : > { %4499 = vmatprep.subr.mxu0 %v4173_v6  ;;  %4532 = vmatprep.subr.mxu1 %v4206_v38  ;;  %v4239_v6 = vld [vmem:[%s6434_s11 + $0x8e0] sm:$0xff]  ;;  %v4272_v38 = vld [vmem:[%s6434_s11 + $0x9e8] sm:$0xff] }
 0x576   : > { %4500 = vmatpush3.msra.mxu0 %v4157_v43  ;;  %4533 = vmatpush3.msra.mxu1 %v4190_v36  ;;  %v4223_v43 = vld [vmem:[%s6434_s11 + $0x860] sm:$0xff]  ;;  %v4256_v36 = vld [vmem:[%s6434_s11 + $0x968] sm:$0xff] }
 0x577   : > { %4501 = vmatprep.subr.mxu0 %v4172_v45  ;;  %4534 = vmatprep.subr.mxu1 %v4205_v47  ;;  %v4238_v45 = vld [vmem:[%s6434_s11 + $0x8d8] sm:$0xff]  ;;  %v4271_v47 = vld [vmem:[%s6434_s11 + $0x9e0] sm:$0xff] }
 0x578   : > { %4502 = vmatpush3.msra.mxu0 %v4156_v48  ;;  %4535 = vmatpush3.msra.mxu1 %v4189_v2  ;;  %v4222_v48 = vld [vmem:[%s6434_s11 + $0x858] sm:$0xff]  ;;  %v4255_v2 = vld [vmem:[%s6434_s11 + $0x960] sm:$0xff] }
 0x579   : > { %4503 = vmatprep.subr.mxu0 %v4171_v50  ;;  %4536 = vmatprep.subr.mxu1 %v4204_v51  ;;  %v4237_v50 = vld [vmem:[%s6434_s11 + $0x8d0] sm:$0xff]  ;;  %v4270_v51 = vld [vmem:[%s6434_s11 + $0x9d8] sm:$0xff] }
 0x57a   : > { %4504 = vmatpush3.msra.mxu0 %v4155_v52  ;;  %4537 = vmatpush3.msra.mxu1 %v4188_v53  ;;  %v4221_v52 = vld [vmem:[%s6434_s11 + $0x850] sm:$0xff]  ;;  %v4254_v53 = vld [vmem:[%s6434_s11 + $0x958] sm:$0xff] }
 0x57b   : > { %4505 = vmatprep.subr.mxu0 %v4170_v54  ;;  %4538 = vmatprep.subr.mxu1 %v4203_v46  ;;  %v4236_v54 = vld [vmem:[%s6434_s11 + $0x8c8] sm:$0xff]  ;;  %v4269_v46 = vld [vmem:[%s6434_s11 + $0x9d0] sm:$0xff] }
 0x57c   : > { %4506 = vmatpush3.msra.mxu0 %v4154_v55  ;;  %4539 = vmatpush3.msra.mxu1 %v4187_v57  ;;  %v4220_v55 = vld [vmem:[%s6434_s11 + $0x848] sm:$0xff]  ;;  %v4253_v57 = vld [vmem:[%s6434_s11 + $0x950] sm:$0xff] }
 0x57d   : > { %4507 = vmatprep.subr.mxu0 %v4169_v58  ;;  %4540 = vmatprep.subr.mxu1 %v4202_v59  ;;  %v4235_v58 = vld [vmem:[%s6434_s11 + $0x8c0] sm:$0xff]  ;;  %v4268_v59 = vld [vmem:[%s6434_s11 + $0x9c8] sm:$0xff] }
 0x57e   : > { %4508 = vmatpush3.msra.mxu0 %v4153_v62  ;;  %4541 = vmatpush3.msra.mxu1 %v4186_v63  ;;  %v4219_v62 = vld [vmem:[%s6434_s11 + $0x840] sm:$0xff]  ;;  %v4252_v63 = vld [vmem:[%s6434_s11 + $0x948] sm:$0xff] }
 0x57f   : > { %4509 = vmatprep.subr.mxu0 %v4168_v0  ;;  %4542 = vmatprep.subr.mxu1 %v4201_v1  ;;  %v4234_v0 = vld [vmem:[%s6434_s11 + $0x8b8] sm:$0xff]  ;;  %v4267_v1 = vld [vmem:[%s6434_s11 + $0x9c0] sm:$0xff] }
 0x580   : > { %4510 = vmatpush3.msra.mxu0 %v4152_v3  ;;  %4543 = vmatpush3.msra.mxu1 %v4185_v4 }
 0x581   : > { %4511 = vmatprep.subr.mxu0 %v4167_v5  ;;  %4544 = vmatprep.subr.mxu1 %v4200_v7  ;;  %v4218_v5 = vld [vmem:[%s6434_s11 + $0x838] sm:$0xff]  ;;  %v4251_v7 = vld [vmem:[%s6434_s11 + $0x940] sm:$0xff] }
 0x582   : > { %4512 = vmatpush3.msra.mxu0 %v4151_v8  ;;  %4545 = vmatpush3.msra.mxu1 %v4184_v13  ;;  %v4233_v8 = vld [vmem:[%s6434_s11 + $0x8b0] sm:$0xff]  ;;  %v4266_v13 = vld [vmem:[%s6434_s11 + $0x9b8] sm:$0xff] }
 0x583   : > { %4513 = vmatprep.subr.mxu0 %v4166_v14  ;;  %4546 = vmatprep.subr.mxu1 %v4199_v15  ;;  %v4217_v14 = vld [vmem:[%s6434_s11 + $0x830] sm:$0xff]  ;;  %v4250_v15 = vld [vmem:[%s6434_s11 + $0x938] sm:$0xff] }
 0x584   : > { %4514 = vmatpush3.msra.mxu0 %v4150_v10  ;;  %4547 = vmatpush3.msra.mxu1 %v4183_v16  ;;  %v4232_v10 = vld [vmem:[%s6434_s11 + $0x8a8] sm:$0xff]  ;;  %v4265_v16 = vld [vmem:[%s6434_s11 + $0x9b0] sm:$0xff] }
 0x585   : > { %4515 = vmatprep.subr.mxu0 %v4165_v17  ;;  %4548 = vmatprep.subr.mxu1 %v4198_v11  ;;  %v4216_v17 = vld [vmem:[%s6434_s11 + $0x828] sm:$0xff]  ;;  %v4249_v11 = vld [vmem:[%s6434_s11 + $0x930] sm:$0xff] }
 0x586   : > { %4516 = vmatpush3.msra.mxu0 %v4149_v37  ;;  %4549 = vmatpush3.msra.mxu1 %v4182_v12  ;;  %v4231_v37 = vld [vmem:[%s6434_s11 + $0x8a0] sm:$0xff]  ;;  %v4264_v12 = vld [vmem:[%s6434_s11 + $0x9a8] sm:$0xff] }
 0x587   : > { %4517 = vmatprep.subr.mxu0 %v4164_v18  ;;  %4550 = vmatprep.subr.mxu1 %v4197_v19 }
 0x588   : > { %4518 = vmatpush3.msra.mxu0 %v4148_v23  ;;  %4551 = vmatpush3.msra.mxu1 %v4181_v22  ;;  %v4215_v23 = vld [vmem:[%s6434_s11 + $0x820] sm:$0xff]  ;;  %v4248_v22 = vld [vmem:[%s6434_s11 + $0x928] sm:$0xff] }
 0x589   : > { %4519 = vmatprep.subr.mxu0 %v4163_v24  ;;  %4552 = vmatprep.subr.mxu1 %v4196_v26  ;;  %v4230_v24 = vld [vmem:[%s6434_s11 + $0x898] sm:$0xff]  ;;  %v4263_v26 = vld [vmem:[%s6434_s11 + $0x9a0] sm:$0xff] }
 0x58a   : > { %4520 = vmatpush3.msra.mxu0 %v4147_v27  ;;  %4553 = vmatpush3.msra.mxu1 %v4180_v28  ;;  %v4214_v27 = vld [vmem:[%s6434_s11 + $0x818] sm:$0xff]  ;;  %v4247_v28 = vld [vmem:[%s6434_s11 + $0x920] sm:$0xff] }
 0x58b   : > { %3418 = vmatmul.mubr.f32.vlgmr.msra.gmra.mxu0 %v3349_v31  ;;  %4554 = vmatprep.subr.mxu1 %v4195_v21  ;;  %v4229_v21 = vld [vmem:[%s6434_s11 + $0x890] sm:$0xff]  ;;  %v4262_v31 = vld [vmem:[%s6434_s11 + $0x998] sm:$0xff] }
 0x58c   : > { %4555 = vmatpush3.msra.mxu1 %v4179_v34  ;;  %4559 = vmatprep.subr.mxu0 %v4242_v35  ;;  %v4213_v34 = vld [vmem:[%s6434_s11 + $0x810] sm:$0xff]  ;;  %v4246_v35 = vld [vmem:[%s6434_s11 + $0x918] sm:$0xff] }
 0x58d   : > { %3526 = vmatmul.mubr.f32.vlgmr.msra.gmra.mxu1 %v3457_v56  ;;  %4560 = vmatpush3.msra.mxu0 %v4226_v39  ;;  %v4228_v39 = vld [vmem:[%s6434_s11 + $0x888] sm:$0xff]  ;;  %v4261_v56 = vld [vmem:[%s6434_s11 + $0x990] sm:$0xff] }
 0x58e   : > { %4561 = vmatprep.subr.mxu0 %v4241_v40  ;;  %4594 = vmatprep.subr.mxu1 %v4274_v20 }
 0x58f   : > { %4562 = vmatpush3.msra.mxu0 %v4225_v41  ;;  %4595 = vmatpush3.msra.mxu1 %v4258_v42  ;;  %v4212_v41 = vld [vmem:[%s6434_s11 + $0x808] sm:$0xff]  ;;  %v4245_v42 = vld [vmem:[%s6434_s11 + $0x910] sm:$0xff] }
 0x590   : > { %4563 = vmatprep.subr.mxu0 %v4240_v49  ;;  %4596 = vmatprep.subr.mxu1 %v4273_v29  ;;  %v4227_v49 = vld [vmem:[%s6434_s11 + $0x880] sm:$0xff]  ;;  %v4260_v29 = vld [vmem:[%s6434_s11 + $0x988] sm:$0xff] }
 0x591   : > { %4564 = vmatpush3.msra.mxu0 %v4224_v30  ;;  %4597 = vmatpush3.msra.mxu1 %v4257_v44  ;;  %v4211_v30 = vld [vmem:[%s6434_s11 + $0x800] sm:$0xff]  ;;  %v4244_v44 = vld [vmem:[%s6434_s11 + $0x908] sm:$0xff] }
 0x592   : > { %4565 = vmatprep.subr.mxu0 %v4239_v6  ;;  %4598 = vmatprep.subr.mxu1 %v4272_v38 }
 0x593   : > { %4566 = vmatpush3.msra.mxu0 %v4223_v43  ;;  %4599 = vmatpush3.msra.mxu1 %v4256_v36  ;;  %v4259_v43 = vld [vmem:[%s6434_s11 + $0x980] sm:$0xff] }
 0x594   : > { %4567 = vmatprep.subr.mxu0 %v4238_v45  ;;  %4600 = vmatprep.subr.mxu1 %v4271_v47  ;;  %v4243_v45 = vld [vmem:[%s6434_s11 + $0x900] sm:$0xff] }
 0x595   : > { %4568 = vmatpush3.msra.mxu0 %v4222_v48  ;;  %4601 = vmatpush3.msra.mxu1 %v4255_v2 }
 0x596   : > { %4569 = vmatprep.subr.mxu0 %v4237_v50  ;;  %4602 = vmatprep.subr.mxu1 %v4270_v51 }
 0x597   : > { %4570 = vmatpush3.msra.mxu0 %v4221_v52  ;;  %4603 = vmatpush3.msra.mxu1 %v4254_v53 }
 0x598   : > { %4571 = vmatprep.subr.mxu0 %v4236_v54  ;;  %4604 = vmatprep.subr.mxu1 %v4269_v46  ;;  %v6284_v3 = vpop.permute.xlu1 %2582 }
 0x599   : > { %4572 = vmatpush3.msra.mxu0 %v4220_v55  ;;  %4605 = vmatpush3.msra.mxu1 %v4253_v57  ;;  %v6286_v4 = vpop.permute.xlu0 %2578 }
 0x59a   : > { %4573 = vmatprep.subr.mxu0 %v4235_v58  ;;  %4606 = vmatprep.subr.mxu1 %v4268_v59  ;;  %v2585_v36 = vsel %vm659_vm0, %v6286_v4, %v6284_v3  ;;  %v2587_v47 = vsel %vm659_vm0, %v6284_v3, %v6286_v4  ;;  %vm3753_vm0 = vcmask 1046528  }
 0x59b   : > { %4574 = vmatpush3.msra.mxu0 %v4219_v62  ;;  %4607 = vmatpush3.msra.mxu1 %v4252_v63  ;;  %v2590_v52 = vmax.f32 %v5599_v61, %v2585_v36  ;;  %v2591_v53 = vmax.f32 %v5597_v60, %v2587_v47  ;;  %v3747_v60 = vld [vmem:[%s6436_s13 + $0x8] sm:$0x7f]  ;;  %v3746_v61 = vld [vmem:[%s6436_s13] sm:$0xff] }
 0x59c   : > { %4575 = vmatprep.subr.mxu0 %v4234_v0  ;;  %4608 = vmatprep.subr.mxu1 %v4267_v1  ;;  %v3748_v36 = vld [vmem:[#allocation2] sm:$0x1] }
 0x59d   : > { %4576 = vmatpush3.msra.mxu0 %v4218_v5  ;;  %4609 = vmatpush3.msra.mxu1 %v4251_v7 }
 0x59e   : > { %4577 = vmatprep.subr.mxu0 %v4233_v8  ;;  %4610 = vmatprep.subr.mxu1 %v4266_v13  ;;  %v2599_v18 = vpop.permute.xlu1 %2598  ;;  %v2595_v19 = vpop.permute.xlu0 %2594  ;;  %v2670_v8 = vld [vmem:[%s6435_s12] sm:$0x1] }
 0x59f   : > { %4578 = vmatpush3.msra.mxu0 %v4217_v14  ;;  %4611 = vmatpush3.msra.mxu1 %v4250_v15  ;;  %v2601_v48 = vsel %vm727_vm3, %v2595_v19, %v2599_v18  ;;  %v2603_v2 = vsel %vm727_vm3, %v2599_v18, %v2595_v19  ;;  %vm4682_vm3 = vmmov 0  }
 0x5a0   : > { %4579 = vmatprep.subr.mxu0 %v4232_v10  ;;  %4612 = vmatprep.subr.mxu1 %v4265_v16 }
 0x5a1   : > { %4580 = vmatpush3.msra.mxu0 %v4216_v17  ;;  %4613 = vmatpush3.msra.mxu1 %v4249_v11 }
 0x5a2   : > { %4581 = vmatprep.subr.mxu0 %v4231_v37  ;;  %4614 = vmatprep.subr.mxu1 %v4264_v12 }
 0x5a3   : > { %4582 = vmatpush3.msra.mxu0 %v4215_v23  ;;  %4615 = vmatpush3.msra.mxu1 %v4248_v22  ;;  %v2611_v40 = vpop.permute.xlu1 %2610  ;;  %v2607_v20 = vpop.permute.xlu0 %2606 }
 0x5a4   : > { %4583 = vmatprep.subr.mxu0 %v4230_v24  ;;  %4616 = vmatprep.subr.mxu1 %v4263_v26  ;;  %v2613_v6 = vsel %vm759_vm5, %v2607_v20, %v2611_v40  ;;  %v2615_v38 = vsel %vm759_vm5, %v2611_v40, %v2607_v20  ;;  %vm3749_vm5 = vcmask 121856  }
 0x5a5   : > { %4584 = vmatpush3.msra.mxu0 %v4214_v27  ;;  %4617 = vmatpush3.msra.mxu1 %v4247_v28  ;;  %v2618_v50 = vmax.f32 %v2601_v48, %v2613_v6  ;;  %v2619_v51 = vmax.f32 %v2603_v2, %v2615_v38 }
 0x5a6   : > { %4585 = vmatprep.subr.mxu0 %v4229_v21  ;;  %4618 = vmatprep.subr.mxu1 %v4262_v31 }
 0x5a7   : > { %4586 = vmatpush3.msra.mxu0 %v4213_v34  ;;  %4619 = vmatpush3.msra.mxu1 %v4246_v35  ;;  %v2622_v54 = vmax.f32 %v2590_v52, %v2618_v50  ;;  %v2623_v46 = vmax.f32 %v2591_v53, %v2619_v51 }
 0x5a8   : > { %4587 = vmatprep.subr.mxu0 %v4228_v39  ;;  %4620 = vmatprep.subr.mxu1 %v4261_v56 }
 0x5a9   : > { %4588 = vmatpush3.msra.mxu0 %v4212_v41  ;;  %4621 = vmatpush3.msra.mxu1 %v4245_v42 }
 0x5aa   : > { %4589 = vmatprep.subr.mxu0 %v4227_v49  ;;  %4622 = vmatprep.subr.mxu1 %v4260_v29 }
 0x5ab   : > { %4590 = vmatpush3.msra.mxu0 %v4211_v30  ;;  %4623 = vmatpush3.msra.mxu1 %v4244_v44 }
 0x5ac   : > { %4624 = vmatprep.subr.mxu1 %v4259_v43  ;;  %4632 = vmatprep.subr.mxu0 %v4673_v9 }
 0x5ad   : > { %4625 = vmatpush3.msra.mxu1 %v4243_v45 }
 0x5b1   : > { %v2634_v55 = vpop.permute.xlu0 %2633  ;;  %v2650_v59 = vpop.permute.xlu1 %2649 }
 0x5b2   : > { %v2638_v57 = vmul.f32 %v2634_v55, %v2622_v54  ;;  %v2639_v58 = vmul.f32 %v2634_v55, %v2623_v46 }
 0x5b4   : > { %v2654_v25 = vadd.f32 %v2650_v59, %v2638_v57  ;;  %v2655_v62 = vadd.f32 %v2650_v59, %v2639_v58 }
 0x5b6   : > { %v2668_v63 = vmul.f32 %v5569_v32, %v2654_v25  ;;  %v2669_v0 = vmul.f32 %v5572_v33, %v2655_v62 }
 0x5b8   : > { %v3671_v1 = vrot.slane %v2668_v63, 1  ;;  %3629 = vmatprep.mubr.f32.mxu0 %v2669_v0  ;;  %v3672_v3 = vrot.slane %v2669_v0, 1 }
 0x5b9   : > { %3630 = vmatmul.mubr.f32.vlgmr.msra.gmra.mxu0 %v2668_v63 }
 0x5ba   : > { %3739 = vmatprep.mubr.f32.mxu1 %v3672_v3  ;;  %4633 = vmatpush3.msk.msra.mxu0 %vm3753_vm0, %v3747_v60 }
 0x5bb   : > { %3740 = vmatmul.mubr.f32.vlgmr.msra.gmra.mxu1 %v3671_v1  ;;  %4636 = vmatprep.mubr.msk.f32.mxu0 %vm4682_vm3, %v4673_v9 }
 0x5bc   : > { %4634 = vmatprep.subr.mxu0 %v4673_v9 }
 0x5bd   : > { %4635 = vmatpush3.msra.mxu0 %v3746_v61 }
 0x5e2   : > { %v4311_v32 = vpop.f32.mrf.mxu0 }
 0x5e4   : > { %v4312_v33 = vpop.f32.mrf.mxu0 }
 0x5e5   : > { %v4346_v4 = vpop.f32.mrf.mxu1  ;;  %v4313_v7 = vadd.f32 %v4312_v33, %v4311_v32 }
 0x5e7   : > { %v4347_v13 = vpop.f32.mrf.mxu1  ;;  %v2773_v10 = vadd.f32 %v4313_v7, %v2670_v8 }
 0x5e8   : > { %v4348_v16 = vadd.f32 %v4347_v13, %v4346_v4 }
 0x5ea   : > { %v2883_v12 = vadd.f32 %v4348_v16, %v2773_v10 }
 0x607   : > { %v4381_v5 = vpop.f32.mrf.mxu0 }
 0x609   : > { %v4382_v14 = vpop.f32.mrf.mxu0 }
 0x60a   : > { %v4416_v15 = vpop.f32.mrf.mxu1  ;;  %v4383_v11 = vadd.f32 %v4382_v14, %v4381_v5 }
 0x60c   : > { %v4417_v37 = vpop.f32.mrf.mxu1  ;;  %v2991_v19 = vadd.f32 %v4383_v11, %v2883_v12 }
 0x60d   : > { %v4418_v23 = vadd.f32 %v4417_v37, %v4416_v15 }
 0x60f   : > { %v3099_v27 = vadd.f32 %v4418_v23, %v2991_v19 }
 0x629   : > { %v4451_v17 = vpop.f32.mrf.mxu0 }
 0x62b   : > { %v4452_v9 = vpop.f32.mrf.mxu0 }
 0x62c   : > { %v4486_v18 = vpop.f32.mrf.mxu1  ;;  %v4453_v24 = vadd.f32 %v4452_v9, %v4451_v17 }
 0x62e   : > { %v4487_v26 = vpop.f32.mrf.mxu1  ;;  %v3207_v31 = vadd.f32 %v4453_v24, %v3099_v27 }
 0x62f   : > { %v4488_v34 = vadd.f32 %v4487_v26, %v4486_v18 }
 0x631   : > { %v3315_v56 = vadd.f32 %v4488_v34, %v3207_v31 }
 0x64b   : > { %v4521_v22 = vpop.f32.mrf.mxu0 }
 0x64d   : > { %v4522_v28 = vpop.f32.mrf.mxu0  ;;  %v4556_v21 = vpop.f32.mrf.mxu1 }
 0x64e   : > { %v4523_v35 = vadd.f32 %v4522_v28, %v4521_v22 }
 0x64f   : > { %v4557_v39 = vpop.f32.mrf.mxu1 }
 0x650   : > { %v3423_v40 = vadd.f32 %v4523_v35, %v3315_v56  ;;  %v4558_v20 = vadd.f32 %v4557_v39, %v4556_v21 }
 0x652   : > { %v3531_v29 = vadd.f32 %v4558_v20, %v3423_v40 }
 0x679   : > { %v4591_v41 = vpop.f32.mrf.mxu0 }
 0x67b   : > { %v4592_v42 = vpop.f32.mrf.mxu0  ;;  %v4626_v49 = vpop.f32.mrf.mxu1 }
 0x67c   : > { %v4593_v30 = vadd.f32 %v4592_v42, %v4591_v41 }
 0x67d   : > { %v4627_v44 = vpop.f32.mrf.mxu1 }
 0x67e   : > { %v3635_v6 = vadd.f32 %v4593_v30, %v3531_v29  ;;  %v4628_v38 = vadd.f32 %v4627_v44, %v4626_v49 }
 0x680   : > { %v3745_v43 = vadd.f32 %v4628_v38, %v3635_v6 }
 0x682   : > { %4637 = vmatmul.mubr.msk.f32.vlgmr.msra.gmra.mxu0 %vm3749_vm5, %v3745_v43 }
 0x742   : > { %v3823_v45 = vpop.f32.mrf.mxu0 }
 0x743   : > { %v3824_v47 = vadd.f32 %v3823_v45, %v3748_v36 }
 0x744   : > { %v4638_v48 = vpop.f32.mrf.mxu0 }
 0x745   : > { %v3827_v2 = vsub.f32 0.0, %v3824_v47 }
 0x747   : > { %v3828_v50 = vmul.f32 1.442695, %v3827_v2 }
 0x749   : > { %4660 = vpow2.f32 %v3828_v50 }
 0x756   : > { %v4661_v51 = vpop.eup %4660 }
 0x757   : > { %v3830_v52 = vadd.f32 1.0, %v4661_v51 }
 0x759   : > { %4662 = vrcp.f32 %v3830_v52 }
 0x766   : > { %v4663_v53 = vpop.eup %4662 }
 0x767   : > { %3834 = vst.msk [vmem:[%s489_s28] sm:$0x1] %vm3833_vm2, %v4663_v53 }
 0x768 PF: > { %s27_s20 = sadd.s32 1, %s4670_s20  }
 0x769   : > { %p24_p4 = scmp.ge.s32.totalorder %s27_s20, 4  }
 0x76b   :  { %26 = sbr.rel (!%p24_p4) target bundleno = 3 (0x3), region = 143 }

</bundles_post_ra>
